<compile_context>
chip_gen: v7x
topology: tpu7x:2x2x1
jax: 0.10.0
libtpu: 0.0.40
codegen_flags: <defaults>
</compile_context>

<pallas_src>
import math
import functools
import numpy as np

import jax
import jax.numpy as jnp
from jax.experimental import pallas as pl
from jax.experimental.pallas import tpu as pltpu  # noqa: F401


# ----------------------- small Speech2Text-style config -----------------------
class DecoderConfig:
    vocab_size = 48
    d_model = 32
    decoder_layers = 2
    decoder_attention_heads = 4
    decoder_ffn_dim = 64
    max_target_positions = 64
    pad_token_id = 1
    decoder_start_token_id = 2
    eos_token_id = 2
    scale_embedding = True          # Speech2Text default
    activation_function = "relu"    # Speech2Text default
    layer_norm_eps = 1e-5


MASK_BIAS = -1e9  # finite; avoids -inf/-inf -> NaN in softmax


def _pos_rows(cfg):
    # sinusoidal table rows (max_target_positions + offset 2), padded to a multiple of 8
    p = cfg.max_target_positions + 2
    return int(-(-p // 8) * 8)


# ----------------------- the single fused decoder kernel -----------------------
def _decoder_kernel(*refs, num_layers, num_heads, batch, tgt_len, src_len, src_valid,
                    eps, d_model, ffn_dim, vocab_rows, pos_rows,
                    has_self_mask, has_cross_mask):
    it = iter(refs)
    idpos_ref = next(it)                     # (B*T, 2) int32  [token id | position id]
    enc_ref = next(it)                       # (B*S_pad, D) f32 encoder hidden states
    selfm_ref = next(it) if has_self_mask else None    # (B, T) f32, nonzero = keep
    crossm_ref = next(it) if has_cross_mask else None  # (B, S_pad) f32, nonzero = keep
    wA_ref = next(it)                        # (L, D, 8D+F)  per-layer D-row weights
    wB_ref = next(it)                        # (L, F, D)     per-layer fc2
    bC_ref = next(it)                        # (L, 16, 128)  per-layer bias / LN rows
    g_ref = next(it)                         # (160, 128)    globals slab
    out_ref = next(it)                       # (B*T, V_pad)

    f32 = jnp.float32
    D, F, H = d_model, ffn_dim, num_heads
    Dh = D // H
    B, T, S = batch, tgt_len, src_len
    N = B * T

    # ---- single whole-array loads; all math below stays on VMEM-resident values ----
    idpos = idpos_ref[...]
    enc = enc_ref[...]
    wA = wA_ref[...]
    wB = wB_ref[...]
    bC = bC_ref[...]
    G = g_ref[...]

    # globals slab row layout (all offsets are multiples of 8 sublanes)
    w_lm = G[0:D, :]                                        # (D, 128) lm_head (vocab-padded)
    emb_tab = G[D:D + vocab_rows, 0:D]                      # (V, D), pre-scaled by sqrt(D)
    pos_tab = G[D + vocab_rows:D + vocab_rows + pos_rows, 0:D]   # (P_pad, D)
    fin_off = D + vocab_rows + pos_rows
    fin_g = G[fin_off:fin_off + 1, 0:D]
    fin_b = G[fin_off + 1:fin_off + 2, 0:D]

    # ---- embeddings: gathers done in-kernel via one-hot matmuls ----
    tok_ids = idpos[:, 0:1]
    pos_ids = idpos[:, 1:2]
    tok_oh = (jax.lax.broadcasted_iota(jnp.int32, (N, vocab_rows), 1) == tok_ids).astype(f32)
    pos_oh = (jax.lax.broadcasted_iota(jnp.int32, (N, pos_rows), 1) == pos_ids).astype(f32)
    x = (jnp.dot(tok_oh, emb_tab, preferred_element_type=f32)
         + jnp.dot(pos_oh, pos_tab, preferred_element_type=f32))        # (B*T, D)

    # ---- attention biases: built from iota once, hoisted & pre-broadcast to (H*B, tq, tk) ----
    rr = jax.lax.broadcasted_iota(jnp.int32, (T, T), 0)
    cc = jax.lax.broadcasted_iota(jnp.int32, (T, T), 1)
    causal = jnp.where(rr >= cc, 0.0, MASK_BIAS).astype(f32)            # (T, T)
    self_b = jnp.broadcast_to(causal[None], (B, T, T))
    if has_self_mask:
        sm = selfm_ref[...]
        self_b = self_b + jnp.where(sm != 0.0, 0.0, MASK_BIAS).astype(f32)[:, None, :]
    self_bias = jnp.concatenate([self_b] * H, axis=0)                   # (H*B, T, T)

    kcol = jax.lax.broadcasted_iota(jnp.int32, (1, S), 1)
    cross_k = jnp.where(kcol < src_valid, 0.0, MASK_BIAS).astype(f32)   # masks seq padding
    cross_k = jnp.broadcast_to(cross_k, (B, S))
    if has_cross_mask:
        cm = crossm_ref[...]
        cross_k = cross_k + jnp.where(cm != 0.0, 0.0, MASK_BIAS).astype(f32)
    cross_b = jnp.broadcast_to(cross_k[:, None, :], (B, T, S))
    cross_bias = jnp.concatenate([cross_b] * H, axis=0)                 # (H*B, T, S)

    def layer_norm(v, g, b):
        mu = jnp.mean(v, axis=-1, keepdims=True)
        var = jnp.mean(jnp.square(v - mu), axis=-1, keepdims=True)
        return (v - mu) * jax.lax.rsqrt(var + eps) * g + b

    def mha(q_in, kv_in, w_q, w_k, w_v, w_o, b_q, b_k, b_v, b_o, bias_full, tq, tk):
        # Per-head projections put heads on the leading (batch) axis -> merged batched
        # score/softmax/context einsums; no activation lane slicing or lane concat.
        qs, ks, vs = [], [], []
        for h in range(H):
            sl = slice(h * Dh, (h + 1) * Dh)
            qs.append(jnp.dot(q_in, w_q[:, sl], preferred_element_type=f32) + b_q[:, sl])
            ks.append(jnp.dot(kv_in, w_k[:, sl], preferred_element_type=f32) + b_k[:, sl])
            vs.append(jnp.dot(kv_in, w_v[:, sl], preferred_element_type=f32) + b_v[:, sl])
        q = jnp.concatenate(qs, axis=0).reshape(H * B, tq, Dh)
        k = jnp.concatenate(ks, axis=0).reshape(H * B, tk, Dh)
        v = jnp.concatenate(vs, axis=0).reshape(H * B, tk, Dh)
        s = jnp.einsum('bqd,bkd->bqk', q, k, preferred_element_type=f32) + bias_full
        s = s - jnp.max(s, axis=-1, keepdims=True)       # one consolidated row-max (NaN-safe)
        p = jnp.exp(s)
        p = p * pl.reciprocal(jnp.sum(p, axis=-1, keepdims=True), approx=True)
        ctx = jnp.einsum('bqk,bkd->bqd', p, v, preferred_element_type=f32)   # (H*B, tq, Dh)
        ctx = ctx.reshape(H, B * tq, Dh)
        out = b_o                                        # (1, D) broadcasts over rows
        for h in range(H):
            out = out + jnp.dot(ctx[h], w_o[h * Dh:(h + 1) * Dh, :],
                                preferred_element_type=f32)
        return out                                       # (B*tq, D)

    # L=2: keep the layer loop unrolled (fori_loop over stacked slabs only if L grows).
    for l in range(num_layers):
        A = wA[l]      # (D, 8D+F)
        C = bC[l]      # (16, 128)

        # ---- self attention (pre-LN, causal) ----
        hx = layer_norm(x, C[0:1, 0:D], C[1:2, 0:D])
        x = x + mha(hx, hx,
                    A[:, 0 * D:1 * D], A[:, 1 * D:2 * D], A[:, 2 * D:3 * D], A[:, 3 * D:4 * D],
                    C[2:3, 0:D], C[3:4, 0:D], C[4:5, 0:D], C[5:6, 0:D],
                    self_bias, T, T)

        # ---- cross attention (pre-LN) ----
        hx = layer_norm(x, C[6:7, 0:D], C[7:8, 0:D])
        x = x + mha(hx, enc,
                    A[:, 4 * D:5 * D], A[:, 5 * D:6 * D], A[:, 6 * D:7 * D], A[:, 7 * D:8 * D],
                    C[8:9, 0:D], C[9:10, 0:D], C[10:11, 0:D], C[11:12, 0:D],
                    cross_bias, T, S)

        # ---- feed forward (pre-LN, relu) ----
        hx = layer_norm(x, C[12:13, 0:D], C[13:14, 0:D])
        hx = jnp.maximum(
            jnp.dot(hx, A[:, 8 * D:8 * D + F], preferred_element_type=f32) + C[14:15, 0:F], 0.0)
        x = x + jnp.dot(hx, wB[l], preferred_element_type=f32) + C[15:16, 0:D]

    # final LayerNorm of Speech2TextDecoder + lm_head (no bias, 128-lane-dense store)
    x = layer_norm(x, fin_g, fin_b)
    out_ref[...] = jnp.dot(x, w_lm, preferred_element_type=f32).astype(out_ref.dtype)


# ----------------------- glue: token shift / positions / packing -----------------------
def shift_tokens_right(labels, pad_token_id, decoder_start_token_id):
    shifted = jnp.zeros_like(labels)
    shifted = shifted.at[:, 1:].set(labels[:, :-1])
    shifted = shifted.at[:, 0].set(decoder_start_token_id)
    shifted = jnp.where(shifted == -100, pad_token_id, shifted)
    return shifted


def create_position_ids_from_input_ids(input_ids, padding_idx):
    mask = (input_ids != padding_idx).astype(jnp.int32)
    incremental = jnp.cumsum(mask, axis=1) * mask
    return incremental + padding_idx


def sinusoidal_embedding_table(num_embeddings, embedding_dim, padding_idx):
    # identical to Speech2TextSinusoidalPositionalEmbedding.get_embedding
    half_dim = embedding_dim // 2
    emb = math.log(10000) / (half_dim - 1)
    freq = np.exp(np.arange(half_dim) * -emb)
    pos = np.arange(num_embeddings)[:, None].astype(np.float64) * freq[None, :]
    table = np.concatenate([np.sin(pos), np.cos(pos)], axis=1).reshape(num_embeddings, -1)
    if embedding_dim % 2 == 1:
        table = np.concatenate([table, np.zeros((num_embeddings, 1))], axis=1)
    if padding_idx is not None:
        table[padding_idx, :] = 0
    return jnp.asarray(table, jnp.float32)


def _row128(v, width=128):
    v = jnp.asarray(v, jnp.float32).reshape(1, -1)
    return jnp.pad(v, ((0, 0), (0, width - v.shape[1])))


def pack_params(params, cfg):
    """Pack all decoder weights into 4 lane-dense VMEM slabs (done once, outside jit).
    Attention scale folded into Q weights/biases; embed_scale folded into the token table;
    lm_head padded to 128 output lanes."""
    D = cfg.d_model
    F = cfg.decoder_ffn_dim
    V = cfg.vocab_size
    Dh = D // cfg.decoder_attention_heads
    scale = Dh ** -0.5
    prow = _pos_rows(cfg)
    v_pad = max(128, int(-(-V // 128) * 128))
    layers = params["layers"]

    # slab A: per-layer D-row weights, columns [Wq_sa|Wk_sa|Wv_sa|Wo_sa|Wq_ca|Wk_ca|Wv_ca|Wo_ca|Wfc1]
    def layer_a(p):
        return jnp.concatenate([
            p["self_attn"]["q"]["w"] * scale, p["self_attn"]["k"]["w"],
            p["self_attn"]["v"]["w"], p["self_attn"]["o"]["w"],
            p["cross_attn"]["q"]["w"] * scale, p["cross_attn"]["k"]["w"],
            p["cross_attn"]["v"]["w"], p["cross_attn"]["o"]["w"],
            p["fc1"]["w"],
        ], axis=1).astype(jnp.float32)                                  # (D, 8D + F)

    # slab C: per-layer bias / LN rows, each padded to 128 lanes
    def layer_c(p):
        rows = [p["self_attn_ln"]["g"], p["self_attn_ln"]["b"],
                p["self_attn"]["q"]["b"] * scale, p["self_attn"]["k"]["b"],
                p["self_attn"]["v"]["b"], p["self_attn"]["o"]["b"],
                p["cross_attn_ln"]["g"], p["cross_attn_ln"]["b"],
                p["cross_attn"]["q"]["b"] * scale, p["cross_attn"]["k"]["b"],
                p["cross_attn"]["v"]["b"], p["cross_attn"]["o"]["b"],
                p["final_ln"]["g"], p["final_ln"]["b"],
                p["fc1"]["b"], p["fc2"]["b"]]
        return jnp.concatenate([_row128(r) for r in rows], axis=0)      # (16, 128)

    wA = jnp.stack([layer_a(p) for p in layers], axis=0)
    wB = jnp.stack([p["fc2"]["w"].astype(jnp.float32) for p in layers], axis=0)
    bC = jnp.stack([layer_c(p) for p in layers], axis=0)

    # globals slab: [lm_head (D rows) | embed*sqrt(D) (V rows) | pos table (prow rows) | final LN g,b]
    embed_scale = math.sqrt(D) if cfg.scale_embedding else 1.0
    pos_tab = params["pos_table"]
    g_rows = [
        jnp.pad(params["lm_head_w"].astype(jnp.float32), ((0, 0), (0, v_pad - V))),
        jnp.pad(params["embed_tokens"].astype(jnp.float32) * embed_scale,
                ((0, 0), (0, v_pad - D))),
        jnp.pad(pos_tab, ((0, prow - pos_tab.shape[0]), (0, v_pad - D))),
        _row128(params["final_ln"]["g"], v_pad),
        _row128(params["final_ln"]["b"], v_pad),
    ]
    G = jnp.concatenate(g_rows, axis=0)
    total_rows = int(-(-G.shape[0] // 8) * 8)
    G = jnp.pad(G, ((0, total_rows - G.shape[0]), (0, 0)))
    return {"wA": wA, "wB": wB, "bC": bC, "G": G}


def decoder_forward(packed, encoder_hidden_states, labels, cfg,
                    attention_mask=None, encoder_attention_mask=None):
    """Matches Decoder.forward(x, labels, ...) -> lm_logits, with one fused Pallas kernel."""
    B, T = labels.shape
    D = cfg.d_model
    V = cfg.vocab_size
    S = encoder_hidden_states.shape[1]
    S_pad = int(-(-S // 8) * 8)                        # sublane-align encoder length
    V_pad = max(128, int(-(-V // 128) * 128))          # lane-dense lm_head output

    # tiny integer preamble (single small XLA fusion); the embedding gathers happen in-kernel
    ids = shift_tokens_right(labels, cfg.pad_token_id, cfg.decoder_start_token_id)
    pos_ids = create_position_ids_from_input_ids(ids, cfg.pad_token_id)
    idpos = jnp.stack([ids, pos_ids], axis=-1).reshape(B * T, 2).astype(jnp.int32)

    enc = jnp.pad(encoder_hidden_states.astype(jnp.float32),
                  ((0, 0), (0, S_pad - S), (0, 0))).reshape(B * S_pad, D)

    operands = [idpos, enc]
    if attention_mask is not None:
        operands.append(attention_mask.astype(jnp.float32))
    if encoder_attention_mask is not None:
        operands.append(jnp.pad(encoder_attention_mask.astype(jnp.float32),
                                ((0, 0), (0, S_pad - S))))
    operands += [packed["wA"], packed["wB"], packed["bC"], packed["G"]]

    kernel = functools.partial(
        _decoder_kernel,
        num_layers=cfg.decoder_layers,
        num_heads=cfg.decoder_attention_heads,
        batch=B, tgt_len=T, src_len=S_pad, src_valid=S,
        eps=cfg.layer_norm_eps, d_model=D, ffn_dim=cfg.decoder_ffn_dim,
        vocab_rows=V, pos_rows=_pos_rows(cfg),
        has_self_mask=attention_mask is not None,
        has_cross_mask=encoder_attention_mask is not None)

    # Single gridless pallas_call: full arrays as VMEM-resident blocks (total < 1 MiB, well
    # inside v7x's 64 MiB physical VMEM as well as v5e/v6e). Add a parallel batch grid axis
    # only when batch grows enough to feed a second v7x TensorCore.
    logits_pad = pl.pallas_call(
        kernel,
        out_shape=jax.ShapeDtypeStruct((B * T, V_pad), jnp.float32),
    )(*operands)

    return logits_pad[:, :V].reshape(B, T, V)


# ----------------------- deterministic parameter init -----------------------
def init_params(key, cfg):
    D, F, V, L = cfg.d_model, cfg.decoder_ffn_dim, cfg.vocab_size, cfg.decoder_layers
    keys = iter(jax.random.split(key, 256))

    def dense(din, dout):
        return {"w": jax.random.normal(next(keys), (din, dout), jnp.float32) * 0.02,
                "b": jnp.zeros((dout,), jnp.float32)}

    def attn():
        return {"q": dense(D, D), "k": dense(D, D), "v": dense(D, D), "o": dense(D, D)}

    def ln():
        return {"g": jnp.ones((D,), jnp.float32), "b": jnp.zeros((D,), jnp.float32)}

    layers = []
    for _ in range(L):
        layers.append({
            "self_attn": attn(), "self_attn_ln": ln(),
            "cross_attn": attn(), "cross_attn_ln": ln(),
            "fc1": dense(D, F), "fc2": dense(F, D), "final_ln": ln(),
        })

    embed = jax.random.normal(next(keys), (V, D), jnp.float32) * 0.02
    embed = embed.at[cfg.pad_token_id].set(0.0)  # nn.Embedding padding_idx row

    return {
        "embed_tokens": embed,
        "pos_table": sinusoidal_embedding_table(cfg.max_target_positions + 2, D,
                                                cfg.pad_token_id),
        "layers": layers,
        "final_ln": ln(),
        "lm_head_w": jax.random.normal(next(keys), (D, V), jnp.float32) * 0.02,
    }


# TODO(synk): `generate()` (host-side greedy autoregressive loop with early eos exit) is
# control flow around this same forward; only the forward pass is kernelized here.

if __name__ == "__main__":
    cfg = DecoderConfig()
    key = jax.random.PRNGKey(0)
    k_params, k_x, k_labels = jax.random.split(key, 3)

    B, T_tgt, S_enc = 2, 8, 12
    params = init_params(k_params, cfg)
    packed = pack_params(params, cfg)                       # one-time packing, outside jit

    x = jax.random.normal(k_x, (B, S_enc, cfg.d_model), jnp.float32)   # encoder hidden states
    labels = jax.random.randint(k_labels, (B, T_tgt), 3, cfg.vocab_size, dtype=jnp.int32)

    fwd = jax.jit(functools.partial(decoder_forward, cfg=cfg))
    logits = fwd(packed, x, labels)
    jax.block_until_ready(logits)

    assert logits.shape == (B, T_tgt, cfg.vocab_size)
    assert bool(jnp.all(jnp.isfinite(logits)))
    print("KERNEL_OK")
</pallas_src>

<mosaic_0001>
module attributes {stable_mosaic.version = 11 : i64} {
  func.func @_decoder_kernel(%arg0: memref<16x2xi32, #tpu.memory_space<vmem>>, %arg1: memref<32x32xf32, #tpu.memory_space<vmem>>, %arg2: memref<2x32x320xf32, #tpu.memory_space<vmem>>, %arg3: memref<2x64x32xf32, #tpu.memory_space<vmem>>, %arg4: memref<2x16x128xf32, #tpu.memory_space<vmem>>, %arg5: memref<160x128xf32, #tpu.memory_space<vmem>>, %arg6: memref<16x128xf32, #tpu.memory_space<vmem>>) attributes {dimension_semantics = [], scalar_prefetch = 0 : i64, scratch_operands = 0 : i64, tpu.core_type = #tpu.core_type<tc>} {
    %c0 = arith.constant 0 : index
    %c0_0 = arith.constant 0 : index
    %0 = vector.load %arg0[%c0, %c0_0] : memref<16x2xi32, #tpu.memory_space<vmem>>, vector<16x2xi32>
    %c0_1 = arith.constant 0 : index
    %c0_2 = arith.constant 0 : index
    %1 = vector.load %arg1[%c0_1, %c0_2] : memref<32x32xf32, #tpu.memory_space<vmem>>, vector<32x32xf32>
    %c0_3 = arith.constant 0 : index
    %c0_4 = arith.constant 0 : index
    %c0_5 = arith.constant 0 : index
    %2 = vector.load %arg2[%c0_3, %c0_4, %c0_5] : memref<2x32x320xf32, #tpu.memory_space<vmem>>, vector<2x32x320xf32>
    %c0_6 = arith.constant 0 : index
    %c0_7 = arith.constant 0 : index
    %c0_8 = arith.constant 0 : index
    %3 = vector.load %arg3[%c0_6, %c0_7, %c0_8] : memref<2x64x32xf32, #tpu.memory_space<vmem>>, vector<2x64x32xf32>
    %c0_9 = arith.constant 0 : index
    %c0_10 = arith.constant 0 : index
    %c0_11 = arith.constant 0 : index
    %4 = vector.load %arg4[%c0_9, %c0_10, %c0_11] : memref<2x16x128xf32, #tpu.memory_space<vmem>>, vector<2x16x128xf32>
    %c0_12 = arith.constant 0 : index
    %c0_13 = arith.constant 0 : index
    %5 = vector.load %arg5[%c0_12, %c0_13] : memref<160x128xf32, #tpu.memory_space<vmem>>, vector<160x128xf32>
    %6 = vector.extract_strided_slice %5 {offsets = [0, 0], sizes = [32, 128], strides = [1, 1]} : vector<160x128xf32> to vector<32x128xf32>
    %7 = vector.extract_strided_slice %5 {offsets = [32, 0], sizes = [48, 32], strides = [1, 1]} : vector<160x128xf32> to vector<48x32xf32>
    %8 = vector.extract_strided_slice %5 {offsets = [80, 0], sizes = [72, 32], strides = [1, 1]} : vector<160x128xf32> to vector<72x32xf32>
    %9 = vector.extract_strided_slice %5 {offsets = [152, 0], sizes = [1, 32], strides = [1, 1]} : vector<160x128xf32> to vector<1x32xf32>
    %10 = vector.extract_strided_slice %5 {offsets = [153, 0], sizes = [1, 32], strides = [1, 1]} : vector<160x128xf32> to vector<1x32xf32>
    %11 = vector.extract_strided_slice %0 {offsets = [0, 0], sizes = [16, 1], strides = [1, 1]} : vector<16x2xi32> to vector<16x1xi32>
    %12 = vector.extract_strided_slice %0 {offsets = [0, 1], sizes = [16, 1], strides = [1, 1]} : vector<16x2xi32> to vector<16x1xi32>
    %13 = tpu.iota {dimensions = array<i32: 1>} : vector<16x48xi32>
    %14 = vector.broadcast %11 : vector<16x1xi32> to vector<16x48xi32>
    %15 = arith.cmpi eq, %13, %14 : vector<16x48xi32>
    %16 = arith.extui %15 : vector<16x48xi1> to vector<16x48xi32>
    %17 = arith.sitofp %16 : vector<16x48xi32> to vector<16x48xf32>
    %18 = tpu.iota {dimensions = array<i32: 1>} : vector<16x72xi32>
    %19 = vector.broadcast %12 : vector<16x1xi32> to vector<16x72xi32>
    %20 = arith.cmpi eq, %18, %19 : vector<16x72xi32>
    %21 = arith.extui %20 : vector<16x72xi1> to vector<16x72xi32>
    %22 = arith.sitofp %21 : vector<16x72xi32> to vector<16x72xf32>
    %cst = arith.constant dense<0.000000e+00> : vector<16x32xf32>
    %23 = tpu.matmul %17, %7, %cst {dimension_numbers = #tpu.dot_dimension_numbers<[1], [0], [0], [1], [0, 0, 1, 1], [], []>} : vector<16x48xf32>, vector<48x32xf32>, vector<16x32xf32> -> vector<16x32xf32>
    %cst_14 = arith.constant dense<0.000000e+00> : vector<16x32xf32>
    %24 = tpu.matmul %22, %8, %cst_14 {dimension_numbers = #tpu.dot_dimension_numbers<[1], [0], [0], [1], [0, 0, 1, 1], [], []>} : vector<16x72xf32>, vector<72x32xf32>, vector<16x32xf32> -> vector<16x32xf32>
    %25 = arith.addf %23, %24 : vector<16x32xf32>
    %26 = tpu.iota {dimensions = array<i32: 0>} : vector<8x8xi32>
    %27 = tpu.iota {dimensions = array<i32: 1>} : vector<8x8xi32>
    %28 = arith.cmpi sge, %26, %27 : vector<8x8xi32>
    %cst_15 = arith.constant 0.000000e+00 : f32
    %cst_16 = arith.constant -1.000000e+09 : f32
    %29 = vector.broadcast %cst_15 : f32 to vector<8x8xf32>
    %30 = vector.broadcast %cst_16 : f32 to vector<8x8xf32>
    %31 = arith.select %28, %29, %30 : vector<8x8xi1>, vector<8x8xf32>
    %32 = vector.shape_cast %31 : vector<8x8xf32> to vector<1x8x8xf32>
    %33 = vector.shape_cast %32 : vector<1x8x8xf32> to vector<1x8x8xf32>
    %34 = vector.broadcast %33 : vector<1x8x8xf32> to vector<2x8x8xf32>
    %35 = tpu.concatenate %34, %34, %34, %34 in 0 : vector<2x8x8xf32>, vector<2x8x8xf32>, vector<2x8x8xf32>, vector<2x8x8xf32> -> vector<8x8x8xf32>
    %36 = tpu.iota {dimensions = array<i32: 1>} : vector<1x16xi32>
    %c12_i32 = arith.constant 12 : i32
    %37 = vector.broadcast %c12_i32 : i32 to vector<1x16xi32>
    %38 = arith.cmpi slt, %36, %37 : vector<1x16xi32>
    %cst_17 = arith.constant 0.000000e+00 : f32
    %cst_18 = arith.constant -1.000000e+09 : f32
    %39 = vector.broadcast %cst_17 : f32 to vector<1x16xf32>
    %40 = vector.broadcast %cst_18 : f32 to vector<1x16xf32>
    %41 = arith.select %38, %39, %40 : vector<1x16xi1>, vector<1x16xf32>
    %42 = vector.shape_cast %41 : vector<1x16xf32> to vector<1x16xf32>
    %43 = vector.broadcast %42 : vector<1x16xf32> to vector<2x16xf32>
    %44 = vector.shape_cast %43 : vector<2x16xf32> to vector<2x1x16xf32>
    %45 = vector.shape_cast %44 : vector<2x1x16xf32> to vector<2x1x16xf32>
    %46 = vector.broadcast %45 : vector<2x1x16xf32> to vector<2x8x16xf32>
    %47 = tpu.concatenate %46, %46, %46, %46 in 0 : vector<2x8x16xf32>, vector<2x8x16xf32>, vector<2x8x16xf32>, vector<2x8x16xf32> -> vector<8x8x16xf32>
    %48 = vector.extract_strided_slice %2 {offsets = [0, 0, 0], sizes = [1, 32, 320], strides = [1, 1, 1]} : vector<2x32x320xf32> to vector<1x32x320xf32>
    %49 = vector.shape_cast %48 : vector<1x32x320xf32> to vector<32x320xf32>
    %50 = vector.extract_strided_slice %4 {offsets = [0, 0, 0], sizes = [1, 16, 128], strides = [1, 1, 1]} : vector<2x16x128xf32> to vector<1x16x128xf32>
    %51 = vector.shape_cast %50 : vector<1x16x128xf32> to vector<16x128xf32>
    %52 = vector.extract_strided_slice %51 {offsets = [0, 0], sizes = [1, 32], strides = [1, 1]} : vector<16x128xf32> to vector<1x32xf32>
    %53 = vector.extract_strided_slice %51 {offsets = [1, 0], sizes = [1, 32], strides = [1, 1]} : vector<16x128xf32> to vector<1x32xf32>
    %cst_19 = arith.constant dense<0.000000e+00> : vector<16xf32>
    %54 = vector.multi_reduction <add>, %25, %cst_19 [1] : vector<16x32xf32> to vector<16xf32>
    %55 = vector.shape_cast %54 : vector<16xf32> to vector<16x1xf32>
    %cst_20 = arith.constant 3.200000e+01 : f32
    %56 = vector.broadcast %cst_20 : f32 to vector<16x1xf32>
    %57 = arith.divf %55, %56 : vector<16x1xf32>
    %58 = vector.broadcast %57 : vector<16x1xf32> to vector<16x32xf32>
    %59 = arith.subf %25, %58 : vector<16x32xf32>
    %60 = arith.mulf %59, %59 : vector<16x32xf32>
    %cst_21 = arith.constant dense<0.000000e+00> : vector<16xf32>
    %61 = vector.multi_reduction <add>, %60, %cst_21 [1] : vector<16x32xf32> to vector<16xf32>
    %62 = vector.shape_cast %61 : vector<16xf32> to vector<16x1xf32>
    %cst_22 = arith.constant 3.200000e+01 : f32
    %63 = vector.broadcast %cst_22 : f32 to vector<16x1xf32>
    %64 = arith.divf %62, %63 : vector<16x1xf32>
    %65 = vector.broadcast %57 : vector<16x1xf32> to vector<16x32xf32>
    %66 = arith.subf %25, %65 : vector<16x32xf32>
    %cst_23 = arith.constant 9.99999974E-6 : f32
    %67 = vector.broadcast %cst_23 : f32 to vector<16x1xf32>
    %68 = arith.addf %64, %67 : vector<16x1xf32>
    %69 = math.rsqrt %68 : vector<16x1xf32>
    %70 = vector.broadcast %69 : vector<16x1xf32> to vector<16x32xf32>
    %71 = arith.mulf %66, %70 : vector<16x32xf32>
    %72 = vector.broadcast %52 : vector<1x32xf32> to vector<16x32xf32>
    %73 = arith.mulf %71, %72 : vector<16x32xf32>
    %74 = vector.broadcast %53 : vector<1x32xf32> to vector<16x32xf32>
    %75 = arith.addf %73, %74 : vector<16x32xf32>
    %76 = vector.extract_strided_slice %49 {offsets = [0, 0], sizes = [32, 32], strides = [1, 1]} : vector<32x320xf32> to vector<32x32xf32>
    %77 = vector.extract_strided_slice %49 {offsets = [0, 32], sizes = [32, 32], strides = [1, 1]} : vector<32x320xf32> to vector<32x32xf32>
    %78 = vector.extract_strided_slice %49 {offsets = [0, 64], sizes = [32, 32], strides = [1, 1]} : vector<32x320xf32> to vector<32x32xf32>
    %79 = vector.extract_strided_slice %49 {offsets = [0, 96], sizes = [32, 32], strides = [1, 1]} : vector<32x320xf32> to vector<32x32xf32>
    %80 = vector.extract_strided_slice %51 {offsets = [2, 0], sizes = [1, 32], strides = [1, 1]} : vector<16x128xf32> to vector<1x32xf32>
    %81 = vector.extract_strided_slice %51 {offsets = [3, 0], sizes = [1, 32], strides = [1, 1]} : vector<16x128xf32> to vector<1x32xf32>
    %82 = vector.extract_strided_slice %51 {offsets = [4, 0], sizes = [1, 32], strides = [1, 1]} : vector<16x128xf32> to vector<1x32xf32>
    %83 = vector.extract_strided_slice %51 {offsets = [5, 0], sizes = [1, 32], strides = [1, 1]} : vector<16x128xf32> to vector<1x32xf32>
    %84 = vector.extract_strided_slice %76 {offsets = [0, 0], sizes = [32, 8], strides = [1, 1]} : vector<32x32xf32> to vector<32x8xf32>
    %cst_24 = arith.constant dense<0.000000e+00> : vector<16x8xf32>
    %85 = tpu.matmul %75, %84, %cst_24 {dimension_numbers = #tpu.dot_dimension_numbers<[1], [0], [0], [1], [0, 0, 1, 1], [], []>} : vector<16x32xf32>, vector<32x8xf32>, vector<16x8xf32> -> vector<16x8xf32>
    %86 = vector.extract_strided_slice %80 {offsets = [0, 0], sizes = [1, 8], strides = [1, 1]} : vector<1x32xf32> to vector<1x8xf32>
    %87 = vector.broadcast %86 : vector<1x8xf32> to vector<16x8xf32>
    %88 = arith.addf %85, %87 : vector<16x8xf32>
    %89 = vector.extract_strided_slice %77 {offsets = [0, 0], sizes = [32, 8], strides = [1, 1]} : vector<32x32xf32> to vector<32x8xf32>
    %cst_25 = arith.constant dense<0.000000e+00> : vector<16x8xf32>
    %90 = tpu.matmul %75, %89, %cst_25 {dimension_numbers = #tpu.dot_dimension_numbers<[1], [0], [0], [1], [0, 0, 1, 1], [], []>} : vector<16x32xf32>, vector<32x8xf32>, vector<16x8xf32> -> vector<16x8xf32>
    %91 = vector.extract_strided_slice %81 {offsets = [0, 0], sizes = [1, 8], strides = [1, 1]} : vector<1x32xf32> to vector<1x8xf32>
    %92 = vector.broadcast %91 : vector<1x8xf32> to vector<16x8xf32>
    %93 = arith.addf %90, %92 : vector<16x8xf32>
    %94 = vector.extract_strided_slice %78 {offsets = [0, 0], sizes = [32, 8], strides = [1, 1]} : vector<32x32xf32> to vector<32x8xf32>
    %cst_26 = arith.constant dense<0.000000e+00> : vector<16x8xf32>
    %95 = tpu.matmul %75, %94, %cst_26 {dimension_numbers = #tpu.dot_dimension_numbers<[1], [0], [0], [1], [0, 0, 1, 1], [], []>} : vector<16x32xf32>, vector<32x8xf32>, vector<16x8xf32> -> vector<16x8xf32>
    %96 = vector.extract_strided_slice %82 {offsets = [0, 0], sizes = [1, 8], strides = [1, 1]} : vector<1x32xf32> to vector<1x8xf32>
    %97 = vector.broadcast %96 : vector<1x8xf32> to vector<16x8xf32>
    %98 = arith.addf %95, %97 : vector<16x8xf32>
    %99 = vector.extract_strided_slice %76 {offsets = [0, 8], sizes = [32, 8], strides = [1, 1]} : vector<32x32xf32> to vector<32x8xf32>
    %cst_27 = arith.constant dense<0.000000e+00> : vector<16x8xf32>
    %100 = tpu.matmul %75, %99, %cst_27 {dimension_numbers = #tpu.dot_dimension_numbers<[1], [0], [0], [1], [0, 0, 1, 1], [], []>} : vector<16x32xf32>, vector<32x8xf32>, vector<16x8xf32> -> vector<16x8xf32>
    %101 = vector.extract_strided_slice %80 {offsets = [0, 8], sizes = [1, 8], strides = [1, 1]} : vector<1x32xf32> to vector<1x8xf32>
    %102 = vector.broadcast %101 : vector<1x8xf32> to vector<16x8xf32>
    %103 = arith.addf %100, %102 : vector<16x8xf32>
    %104 = vector.extract_strided_slice %77 {offsets = [0, 8], sizes = [32, 8], strides = [1, 1]} : vector<32x32xf32> to vector<32x8xf32>
    %cst_28 = arith.constant dense<0.000000e+00> : vector<16x8xf32>
    %105 = tpu.matmul %75, %104, %cst_28 {dimension_numbers = #tpu.dot_dimension_numbers<[1], [0], [0], [1], [0, 0, 1, 1], [], []>} : vector<16x32xf32>, vector<32x8xf32>, vector<16x8xf32> -> vector<16x8xf32>
    %106 = vector.extract_strided_slice %81 {offsets = [0, 8], sizes = [1, 8], strides = [1, 1]} : vector<1x32xf32> to vector<1x8xf32>
    %107 = vector.broadcast %106 : vector<1x8xf32> to vector<16x8xf32>
    %108 = arith.addf %105, %107 : vector<16x8xf32>
    %109 = vector.extract_strided_slice %78 {offsets = [0, 8], sizes = [32, 8], strides = [1, 1]} : vector<32x32xf32> to vector<32x8xf32>
    %cst_29 = arith.constant dense<0.000000e+00> : vector<16x8xf32>
    %110 = tpu.matmul %75, %109, %cst_29 {dimension_numbers = #tpu.dot_dimension_numbers<[1], [0], [0], [1], [0, 0, 1, 1], [], []>} : vector<16x32xf32>, vector<32x8xf32>, vector<16x8xf32> -> vector<16x8xf32>
    %111 = vector.extract_strided_slice %82 {offsets = [0, 8], sizes = [1, 8], strides = [1, 1]} : vector<1x32xf32> to vector<1x8xf32>
    %112 = vector.broadcast %111 : vector<1x8xf32> to vector<16x8xf32>
    %113 = arith.addf %110, %112 : vector<16x8xf32>
    %114 = vector.extract_strided_slice %76 {offsets = [0, 16], sizes = [32, 8], strides = [1, 1]} : vector<32x32xf32> to vector<32x8xf32>
    %cst_30 = arith.constant dense<0.000000e+00> : vector<16x8xf32>
    %115 = tpu.matmul %75, %114, %cst_30 {dimension_numbers = #tpu.dot_dimension_numbers<[1], [0], [0], [1], [0, 0, 1, 1], [], []>} : vector<16x32xf32>, vector<32x8xf32>, vector<16x8xf32> -> vector<16x8xf32>
    %116 = vector.extract_strided_slice %80 {offsets = [0, 16], sizes = [1, 8], strides = [1, 1]} : vector<1x32xf32> to vector<1x8xf32>
    %117 = vector.broadcast %116 : vector<1x8xf32> to vector<16x8xf32>
    %118 = arith.addf %115, %117 : vector<16x8xf32>
    %119 = vector.extract_strided_slice %77 {offsets = [0, 16], sizes = [32, 8], strides = [1, 1]} : vector<32x32xf32> to vector<32x8xf32>
    %cst_31 = arith.constant dense<0.000000e+00> : vector<16x8xf32>
    %120 = tpu.matmul %75, %119, %cst_31 {dimension_numbers = #tpu.dot_dimension_numbers<[1], [0], [0], [1], [0, 0, 1, 1], [], []>} : vector<16x32xf32>, vector<32x8xf32>, vector<16x8xf32> -> vector<16x8xf32>
    %121 = vector.extract_strided_slice %81 {offsets = [0, 16], sizes = [1, 8], strides = [1, 1]} : vector<1x32xf32> to vector<1x8xf32>
    %122 = vector.broadcast %121 : vector<1x8xf32> to vector<16x8xf32>
    %123 = arith.addf %120, %122 : vector<16x8xf32>
    %124 = vector.extract_strided_slice %78 {offsets = [0, 16], sizes = [32, 8], strides = [1, 1]} : vector<32x32xf32> to vector<32x8xf32>
    %cst_32 = arith.constant dense<0.000000e+00> : vector<16x8xf32>
    %125 = tpu.matmul %75, %124, %cst_32 {dimension_numbers = #tpu.dot_dimension_numbers<[1], [0], [0], [1], [0, 0, 1, 1], [], []>} : vector<16x32xf32>, vector<32x8xf32>, vector<16x8xf32> -> vector<16x8xf32>
    %126 = vector.extract_strided_slice %82 {offsets = [0, 16], sizes = [1, 8], strides = [1, 1]} : vector<1x32xf32> to vector<1x8xf32>
    %127 = vector.broadcast %126 : vector<1x8xf32> to vector<16x8xf32>
    %128 = arith.addf %125, %127 : vector<16x8xf32>
    %129 = vector.extract_strided_slice %76 {offsets = [0, 24], sizes = [32, 8], strides = [1, 1]} : vector<32x32xf32> to vector<32x8xf32>
    %cst_33 = arith.constant dense<0.000000e+00> : vector<16x8xf32>
    %130 = tpu.matmul %75, %129, %cst_33 {dimension_numbers = #tpu.dot_dimension_numbers<[1], [0], [0], [1], [0, 0, 1, 1], [], []>} : vector<16x32xf32>, vector<32x8xf32>, vector<16x8xf32> -> vector<16x8xf32>
    %131 = vector.extract_strided_slice %80 {offsets = [0, 24], sizes = [1, 8], strides = [1, 1]} : vector<1x32xf32> to vector<1x8xf32>
    %132 = vector.broadcast %131 : vector<1x8xf32> to vector<16x8xf32>
    %133 = arith.addf %130, %132 : vector<16x8xf32>
    %134 = vector.extract_strided_slice %77 {offsets = [0, 24], sizes = [32, 8], strides = [1, 1]} : vector<32x32xf32> to vector<32x8xf32>
    %cst_34 = arith.constant dense<0.000000e+00> : vector<16x8xf32>
    %135 = tpu.matmul %75, %134, %cst_34 {dimension_numbers = #tpu.dot_dimension_numbers<[1], [0], [0], [1], [0, 0, 1, 1], [], []>} : vector<16x32xf32>, vector<32x8xf32>, vector<16x8xf32> -> vector<16x8xf32>
    %136 = vector.extract_strided_slice %81 {offsets = [0, 24], sizes = [1, 8], strides = [1, 1]} : vector<1x32xf32> to vector<1x8xf32>
    %137 = vector.broadcast %136 : vector<1x8xf32> to vector<16x8xf32>
    %138 = arith.addf %135, %137 : vector<16x8xf32>
    %139 = vector.extract_strided_slice %78 {offsets = [0, 24], sizes = [32, 8], strides = [1, 1]} : vector<32x32xf32> to vector<32x8xf32>
    %cst_35 = arith.constant dense<0.000000e+00> : vector<16x8xf32>
    %140 = tpu.matmul %75, %139, %cst_35 {dimension_numbers = #tpu.dot_dimension_numbers<[1], [0], [0], [1], [0, 0, 1, 1], [], []>} : vector<16x32xf32>, vector<32x8xf32>, vector<16x8xf32> -> vector<16x8xf32>
    %141 = vector.extract_strided_slice %82 {offsets = [0, 24], sizes = [1, 8], strides = [1, 1]} : vector<1x32xf32> to vector<1x8xf32>
    %142 = vector.broadcast %141 : vector<1x8xf32> to vector<16x8xf32>
    %143 = arith.addf %140, %142 : vector<16x8xf32>
    %144 = tpu.concatenate %88, %103, %118, %133 in 0 : vector<16x8xf32>, vector<16x8xf32>, vector<16x8xf32>, vector<16x8xf32> -> vector<64x8xf32>
    %145 = vector.shape_cast %144 : vector<64x8xf32> to vector<8x8x8xf32>
    %146 = tpu.concatenate %93, %108, %123, %138 in 0 : vector<16x8xf32>, vector<16x8xf32>, vector<16x8xf32>, vector<16x8xf32> -> vector<64x8xf32>
    %147 = vector.shape_cast %146 : vector<64x8xf32> to vector<8x8x8xf32>
    %148 = tpu.concatenate %98, %113, %128, %143 in 0 : vector<16x8xf32>, vector<16x8xf32>, vector<16x8xf32>, vector<16x8xf32> -> vector<64x8xf32>
    %149 = vector.shape_cast %148 : vector<64x8xf32> to vector<8x8x8xf32>
    "tpu.trace_start"() <{level = 10 : i32, message = "bqd,bkd->bqk"}> : () -> ()
    %cst_36 = arith.constant dense<0.000000e+00> : vector<8x8x8xf32>
    %150 = tpu.matmul %145, %147, %cst_36 {dimension_numbers = #tpu.dot_dimension_numbers<[2], [2], [1], [1], [0, 0, 0, 1, 1, 1], [0], [0]>} : vector<8x8x8xf32>, vector<8x8x8xf32>, vector<8x8x8xf32> -> vector<8x8x8xf32>
    "tpu.trace_stop"() : () -> ()
    %151 = arith.addf %150, %35 : vector<8x8x8xf32>
    %cst_37 = arith.constant dense<0xFF800000> : vector<8x8xf32>
    %152 = vector.multi_reduction <maximumf>, %151, %cst_37 [2] : vector<8x8x8xf32> to vector<8x8xf32>
    %153 = vector.shape_cast %152 : vector<8x8xf32> to vector<8x8x1xf32>
    %154 = vector.broadcast %153 : vector<8x8x1xf32> to vector<8x8x8xf32>
    %155 = arith.subf %151, %154 : vector<8x8x8xf32>
    %156 = math.exp %155 : vector<8x8x8xf32>
    %cst_38 = arith.constant dense<0.000000e+00> : vector<8x8xf32>
    %157 = vector.multi_reduction <add>, %156, %cst_38 [2] : vector<8x8x8xf32> to vector<8x8xf32>
    %158 = vector.shape_cast %157 : vector<8x8xf32> to vector<8x8x1xf32>
    %159 = tpu.reciprocal %158 {approx = true} : vector<8x8x1xf32> -> vector<8x8x1xf32>
    %160 = vector.broadcast %159 : vector<8x8x1xf32> to vector<8x8x8xf32>
    %161 = arith.mulf %156, %160 : vector<8x8x8xf32>
    "tpu.trace_start"() <{level = 10 : i32, message = "bqk,bkd->bqd"}> : () -> ()
    %cst_39 = arith.constant dense<0.000000e+00> : vector<8x8x8xf32>
    %162 = tpu.matmul %161, %149, %cst_39 {dimension_numbers = #tpu.dot_dimension_numbers<[2], [1], [1], [2], [0, 0, 0, 1, 1, 2], [0], [0]>} : vector<8x8x8xf32>, vector<8x8x8xf32>, vector<8x8x8xf32> -> vector<8x8x8xf32>
    "tpu.trace_stop"() : () -> ()
    %163 = vector.shape_cast %162 : vector<8x8x8xf32> to vector<4x16x8xf32>
    %164 = vector.extract_strided_slice %163 {offsets = [0, 0, 0], sizes = [1, 16, 8], strides = [1, 1, 1]} : vector<4x16x8xf32> to vector<1x16x8xf32>
    %165 = vector.shape_cast %164 : vector<1x16x8xf32> to vector<16x8xf32>
    %166 = vector.extract_strided_slice %79 {offsets = [0, 0], sizes = [8, 32], strides = [1, 1]} : vector<32x32xf32> to vector<8x32xf32>
    %cst_40 = arith.constant dense<0.000000e+00> : vector<16x32xf32>
    %167 = tpu.matmul %165, %166, %cst_40 {dimension_numbers = #tpu.dot_dimension_numbers<[1], [0], [0], [1], [0, 0, 1, 1], [], []>} : vector<16x8xf32>, vector<8x32xf32>, vector<16x32xf32> -> vector<16x32xf32>
    %168 = vector.broadcast %83 : vector<1x32xf32> to vector<16x32xf32>
    %169 = arith.addf %168, %167 : vector<16x32xf32>
    %170 = vector.extract_strided_slice %163 {offsets = [1, 0, 0], sizes = [1, 16, 8], strides = [1, 1, 1]} : vector<4x16x8xf32> to vector<1x16x8xf32>
    %171 = vector.shape_cast %170 : vector<1x16x8xf32> to vector<16x8xf32>
    %172 = vector.extract_strided_slice %79 {offsets = [8, 0], sizes = [8, 32], strides = [1, 1]} : vector<32x32xf32> to vector<8x32xf32>
    %cst_41 = arith.constant dense<0.000000e+00> : vector<16x32xf32>
    %173 = tpu.matmul %171, %172, %cst_41 {dimension_numbers = #tpu.dot_dimension_numbers<[1], [0], [0], [1], [0, 0, 1, 1], [], []>} : vector<16x8xf32>, vector<8x32xf32>, vector<16x32xf32> -> vector<16x32xf32>
    %174 = arith.addf %169, %173 : vector<16x32xf32>
    %175 = vector.extract_strided_slice %163 {offsets = [2, 0, 0], sizes = [1, 16, 8], strides = [1, 1, 1]} : vector<4x16x8xf32> to vector<1x16x8xf32>
    %176 = vector.shape_cast %175 : vector<1x16x8xf32> to vector<16x8xf32>
    %177 = vector.extract_strided_slice %79 {offsets = [16, 0], sizes = [8, 32], strides = [1, 1]} : vector<32x32xf32> to vector<8x32xf32>
    %cst_42 = arith.constant dense<0.000000e+00> : vector<16x32xf32>
    %178 = tpu.matmul %176, %177, %cst_42 {dimension_numbers = #tpu.dot_dimension_numbers<[1], [0], [0], [1], [0, 0, 1, 1], [], []>} : vector<16x8xf32>, vector<8x32xf32>, vector<16x32xf32> -> vector<16x32xf32>
    %179 = arith.addf %174, %178 : vector<16x32xf32>
    %180 = vector.extract_strided_slice %163 {offsets = [3, 0, 0], sizes = [1, 16, 8], strides = [1, 1, 1]} : vector<4x16x8xf32> to vector<1x16x8xf32>
    %181 = vector.shape_cast %180 : vector<1x16x8xf32> to vector<16x8xf32>
    %182 = vector.extract_strided_slice %79 {offsets = [24, 0], sizes = [8, 32], strides = [1, 1]} : vector<32x32xf32> to vector<8x32xf32>
    %cst_43 = arith.constant dense<0.000000e+00> : vector<16x32xf32>
    %183 = tpu.matmul %181, %182, %cst_43 {dimension_numbers = #tpu.dot_dimension_numbers<[1], [0], [0], [1], [0, 0, 1, 1], [], []>} : vector<16x8xf32>, vector<8x32xf32>, vector<16x32xf32> -> vector<16x32xf32>
    %184 = arith.addf %179, %183 : vector<16x32xf32>
    %185 = arith.addf %25, %184 : vector<16x32xf32>
    %186 = vector.extract_strided_slice %51 {offsets = [6, 0], sizes = [1, 32], strides = [1, 1]} : vector<16x128xf32> to vector<1x32xf32>
    %187 = vector.extract_strided_slice %51 {offsets = [7, 0], sizes = [1, 32], strides = [1, 1]} : vector<16x128xf32> to vector<1x32xf32>
    %cst_44 = arith.constant dense<0.000000e+00> : vector<16xf32>
    %188 = vector.multi_reduction <add>, %185, %cst_44 [1] : vector<16x32xf32> to vector<16xf32>
    %189 = vector.shape_cast %188 : vector<16xf32> to vector<16x1xf32>
    %cst_45 = arith.constant 3.200000e+01 : f32
    %190 = vector.broadcast %cst_45 : f32 to vector<16x1xf32>
    %191 = arith.divf %189, %190 : vector<16x1xf32>
    %192 = vector.broadcast %191 : vector<16x1xf32> to vector<16x32xf32>
    %193 = arith.subf %185, %192 : vector<16x32xf32>
    %194 = arith.mulf %193, %193 : vector<16x32xf32>
    %cst_46 = arith.constant dense<0.000000e+00> : vector<16xf32>
    %195 = vector.multi_reduction <add>, %194, %cst_46 [1] : vector<16x32xf32> to vector<16xf32>
    %196 = vector.shape_cast %195 : vector<16xf32> to vector<16x1xf32>
    %cst_47 = arith.constant 3.200000e+01 : f32
    %197 = vector.broadcast %cst_47 : f32 to vector<16x1xf32>
    %198 = arith.divf %196, %197 : vector<16x1xf32>
    %199 = vector.broadcast %191 : vector<16x1xf32> to vector<16x32xf32>
    %200 = arith.subf %185, %199 : vector<16x32xf32>
    %cst_48 = arith.constant 9.99999974E-6 : f32
    %201 = vector.broadcast %cst_48 : f32 to vector<16x1xf32>
    %202 = arith.addf %198, %201 : vector<16x1xf32>
    %203 = math.rsqrt %202 : vector<16x1xf32>
    %204 = vector.broadcast %203 : vector<16x1xf32> to vector<16x32xf32>
    %205 = arith.mulf %200, %204 : vector<16x32xf32>
    %206 = vector.broadcast %186 : vector<1x32xf32> to vector<16x32xf32>
    %207 = arith.mulf %205, %206 : vector<16x32xf32>
    %208 = vector.broadcast %187 : vector<1x32xf32> to vector<16x32xf32>
    %209 = arith.addf %207, %208 : vector<16x32xf32>
    %210 = vector.extract_strided_slice %49 {offsets = [0, 128], sizes = [32, 32], strides = [1, 1]} : vector<32x320xf32> to vector<32x32xf32>
    %211 = vector.extract_strided_slice %49 {offsets = [0, 160], sizes = [32, 32], strides = [1, 1]} : vector<32x320xf32> to vector<32x32xf32>
    %212 = vector.extract_strided_slice %49 {offsets = [0, 192], sizes = [32, 32], strides = [1, 1]} : vector<32x320xf32> to vector<32x32xf32>
    %213 = vector.extract_strided_slice %49 {offsets = [0, 224], sizes = [32, 32], strides = [1, 1]} : vector<32x320xf32> to vector<32x32xf32>
    %214 = vector.extract_strided_slice %51 {offsets = [8, 0], sizes = [1, 32], strides = [1, 1]} : vector<16x128xf32> to vector<1x32xf32>
    %215 = vector.extract_strided_slice %51 {offsets = [9, 0], sizes = [1, 32], strides = [1, 1]} : vector<16x128xf32> to vector<1x32xf32>
    %216 = vector.extract_strided_slice %51 {offsets = [10, 0], sizes = [1, 32], strides = [1, 1]} : vector<16x128xf32> to vector<1x32xf32>
    %217 = vector.extract_strided_slice %51 {offsets = [11, 0], sizes = [1, 32], strides = [1, 1]} : vector<16x128xf32> to vector<1x32xf32>
    %218 = vector.extract_strided_slice %210 {offsets = [0, 0], sizes = [32, 8], strides = [1, 1]} : vector<32x32xf32> to vector<32x8xf32>
    %cst_49 = arith.constant dense<0.000000e+00> : vector<16x8xf32>
    %219 = tpu.matmul %209, %218, %cst_49 {dimension_numbers = #tpu.dot_dimension_numbers<[1], [0], [0], [1], [0, 0, 1, 1], [], []>} : vector<16x32xf32>, vector<32x8xf32>, vector<16x8xf32> -> vector<16x8xf32>
    %220 = vector.extract_strided_slice %214 {offsets = [0, 0], sizes = [1, 8], strides = [1, 1]} : vector<1x32xf32> to vector<1x8xf32>
    %221 = vector.broadcast %220 : vector<1x8xf32> to vector<16x8xf32>
    %222 = arith.addf %219, %221 : vector<16x8xf32>
    %223 = vector.extract_strided_slice %211 {offsets = [0, 0], sizes = [32, 8], strides = [1, 1]} : vector<32x32xf32> to vector<32x8xf32>
    %cst_50 = arith.constant dense<0.000000e+00> : vector<32x8xf32>
    %224 = tpu.matmul %1, %223, %cst_50 {dimension_numbers = #tpu.dot_dimension_numbers<[1], [0], [0], [1], [0, 0, 1, 1], [], []>} : vector<32x32xf32>, vector<32x8xf32>, vector<32x8xf32> -> vector<32x8xf32>
    %225 = vector.extract_strided_slice %215 {offsets = [0, 0], sizes = [1, 8], strides = [1, 1]} : vector<1x32xf32> to vector<1x8xf32>
    %226 = vector.broadcast %225 : vector<1x8xf32> to vector<32x8xf32>
    %227 = arith.addf %224, %226 : vector<32x8xf32>
    %228 = vector.extract_strided_slice %212 {offsets = [0, 0], sizes = [32, 8], strides = [1, 1]} : vector<32x32xf32> to vector<32x8xf32>
    %cst_51 = arith.constant dense<0.000000e+00> : vector<32x8xf32>
    %229 = tpu.matmul %1, %228, %cst_51 {dimension_numbers = #tpu.dot_dimension_numbers<[1], [0], [0], [1], [0, 0, 1, 1], [], []>} : vector<32x32xf32>, vector<32x8xf32>, vector<32x8xf32> -> vector<32x8xf32>
    %230 = vector.extract_strided_slice %216 {offsets = [0, 0], sizes = [1, 8], strides = [1, 1]} : vector<1x32xf32> to vector<1x8xf32>
    %231 = vector.broadcast %230 : vector<1x8xf32> to vector<32x8xf32>
    %232 = arith.addf %229, %231 : vector<32x8xf32>
    %233 = vector.extract_strided_slice %210 {offsets = [0, 8], sizes = [32, 8], strides = [1, 1]} : vector<32x32xf32> to vector<32x8xf32>
    %cst_52 = arith.constant dense<0.000000e+00> : vector<16x8xf32>
    %234 = tpu.matmul %209, %233, %cst_52 {dimension_numbers = #tpu.dot_dimension_numbers<[1], [0], [0], [1], [0, 0, 1, 1], [], []>} : vector<16x32xf32>, vector<32x8xf32>, vector<16x8xf32> -> vector<16x8xf32>
    %235 = vector.extract_strided_slice %214 {offsets = [0, 8], sizes = [1, 8], strides = [1, 1]} : vector<1x32xf32> to vector<1x8xf32>
    %236 = vector.broadcast %235 : vector<1x8xf32> to vector<16x8xf32>
    %237 = arith.addf %234, %236 : vector<16x8xf32>
    %238 = vector.extract_strided_slice %211 {offsets = [0, 8], sizes = [32, 8], strides = [1, 1]} : vector<32x32xf32> to vector<32x8xf32>
    %cst_53 = arith.constant dense<0.000000e+00> : vector<32x8xf32>
    %239 = tpu.matmul %1, %238, %cst_53 {dimension_numbers = #tpu.dot_dimension_numbers<[1], [0], [0], [1], [0, 0, 1, 1], [], []>} : vector<32x32xf32>, vector<32x8xf32>, vector<32x8xf32> -> vector<32x8xf32>
    %240 = vector.extract_strided_slice %215 {offsets = [0, 8], sizes = [1, 8], strides = [1, 1]} : vector<1x32xf32> to vector<1x8xf32>
    %241 = vector.broadcast %240 : vector<1x8xf32> to vector<32x8xf32>
    %242 = arith.addf %239, %241 : vector<32x8xf32>
    %243 = vector.extract_strided_slice %212 {offsets = [0, 8], sizes = [32, 8], strides = [1, 1]} : vector<32x32xf32> to vector<32x8xf32>
    %cst_54 = arith.constant dense<0.000000e+00> : vector<32x8xf32>
    %244 = tpu.matmul %1, %243, %cst_54 {dimension_numbers = #tpu.dot_dimension_numbers<[1], [0], [0], [1], [0, 0, 1, 1], [], []>} : vector<32x32xf32>, vector<32x8xf32>, vector<32x8xf32> -> vector<32x8xf32>
    %245 = vector.extract_strided_slice %216 {offsets = [0, 8], sizes = [1, 8], strides = [1, 1]} : vector<1x32xf32> to vector<1x8xf32>
    %246 = vector.broadcast %245 : vector<1x8xf32> to vector<32x8xf32>
    %247 = arith.addf %244, %246 : vector<32x8xf32>
    %248 = vector.extract_strided_slice %210 {offsets = [0, 16], sizes = [32, 8], strides = [1, 1]} : vector<32x32xf32> to vector<32x8xf32>
    %cst_55 = arith.constant dense<0.000000e+00> : vector<16x8xf32>
    %249 = tpu.matmul %209, %248, %cst_55 {dimension_numbers = #tpu.dot_dimension_numbers<[1], [0], [0], [1], [0, 0, 1, 1], [], []>} : vector<16x32xf32>, vector<32x8xf32>, vector<16x8xf32> -> vector<16x8xf32>
    %250 = vector.extract_strided_slice %214 {offsets = [0, 16], sizes = [1, 8], strides = [1, 1]} : vector<1x32xf32> to vector<1x8xf32>
    %251 = vector.broadcast %250 : vector<1x8xf32> to vector<16x8xf32>
    %252 = arith.addf %249, %251 : vector<16x8xf32>
    %253 = vector.extract_strided_slice %211 {offsets = [0, 16], sizes = [32, 8], strides = [1, 1]} : vector<32x32xf32> to vector<32x8xf32>
    %cst_56 = arith.constant dense<0.000000e+00> : vector<32x8xf32>
    %254 = tpu.matmul %1, %253, %cst_56 {dimension_numbers = #tpu.dot_dimension_numbers<[1], [0], [0], [1], [0, 0, 1, 1], [], []>} : vector<32x32xf32>, vector<32x8xf32>, vector<32x8xf32> -> vector<32x8xf32>
    %255 = vector.extract_strided_slice %215 {offsets = [0, 16], sizes = [1, 8], strides = [1, 1]} : vector<1x32xf32> to vector<1x8xf32>
    %256 = vector.broadcast %255 : vector<1x8xf32> to vector<32x8xf32>
    %257 = arith.addf %254, %256 : vector<32x8xf32>
    %258 = vector.extract_strided_slice %212 {offsets = [0, 16], sizes = [32, 8], strides = [1, 1]} : vector<32x32xf32> to vector<32x8xf32>
    %cst_57 = arith.constant dense<0.000000e+00> : vector<32x8xf32>
    %259 = tpu.matmul %1, %258, %cst_57 {dimension_numbers = #tpu.dot_dimension_numbers<[1], [0], [0], [1], [0, 0, 1, 1], [], []>} : vector<32x32xf32>, vector<32x8xf32>, vector<32x8xf32> -> vector<32x8xf32>
    %260 = vector.extract_strided_slice %216 {offsets = [0, 16], sizes = [1, 8], strides = [1, 1]} : vector<1x32xf32> to vector<1x8xf32>
    %261 = vector.broadcast %260 : vector<1x8xf32> to vector<32x8xf32>
    %262 = arith.addf %259, %261 : vector<32x8xf32>
    %263 = vector.extract_strided_slice %210 {offsets = [0, 24], sizes = [32, 8], strides = [1, 1]} : vector<32x32xf32> to vector<32x8xf32>
    %cst_58 = arith.constant dense<0.000000e+00> : vector<16x8xf32>
    %264 = tpu.matmul %209, %263, %cst_58 {dimension_numbers = #tpu.dot_dimension_numbers<[1], [0], [0], [1], [0, 0, 1, 1], [], []>} : vector<16x32xf32>, vector<32x8xf32>, vector<16x8xf32> -> vector<16x8xf32>
    %265 = vector.extract_strided_slice %214 {offsets = [0, 24], sizes = [1, 8], strides = [1, 1]} : vector<1x32xf32> to vector<1x8xf32>
    %266 = vector.broadcast %265 : vector<1x8xf32> to vector<16x8xf32>
    %267 = arith.addf %264, %266 : vector<16x8xf32>
    %268 = vector.extract_strided_slice %211 {offsets = [0, 24], sizes = [32, 8], strides = [1, 1]} : vector<32x32xf32> to vector<32x8xf32>
    %cst_59 = arith.constant dense<0.000000e+00> : vector<32x8xf32>
    %269 = tpu.matmul %1, %268, %cst_59 {dimension_numbers = #tpu.dot_dimension_numbers<[1], [0], [0], [1], [0, 0, 1, 1], [], []>} : vector<32x32xf32>, vector<32x8xf32>, vector<32x8xf32> -> vector<32x8xf32>
    %270 = vector.extract_strided_slice %215 {offsets = [0, 24], sizes = [1, 8], strides = [1, 1]} : vector<1x32xf32> to vector<1x8xf32>
    %271 = vector.broadcast %270 : vector<1x8xf32> to vector<32x8xf32>
    %272 = arith.addf %269, %271 : vector<32x8xf32>
    %273 = vector.extract_strided_slice %212 {offsets = [0, 24], sizes = [32, 8], strides = [1, 1]} : vector<32x32xf32> to vector<32x8xf32>
    %cst_60 = arith.constant dense<0.000000e+00> : vector<32x8xf32>
    %274 = tpu.matmul %1, %273, %cst_60 {dimension_numbers = #tpu.dot_dimension_numbers<[1], [0], [0], [1], [0, 0, 1, 1], [], []>} : vector<32x32xf32>, vector<32x8xf32>, vector<32x8xf32> -> vector<32x8xf32>
    %275 = vector.extract_strided_slice %216 {offsets = [0, 24], sizes = [1, 8], strides = [1, 1]} : vector<1x32xf32> to vector<1x8xf32>
    %276 = vector.broadcast %275 : vector<1x8xf32> to vector<32x8xf32>
    %277 = arith.addf %274, %276 : vector<32x8xf32>
    %278 = tpu.concatenate %222, %237, %252, %267 in 0 : vector<16x8xf32>, vector<16x8xf32>, vector<16x8xf32>, vector<16x8xf32> -> vector<64x8xf32>
    %279 = vector.shape_cast %278 : vector<64x8xf32> to vector<8x8x8xf32>
    %280 = tpu.concatenate %227, %242, %257, %272 in 0 : vector<32x8xf32>, vector<32x8xf32>, vector<32x8xf32>, vector<32x8xf32> -> vector<128x8xf32>
    %281 = vector.shape_cast %280 : vector<128x8xf32> to vector<8x16x8xf32>
    %282 = tpu.concatenate %232, %247, %262, %277 in 0 : vector<32x8xf32>, vector<32x8xf32>, vector<32x8xf32>, vector<32x8xf32> -> vector<128x8xf32>
    %283 = vector.shape_cast %282 : vector<128x8xf32> to vector<8x16x8xf32>
    "tpu.trace_start"() <{level = 10 : i32, message = "bqd,bkd->bqk"}> : () -> ()
    %cst_61 = arith.constant dense<0.000000e+00> : vector<8x8x16xf32>
    %284 = tpu.matmul %279, %281, %cst_61 {dimension_numbers = #tpu.dot_dimension_numbers<[2], [2], [1], [1], [0, 0, 0, 1, 1, 1], [0], [0]>} : vector<8x8x8xf32>, vector<8x16x8xf32>, vector<8x8x16xf32> -> vector<8x8x16xf32>
    "tpu.trace_stop"() : () -> ()
    %285 = arith.addf %284, %47 : vector<8x8x16xf32>
    %cst_62 = arith.constant dense<0xFF800000> : vector<8x8xf32>
    %286 = vector.multi_reduction <maximumf>, %285, %cst_62 [2] : vector<8x8x16xf32> to vector<8x8xf32>
    %287 = vector.shape_cast %286 : vector<8x8xf32> to vector<8x8x1xf32>
    %288 = vector.broadcast %287 : vector<8x8x1xf32> to vector<8x8x16xf32>
    %289 = arith.subf %285, %288 : vector<8x8x16xf32>
    %290 = math.exp %289 : vector<8x8x16xf32>
    %cst_63 = arith.constant dense<0.000000e+00> : vector<8x8xf32>
    %291 = vector.multi_reduction <add>, %290, %cst_63 [2] : vector<8x8x16xf32> to vector<8x8xf32>
    %292 = vector.shape_cast %291 : vector<8x8xf32> to vector<8x8x1xf32>
    %293 = tpu.reciprocal %292 {approx = true} : vector<8x8x1xf32> -> vector<8x8x1xf32>
    %294 = vector.broadcast %293 : vector<8x8x1xf32> to vector<8x8x16xf32>
    %295 = arith.mulf %290, %294 : vector<8x8x16xf32>
    "tpu.trace_start"() <{level = 10 : i32, message = "bqk,bkd->bqd"}> : () -> ()
    %cst_64 = arith.constant dense<0.000000e+00> : vector<8x8x8xf32>
    %296 = tpu.matmul %295, %283, %cst_64 {dimension_numbers = #tpu.dot_dimension_numbers<[2], [1], [1], [2], [0, 0, 0, 1, 1, 2], [0], [0]>} : vector<8x8x16xf32>, vector<8x16x8xf32>, vector<8x8x8xf32> -> vector<8x8x8xf32>
    "tpu.trace_stop"() : () -> ()
    %297 = vector.shape_cast %296 : vector<8x8x8xf32> to vector<4x16x8xf32>
    %298 = vector.extract_strided_slice %297 {offsets = [0, 0, 0], sizes = [1, 16, 8], strides = [1, 1, 1]} : vector<4x16x8xf32> to vector<1x16x8xf32>
    %299 = vector.shape_cast %298 : vector<1x16x8xf32> to vector<16x8xf32>
    %300 = vector.extract_strided_slice %213 {offsets = [0, 0], sizes = [8, 32], strides = [1, 1]} : vector<32x32xf32> to vector<8x32xf32>
    %cst_65 = arith.constant dense<0.000000e+00> : vector<16x32xf32>
    %301 = tpu.matmul %299, %300, %cst_65 {dimension_numbers = #tpu.dot_dimension_numbers<[1], [0], [0], [1], [0, 0, 1, 1], [], []>} : vector<16x8xf32>, vector<8x32xf32>, vector<16x32xf32> -> vector<16x32xf32>
    %302 = vector.broadcast %217 : vector<1x32xf32> to vector<16x32xf32>
    %303 = arith.addf %302, %301 : vector<16x32xf32>
    %304 = vector.extract_strided_slice %297 {offsets = [1, 0, 0], sizes = [1, 16, 8], strides = [1, 1, 1]} : vector<4x16x8xf32> to vector<1x16x8xf32>
    %305 = vector.shape_cast %304 : vector<1x16x8xf32> to vector<16x8xf32>
    %306 = vector.extract_strided_slice %213 {offsets = [8, 0], sizes = [8, 32], strides = [1, 1]} : vector<32x32xf32> to vector<8x32xf32>
    %cst_66 = arith.constant dense<0.000000e+00> : vector<16x32xf32>
    %307 = tpu.matmul %305, %306, %cst_66 {dimension_numbers = #tpu.dot_dimension_numbers<[1], [0], [0], [1], [0, 0, 1, 1], [], []>} : vector<16x8xf32>, vector<8x32xf32>, vector<16x32xf32> -> vector<16x32xf32>
    %308 = arith.addf %303, %307 : vector<16x32xf32>
    %309 = vector.extract_strided_slice %297 {offsets = [2, 0, 0], sizes = [1, 16, 8], strides = [1, 1, 1]} : vector<4x16x8xf32> to vector<1x16x8xf32>
    %310 = vector.shape_cast %309 : vector<1x16x8xf32> to vector<16x8xf32>
    %311 = vector.extract_strided_slice %213 {offsets = [16, 0], sizes = [8, 32], strides = [1, 1]} : vector<32x32xf32> to vector<8x32xf32>
    %cst_67 = arith.constant dense<0.000000e+00> : vector<16x32xf32>
    %312 = tpu.matmul %310, %311, %cst_67 {dimension_numbers = #tpu.dot_dimension_numbers<[1], [0], [0], [1], [0, 0, 1, 1], [], []>} : vector<16x8xf32>, vector<8x32xf32>, vector<16x32xf32> -> vector<16x32xf32>
    %313 = arith.addf %308, %312 : vector<16x32xf32>
    %314 = vector.extract_strided_slice %297 {offsets = [3, 0, 0], sizes = [1, 16, 8], strides = [1, 1, 1]} : vector<4x16x8xf32> to vector<1x16x8xf32>
    %315 = vector.shape_cast %314 : vector<1x16x8xf32> to vector<16x8xf32>
    %316 = vector.extract_strided_slice %213 {offsets = [24, 0], sizes = [8, 32], strides = [1, 1]} : vector<32x32xf32> to vector<8x32xf32>
    %cst_68 = arith.constant dense<0.000000e+00> : vector<16x32xf32>
    %317 = tpu.matmul %315, %316, %cst_68 {dimension_numbers = #tpu.dot_dimension_numbers<[1], [0], [0], [1], [0, 0, 1, 1], [], []>} : vector<16x8xf32>, vector<8x32xf32>, vector<16x32xf32> -> vector<16x32xf32>
    %318 = arith.addf %313, %317 : vector<16x32xf32>
    %319 = arith.addf %185, %318 : vector<16x32xf32>
    %320 = vector.extract_strided_slice %51 {offsets = [12, 0], sizes = [1, 32], strides = [1, 1]} : vector<16x128xf32> to vector<1x32xf32>
    %321 = vector.extract_strided_slice %51 {offsets = [13, 0], sizes = [1, 32], strides = [1, 1]} : vector<16x128xf32> to vector<1x32xf32>
    %cst_69 = arith.constant dense<0.000000e+00> : vector<16xf32>
    %322 = vector.multi_reduction <add>, %319, %cst_69 [1] : vector<16x32xf32> to vector<16xf32>
    %323 = vector.shape_cast %322 : vector<16xf32> to vector<16x1xf32>
    %cst_70 = arith.constant 3.200000e+01 : f32
    %324 = vector.broadcast %cst_70 : f32 to vector<16x1xf32>
    %325 = arith.divf %323, %324 : vector<16x1xf32>
    %326 = vector.broadcast %325 : vector<16x1xf32> to vector<16x32xf32>
    %327 = arith.subf %319, %326 : vector<16x32xf32>
    %328 = arith.mulf %327, %327 : vector<16x32xf32>
    %cst_71 = arith.constant dense<0.000000e+00> : vector<16xf32>
    %329 = vector.multi_reduction <add>, %328, %cst_71 [1] : vector<16x32xf32> to vector<16xf32>
    %330 = vector.shape_cast %329 : vector<16xf32> to vector<16x1xf32>
    %cst_72 = arith.constant 3.200000e+01 : f32
    %331 = vector.broadcast %cst_72 : f32 to vector<16x1xf32>
    %332 = arith.divf %330, %331 : vector<16x1xf32>
    %333 = vector.broadcast %325 : vector<16x1xf32> to vector<16x32xf32>
    %334 = arith.subf %319, %333 : vector<16x32xf32>
    %cst_73 = arith.constant 9.99999974E-6 : f32
    %335 = vector.broadcast %cst_73 : f32 to vector<16x1xf32>
    %336 = arith.addf %332, %335 : vector<16x1xf32>
    %337 = math.rsqrt %336 : vector<16x1xf32>
    %338 = vector.broadcast %337 : vector<16x1xf32> to vector<16x32xf32>
    %339 = arith.mulf %334, %338 : vector<16x32xf32>
    %340 = vector.broadcast %320 : vector<1x32xf32> to vector<16x32xf32>
    %341 = arith.mulf %339, %340 : vector<16x32xf32>
    %342 = vector.broadcast %321 : vector<1x32xf32> to vector<16x32xf32>
    %343 = arith.addf %341, %342 : vector<16x32xf32>
    %344 = vector.extract_strided_slice %49 {offsets = [0, 256], sizes = [32, 64], strides = [1, 1]} : vector<32x320xf32> to vector<32x64xf32>
    %cst_74 = arith.constant dense<0.000000e+00> : vector<16x64xf32>
    %345 = tpu.matmul %343, %344, %cst_74 {dimension_numbers = #tpu.dot_dimension_numbers<[1], [0], [0], [1], [0, 0, 1, 1], [], []>} : vector<16x32xf32>, vector<32x64xf32>, vector<16x64xf32> -> vector<16x64xf32>
    %346 = vector.extract_strided_slice %51 {offsets = [14, 0], sizes = [1, 64], strides = [1, 1]} : vector<16x128xf32> to vector<1x64xf32>
    %347 = vector.broadcast %346 : vector<1x64xf32> to vector<16x64xf32>
    %348 = arith.addf %345, %347 : vector<16x64xf32>
    %cst_75 = arith.constant 0.000000e+00 : f32
    %349 = vector.broadcast %cst_75 : f32 to vector<16x64xf32>
    %350 = arith.maximumf %348, %349 : vector<16x64xf32>
    %351 = vector.extract_strided_slice %3 {offsets = [0, 0, 0], sizes = [1, 64, 32], strides = [1, 1, 1]} : vector<2x64x32xf32> to vector<1x64x32xf32>
    %352 = vector.shape_cast %351 : vector<1x64x32xf32> to vector<64x32xf32>
    %cst_76 = arith.constant dense<0.000000e+00> : vector<16x32xf32>
    %353 = tpu.matmul %350, %352, %cst_76 {dimension_numbers = #tpu.dot_dimension_numbers<[1], [0], [0], [1], [0, 0, 1, 1], [], []>} : vector<16x64xf32>, vector<64x32xf32>, vector<16x32xf32> -> vector<16x32xf32>
    %354 = arith.addf %319, %353 : vector<16x32xf32>
    %355 = vector.extract_strided_slice %51 {offsets = [15, 0], sizes = [1, 32], strides = [1, 1]} : vector<16x128xf32> to vector<1x32xf32>
    %356 = vector.broadcast %355 : vector<1x32xf32> to vector<16x32xf32>
    %357 = arith.addf %354, %356 : vector<16x32xf32>
    %358 = vector.extract_strided_slice %2 {offsets = [1, 0, 0], sizes = [1, 32, 320], strides = [1, 1, 1]} : vector<2x32x320xf32> to vector<1x32x320xf32>
    %359 = vector.shape_cast %358 : vector<1x32x320xf32> to vector<32x320xf32>
    %360 = vector.extract_strided_slice %4 {offsets = [1, 0, 0], sizes = [1, 16, 128], strides = [1, 1, 1]} : vector<2x16x128xf32> to vector<1x16x128xf32>
    %361 = vector.shape_cast %360 : vector<1x16x128xf32> to vector<16x128xf32>
    %362 = vector.extract_strided_slice %361 {offsets = [0, 0], sizes = [1, 32], strides = [1, 1]} : vector<16x128xf32> to vector<1x32xf32>
    %363 = vector.extract_strided_slice %361 {offsets = [1, 0], sizes = [1, 32], strides = [1, 1]} : vector<16x128xf32> to vector<1x32xf32>
    %cst_77 = arith.constant dense<0.000000e+00> : vector<16xf32>
    %364 = vector.multi_reduction <add>, %357, %cst_77 [1] : vector<16x32xf32> to vector<16xf32>
    %365 = vector.shape_cast %364 : vector<16xf32> to vector<16x1xf32>
    %cst_78 = arith.constant 3.200000e+01 : f32
    %366 = vector.broadcast %cst_78 : f32 to vector<16x1xf32>
    %367 = arith.divf %365, %366 : vector<16x1xf32>
    %368 = vector.broadcast %367 : vector<16x1xf32> to vector<16x32xf32>
    %369 = arith.subf %357, %368 : vector<16x32xf32>
    %370 = arith.mulf %369, %369 : vector<16x32xf32>
    %cst_79 = arith.constant dense<0.000000e+00> : vector<16xf32>
    %371 = vector.multi_reduction <add>, %370, %cst_79 [1] : vector<16x32xf32> to vector<16xf32>
    %372 = vector.shape_cast %371 : vector<16xf32> to vector<16x1xf32>
    %cst_80 = arith.constant 3.200000e+01 : f32
    %373 = vector.broadcast %cst_80 : f32 to vector<16x1xf32>
    %374 = arith.divf %372, %373 : vector<16x1xf32>
    %375 = vector.broadcast %367 : vector<16x1xf32> to vector<16x32xf32>
    %376 = arith.subf %357, %375 : vector<16x32xf32>
    %cst_81 = arith.constant 9.99999974E-6 : f32
    %377 = vector.broadcast %cst_81 : f32 to vector<16x1xf32>
    %378 = arith.addf %374, %377 : vector<16x1xf32>
    %379 = math.rsqrt %378 : vector<16x1xf32>
    %380 = vector.broadcast %379 : vector<16x1xf32> to vector<16x32xf32>
    %381 = arith.mulf %376, %380 : vector<16x32xf32>
    %382 = vector.broadcast %362 : vector<1x32xf32> to vector<16x32xf32>
    %383 = arith.mulf %381, %382 : vector<16x32xf32>
    %384 = vector.broadcast %363 : vector<1x32xf32> to vector<16x32xf32>
    %385 = arith.addf %383, %384 : vector<16x32xf32>
    %386 = vector.extract_strided_slice %359 {offsets = [0, 0], sizes = [32, 32], strides = [1, 1]} : vector<32x320xf32> to vector<32x32xf32>
    %387 = vector.extract_strided_slice %359 {offsets = [0, 32], sizes = [32, 32], strides = [1, 1]} : vector<32x320xf32> to vector<32x32xf32>
    %388 = vector.extract_strided_slice %359 {offsets = [0, 64], sizes = [32, 32], strides = [1, 1]} : vector<32x320xf32> to vector<32x32xf32>
    %389 = vector.extract_strided_slice %359 {offsets = [0, 96], sizes = [32, 32], strides = [1, 1]} : vector<32x320xf32> to vector<32x32xf32>
    %390 = vector.extract_strided_slice %361 {offsets = [2, 0], sizes = [1, 32], strides = [1, 1]} : vector<16x128xf32> to vector<1x32xf32>
    %391 = vector.extract_strided_slice %361 {offsets = [3, 0], sizes = [1, 32], strides = [1, 1]} : vector<16x128xf32> to vector<1x32xf32>
    %392 = vector.extract_strided_slice %361 {offsets = [4, 0], sizes = [1, 32], strides = [1, 1]} : vector<16x128xf32> to vector<1x32xf32>
    %393 = vector.extract_strided_slice %361 {offsets = [5, 0], sizes = [1, 32], strides = [1, 1]} : vector<16x128xf32> to vector<1x32xf32>
    %394 = vector.extract_strided_slice %386 {offsets = [0, 0], sizes = [32, 8], strides = [1, 1]} : vector<32x32xf32> to vector<32x8xf32>
    %cst_82 = arith.constant dense<0.000000e+00> : vector<16x8xf32>
    %395 = tpu.matmul %385, %394, %cst_82 {dimension_numbers = #tpu.dot_dimension_numbers<[1], [0], [0], [1], [0, 0, 1, 1], [], []>} : vector<16x32xf32>, vector<32x8xf32>, vector<16x8xf32> -> vector<16x8xf32>
    %396 = vector.extract_strided_slice %390 {offsets = [0, 0], sizes = [1, 8], strides = [1, 1]} : vector<1x32xf32> to vector<1x8xf32>
    %397 = vector.broadcast %396 : vector<1x8xf32> to vector<16x8xf32>
    %398 = arith.addf %395, %397 : vector<16x8xf32>
    %399 = vector.extract_strided_slice %387 {offsets = [0, 0], sizes = [32, 8], strides = [1, 1]} : vector<32x32xf32> to vector<32x8xf32>
    %cst_83 = arith.constant dense<0.000000e+00> : vector<16x8xf32>
    %400 = tpu.matmul %385, %399, %cst_83 {dimension_numbers = #tpu.dot_dimension_numbers<[1], [0], [0], [1], [0, 0, 1, 1], [], []>} : vector<16x32xf32>, vector<32x8xf32>, vector<16x8xf32> -> vector<16x8xf32>
    %401 = vector.extract_strided_slice %391 {offsets = [0, 0], sizes = [1, 8], strides = [1, 1]} : vector<1x32xf32> to vector<1x8xf32>
    %402 = vector.broadcast %401 : vector<1x8xf32> to vector<16x8xf32>
    %403 = arith.addf %400, %402 : vector<16x8xf32>
    %404 = vector.extract_strided_slice %388 {offsets = [0, 0], sizes = [32, 8], strides = [1, 1]} : vector<32x32xf32> to vector<32x8xf32>
    %cst_84 = arith.constant dense<0.000000e+00> : vector<16x8xf32>
    %405 = tpu.matmul %385, %404, %cst_84 {dimension_numbers = #tpu.dot_dimension_numbers<[1], [0], [0], [1], [0, 0, 1, 1], [], []>} : vector<16x32xf32>, vector<32x8xf32>, vector<16x8xf32> -> vector<16x8xf32>
    %406 = vector.extract_strided_slice %392 {offsets = [0, 0], sizes = [1, 8], strides = [1, 1]} : vector<1x32xf32> to vector<1x8xf32>
    %407 = vector.broadcast %406 : vector<1x8xf32> to vector<16x8xf32>
    %408 = arith.addf %405, %407 : vector<16x8xf32>
    %409 = vector.extract_strided_slice %386 {offsets = [0, 8], sizes = [32, 8], strides = [1, 1]} : vector<32x32xf32> to vector<32x8xf32>
    %cst_85 = arith.constant dense<0.000000e+00> : vector<16x8xf32>
    %410 = tpu.matmul %385, %409, %cst_85 {dimension_numbers = #tpu.dot_dimension_numbers<[1], [0], [0], [1], [0, 0, 1, 1], [], []>} : vector<16x32xf32>, vector<32x8xf32>, vector<16x8xf32> -> vector<16x8xf32>
    %411 = vector.extract_strided_slice %390 {offsets = [0, 8], sizes = [1, 8], strides = [1, 1]} : vector<1x32xf32> to vector<1x8xf32>
    %412 = vector.broadcast %411 : vector<1x8xf32> to vector<16x8xf32>
    %413 = arith.addf %410, %412 : vector<16x8xf32>
    %414 = vector.extract_strided_slice %387 {offsets = [0, 8], sizes = [32, 8], strides = [1, 1]} : vector<32x32xf32> to vector<32x8xf32>
    %cst_86 = arith.constant dense<0.000000e+00> : vector<16x8xf32>
    %415 = tpu.matmul %385, %414, %cst_86 {dimension_numbers = #tpu.dot_dimension_numbers<[1], [0], [0], [1], [0, 0, 1, 1], [], []>} : vector<16x32xf32>, vector<32x8xf32>, vector<16x8xf32> -> vector<16x8xf32>
    %416 = vector.extract_strided_slice %391 {offsets = [0, 8], sizes = [1, 8], strides = [1, 1]} : vector<1x32xf32> to vector<1x8xf32>
    %417 = vector.broadcast %416 : vector<1x8xf32> to vector<16x8xf32>
    %418 = arith.addf %415, %417 : vector<16x8xf32>
    %419 = vector.extract_strided_slice %388 {offsets = [0, 8], sizes = [32, 8], strides = [1, 1]} : vector<32x32xf32> to vector<32x8xf32>
    %cst_87 = arith.constant dense<0.000000e+00> : vector<16x8xf32>
    %420 = tpu.matmul %385, %419, %cst_87 {dimension_numbers = #tpu.dot_dimension_numbers<[1], [0], [0], [1], [0, 0, 1, 1], [], []>} : vector<16x32xf32>, vector<32x8xf32>, vector<16x8xf32> -> vector<16x8xf32>
    %421 = vector.extract_strided_slice %392 {offsets = [0, 8], sizes = [1, 8], strides = [1, 1]} : vector<1x32xf32> to vector<1x8xf32>
    %422 = vector.broadcast %421 : vector<1x8xf32> to vector<16x8xf32>
    %423 = arith.addf %420, %422 : vector<16x8xf32>
    %424 = vector.extract_strided_slice %386 {offsets = [0, 16], sizes = [32, 8], strides = [1, 1]} : vector<32x32xf32> to vector<32x8xf32>
    %cst_88 = arith.constant dense<0.000000e+00> : vector<16x8xf32>
    %425 = tpu.matmul %385, %424, %cst_88 {dimension_numbers = #tpu.dot_dimension_numbers<[1], [0], [0], [1], [0, 0, 1, 1], [], []>} : vector<16x32xf32>, vector<32x8xf32>, vector<16x8xf32> -> vector<16x8xf32>
    %426 = vector.extract_strided_slice %390 {offsets = [0, 16], sizes = [1, 8], strides = [1, 1]} : vector<1x32xf32> to vector<1x8xf32>
    %427 = vector.broadcast %426 : vector<1x8xf32> to vector<16x8xf32>
    %428 = arith.addf %425, %427 : vector<16x8xf32>
    %429 = vector.extract_strided_slice %387 {offsets = [0, 16], sizes = [32, 8], strides = [1, 1]} : vector<32x32xf32> to vector<32x8xf32>
    %cst_89 = arith.constant dense<0.000000e+00> : vector<16x8xf32>
    %430 = tpu.matmul %385, %429, %cst_89 {dimension_numbers = #tpu.dot_dimension_numbers<[1], [0], [0], [1], [0, 0, 1, 1], [], []>} : vector<16x32xf32>, vector<32x8xf32>, vector<16x8xf32> -> vector<16x8xf32>
    %431 = vector.extract_strided_slice %391 {offsets = [0, 16], sizes = [1, 8], strides = [1, 1]} : vector<1x32xf32> to vector<1x8xf32>
    %432 = vector.broadcast %431 : vector<1x8xf32> to vector<16x8xf32>
    %433 = arith.addf %430, %432 : vector<16x8xf32>
    %434 = vector.extract_strided_slice %388 {offsets = [0, 16], sizes = [32, 8], strides = [1, 1]} : vector<32x32xf32> to vector<32x8xf32>
    %cst_90 = arith.constant dense<0.000000e+00> : vector<16x8xf32>
    %435 = tpu.matmul %385, %434, %cst_90 {dimension_numbers = #tpu.dot_dimension_numbers<[1], [0], [0], [1], [0, 0, 1, 1], [], []>} : vector<16x32xf32>, vector<32x8xf32>, vector<16x8xf32> -> vector<16x8xf32>
    %436 = vector.extract_strided_slice %392 {offsets = [0, 16], sizes = [1, 8], strides = [1, 1]} : vector<1x32xf32> to vector<1x8xf32>
    %437 = vector.broadcast %436 : vector<1x8xf32> to vector<16x8xf32>
    %438 = arith.addf %435, %437 : vector<16x8xf32>
    %439 = vector.extract_strided_slice %386 {offsets = [0, 24], sizes = [32, 8], strides = [1, 1]} : vector<32x32xf32> to vector<32x8xf32>
    %cst_91 = arith.constant dense<0.000000e+00> : vector<16x8xf32>
    %440 = tpu.matmul %385, %439, %cst_91 {dimension_numbers = #tpu.dot_dimension_numbers<[1], [0], [0], [1], [0, 0, 1, 1], [], []>} : vector<16x32xf32>, vector<32x8xf32>, vector<16x8xf32> -> vector<16x8xf32>
    %441 = vector.extract_strided_slice %390 {offsets = [0, 24], sizes = [1, 8], strides = [1, 1]} : vector<1x32xf32> to vector<1x8xf32>
    %442 = vector.broadcast %441 : vector<1x8xf32> to vector<16x8xf32>
    %443 = arith.addf %440, %442 : vector<16x8xf32>
    %444 = vector.extract_strided_slice %387 {offsets = [0, 24], sizes = [32, 8], strides = [1, 1]} : vector<32x32xf32> to vector<32x8xf32>
    %cst_92 = arith.constant dense<0.000000e+00> : vector<16x8xf32>
    %445 = tpu.matmul %385, %444, %cst_92 {dimension_numbers = #tpu.dot_dimension_numbers<[1], [0], [0], [1], [0, 0, 1, 1], [], []>} : vector<16x32xf32>, vector<32x8xf32>, vector<16x8xf32> -> vector<16x8xf32>
    %446 = vector.extract_strided_slice %391 {offsets = [0, 24], sizes = [1, 8], strides = [1, 1]} : vector<1x32xf32> to vector<1x8xf32>
    %447 = vector.broadcast %446 : vector<1x8xf32> to vector<16x8xf32>
    %448 = arith.addf %445, %447 : vector<16x8xf32>
    %449 = vector.extract_strided_slice %388 {offsets = [0, 24], sizes = [32, 8], strides = [1, 1]} : vector<32x32xf32> to vector<32x8xf32>
    %cst_93 = arith.constant dense<0.000000e+00> : vector<16x8xf32>
    %450 = tpu.matmul %385, %449, %cst_93 {dimension_numbers = #tpu.dot_dimension_numbers<[1], [0], [0], [1], [0, 0, 1, 1], [], []>} : vector<16x32xf32>, vector<32x8xf32>, vector<16x8xf32> -> vector<16x8xf32>
    %451 = vector.extract_strided_slice %392 {offsets = [0, 24], sizes = [1, 8], strides = [1, 1]} : vector<1x32xf32> to vector<1x8xf32>
    %452 = vector.broadcast %451 : vector<1x8xf32> to vector<16x8xf32>
    %453 = arith.addf %450, %452 : vector<16x8xf32>
    %454 = tpu.concatenate %398, %413, %428, %443 in 0 : vector<16x8xf32>, vector<16x8xf32>, vector<16x8xf32>, vector<16x8xf32> -> vector<64x8xf32>
    %455 = vector.shape_cast %454 : vector<64x8xf32> to vector<8x8x8xf32>
    %456 = tpu.concatenate %403, %418, %433, %448 in 0 : vector<16x8xf32>, vector<16x8xf32>, vector<16x8xf32>, vector<16x8xf32> -> vector<64x8xf32>
    %457 = vector.shape_cast %456 : vector<64x8xf32> to vector<8x8x8xf32>
    %458 = tpu.concatenate %408, %423, %438, %453 in 0 : vector<16x8xf32>, vector<16x8xf32>, vector<16x8xf32>, vector<16x8xf32> -> vector<64x8xf32>
    %459 = vector.shape_cast %458 : vector<64x8xf32> to vector<8x8x8xf32>
    "tpu.trace_start"() <{level = 10 : i32, message = "bqd,bkd->bqk"}> : () -> ()
    %cst_94 = arith.constant dense<0.000000e+00> : vector<8x8x8xf32>
    %460 = tpu.matmul %455, %457, %cst_94 {dimension_numbers = #tpu.dot_dimension_numbers<[2], [2], [1], [1], [0, 0, 0, 1, 1, 1], [0], [0]>} : vector<8x8x8xf32>, vector<8x8x8xf32>, vector<8x8x8xf32> -> vector<8x8x8xf32>
    "tpu.trace_stop"() : () -> ()
    %461 = arith.addf %460, %35 : vector<8x8x8xf32>
    %cst_95 = arith.constant dense<0xFF800000> : vector<8x8xf32>
    %462 = vector.multi_reduction <maximumf>, %461, %cst_95 [2] : vector<8x8x8xf32> to vector<8x8xf32>
    %463 = vector.shape_cast %462 : vector<8x8xf32> to vector<8x8x1xf32>
    %464 = vector.broadcast %463 : vector<8x8x1xf32> to vector<8x8x8xf32>
    %465 = arith.subf %461, %464 : vector<8x8x8xf32>
    %466 = math.exp %465 : vector<8x8x8xf32>
    %cst_96 = arith.constant dense<0.000000e+00> : vector<8x8xf32>
    %467 = vector.multi_reduction <add>, %466, %cst_96 [2] : vector<8x8x8xf32> to vector<8x8xf32>
    %468 = vector.shape_cast %467 : vector<8x8xf32> to vector<8x8x1xf32>
    %469 = tpu.reciprocal %468 {approx = true} : vector<8x8x1xf32> -> vector<8x8x1xf32>
    %470 = vector.broadcast %469 : vector<8x8x1xf32> to vector<8x8x8xf32>
    %471 = arith.mulf %466, %470 : vector<8x8x8xf32>
    "tpu.trace_start"() <{level = 10 : i32, message = "bqk,bkd->bqd"}> : () -> ()
    %cst_97 = arith.constant dense<0.000000e+00> : vector<8x8x8xf32>
    %472 = tpu.matmul %471, %459, %cst_97 {dimension_numbers = #tpu.dot_dimension_numbers<[2], [1], [1], [2], [0, 0, 0, 1, 1, 2], [0], [0]>} : vector<8x8x8xf32>, vector<8x8x8xf32>, vector<8x8x8xf32> -> vector<8x8x8xf32>
    "tpu.trace_stop"() : () -> ()
    %473 = vector.shape_cast %472 : vector<8x8x8xf32> to vector<4x16x8xf32>
    %474 = vector.extract_strided_slice %473 {offsets = [0, 0, 0], sizes = [1, 16, 8], strides = [1, 1, 1]} : vector<4x16x8xf32> to vector<1x16x8xf32>
    %475 = vector.shape_cast %474 : vector<1x16x8xf32> to vector<16x8xf32>
    %476 = vector.extract_strided_slice %389 {offsets = [0, 0], sizes = [8, 32], strides = [1, 1]} : vector<32x32xf32> to vector<8x32xf32>
    %cst_98 = arith.constant dense<0.000000e+00> : vector<16x32xf32>
    %477 = tpu.matmul %475, %476, %cst_98 {dimension_numbers = #tpu.dot_dimension_numbers<[1], [0], [0], [1], [0, 0, 1, 1], [], []>} : vector<16x8xf32>, vector<8x32xf32>, vector<16x32xf32> -> vector<16x32xf32>
    %478 = vector.broadcast %393 : vector<1x32xf32> to vector<16x32xf32>
    %479 = arith.addf %478, %477 : vector<16x32xf32>
    %480 = vector.extract_strided_slice %473 {offsets = [1, 0, 0], sizes = [1, 16, 8], strides = [1, 1, 1]} : vector<4x16x8xf32> to vector<1x16x8xf32>
    %481 = vector.shape_cast %480 : vector<1x16x8xf32> to vector<16x8xf32>
    %482 = vector.extract_strided_slice %389 {offsets = [8, 0], sizes = [8, 32], strides = [1, 1]} : vector<32x32xf32> to vector<8x32xf32>
    %cst_99 = arith.constant dense<0.000000e+00> : vector<16x32xf32>
    %483 = tpu.matmul %481, %482, %cst_99 {dimension_numbers = #tpu.dot_dimension_numbers<[1], [0], [0], [1], [0, 0, 1, 1], [], []>} : vector<16x8xf32>, vector<8x32xf32>, vector<16x32xf32> -> vector<16x32xf32>
    %484 = arith.addf %479, %483 : vector<16x32xf32>
    %485 = vector.extract_strided_slice %473 {offsets = [2, 0, 0], sizes = [1, 16, 8], strides = [1, 1, 1]} : vector<4x16x8xf32> to vector<1x16x8xf32>
    %486 = vector.shape_cast %485 : vector<1x16x8xf32> to vector<16x8xf32>
    %487 = vector.extract_strided_slice %389 {offsets = [16, 0], sizes = [8, 32], strides = [1, 1]} : vector<32x32xf32> to vector<8x32xf32>
    %cst_100 = arith.constant dense<0.000000e+00> : vector<16x32xf32>
    %488 = tpu.matmul %486, %487, %cst_100 {dimension_numbers = #tpu.dot_dimension_numbers<[1], [0], [0], [1], [0, 0, 1, 1], [], []>} : vector<16x8xf32>, vector<8x32xf32>, vector<16x32xf32> -> vector<16x32xf32>
    %489 = arith.addf %484, %488 : vector<16x32xf32>
    %490 = vector.extract_strided_slice %473 {offsets = [3, 0, 0], sizes = [1, 16, 8], strides = [1, 1, 1]} : vector<4x16x8xf32> to vector<1x16x8xf32>
    %491 = vector.shape_cast %490 : vector<1x16x8xf32> to vector<16x8xf32>
    %492 = vector.extract_strided_slice %389 {offsets = [24, 0], sizes = [8, 32], strides = [1, 1]} : vector<32x32xf32> to vector<8x32xf32>
    %cst_101 = arith.constant dense<0.000000e+00> : vector<16x32xf32>
    %493 = tpu.matmul %491, %492, %cst_101 {dimension_numbers = #tpu.dot_dimension_numbers<[1], [0], [0], [1], [0, 0, 1, 1], [], []>} : vector<16x8xf32>, vector<8x32xf32>, vector<16x32xf32> -> vector<16x32xf32>
    %494 = arith.addf %489, %493 : vector<16x32xf32>
    %495 = arith.addf %357, %494 : vector<16x32xf32>
    %496 = vector.extract_strided_slice %361 {offsets = [6, 0], sizes = [1, 32], strides = [1, 1]} : vector<16x128xf32> to vector<1x32xf32>
    %497 = vector.extract_strided_slice %361 {offsets = [7, 0], sizes = [1, 32], strides = [1, 1]} : vector<16x128xf32> to vector<1x32xf32>
    %cst_102 = arith.constant dense<0.000000e+00> : vector<16xf32>
    %498 = vector.multi_reduction <add>, %495, %cst_102 [1] : vector<16x32xf32> to vector<16xf32>
    %499 = vector.shape_cast %498 : vector<16xf32> to vector<16x1xf32>
    %cst_103 = arith.constant 3.200000e+01 : f32
    %500 = vector.broadcast %cst_103 : f32 to vector<16x1xf32>
    %501 = arith.divf %499, %500 : vector<16x1xf32>
    %502 = vector.broadcast %501 : vector<16x1xf32> to vector<16x32xf32>
    %503 = arith.subf %495, %502 : vector<16x32xf32>
    %504 = arith.mulf %503, %503 : vector<16x32xf32>
    %cst_104 = arith.constant dense<0.000000e+00> : vector<16xf32>
    %505 = vector.multi_reduction <add>, %504, %cst_104 [1] : vector<16x32xf32> to vector<16xf32>
    %506 = vector.shape_cast %505 : vector<16xf32> to vector<16x1xf32>
    %cst_105 = arith.constant 3.200000e+01 : f32
    %507 = vector.broadcast %cst_105 : f32 to vector<16x1xf32>
    %508 = arith.divf %506, %507 : vector<16x1xf32>
    %509 = vector.broadcast %501 : vector<16x1xf32> to vector<16x32xf32>
    %510 = arith.subf %495, %509 : vector<16x32xf32>
    %cst_106 = arith.constant 9.99999974E-6 : f32
    %511 = vector.broadcast %cst_106 : f32 to vector<16x1xf32>
    %512 = arith.addf %508, %511 : vector<16x1xf32>
    %513 = math.rsqrt %512 : vector<16x1xf32>
    %514 = vector.broadcast %513 : vector<16x1xf32> to vector<16x32xf32>
    %515 = arith.mulf %510, %514 : vector<16x32xf32>
    %516 = vector.broadcast %496 : vector<1x32xf32> to vector<16x32xf32>
    %517 = arith.mulf %515, %516 : vector<16x32xf32>
    %518 = vector.broadcast %497 : vector<1x32xf32> to vector<16x32xf32>
    %519 = arith.addf %517, %518 : vector<16x32xf32>
    %520 = vector.extract_strided_slice %359 {offsets = [0, 128], sizes = [32, 32], strides = [1, 1]} : vector<32x320xf32> to vector<32x32xf32>
    %521 = vector.extract_strided_slice %359 {offsets = [0, 160], sizes = [32, 32], strides = [1, 1]} : vector<32x320xf32> to vector<32x32xf32>
    %522 = vector.extract_strided_slice %359 {offsets = [0, 192], sizes = [32, 32], strides = [1, 1]} : vector<32x320xf32> to vector<32x32xf32>
    %523 = vector.extract_strided_slice %359 {offsets = [0, 224], sizes = [32, 32], strides = [1, 1]} : vector<32x320xf32> to vector<32x32xf32>
    %524 = vector.extract_strided_slice %361 {offsets = [8, 0], sizes = [1, 32], strides = [1, 1]} : vector<16x128xf32> to vector<1x32xf32>
    %525 = vector.extract_strided_slice %361 {offsets = [9, 0], sizes = [1, 32], strides = [1, 1]} : vector<16x128xf32> to vector<1x32xf32>
    %526 = vector.extract_strided_slice %361 {offsets = [10, 0], sizes = [1, 32], strides = [1, 1]} : vector<16x128xf32> to vector<1x32xf32>
    %527 = vector.extract_strided_slice %361 {offsets = [11, 0], sizes = [1, 32], strides = [1, 1]} : vector<16x128xf32> to vector<1x32xf32>
    %528 = vector.extract_strided_slice %520 {offsets = [0, 0], sizes = [32, 8], strides = [1, 1]} : vector<32x32xf32> to vector<32x8xf32>
    %cst_107 = arith.constant dense<0.000000e+00> : vector<16x8xf32>
    %529 = tpu.matmul %519, %528, %cst_107 {dimension_numbers = #tpu.dot_dimension_numbers<[1], [0], [0], [1], [0, 0, 1, 1], [], []>} : vector<16x32xf32>, vector<32x8xf32>, vector<16x8xf32> -> vector<16x8xf32>
    %530 = vector.extract_strided_slice %524 {offsets = [0, 0], sizes = [1, 8], strides = [1, 1]} : vector<1x32xf32> to vector<1x8xf32>
    %531 = vector.broadcast %530 : vector<1x8xf32> to vector<16x8xf32>
    %532 = arith.addf %529, %531 : vector<16x8xf32>
    %533 = vector.extract_strided_slice %521 {offsets = [0, 0], sizes = [32, 8], strides = [1, 1]} : vector<32x32xf32> to vector<32x8xf32>
    %cst_108 = arith.constant dense<0.000000e+00> : vector<32x8xf32>
    %534 = tpu.matmul %1, %533, %cst_108 {dimension_numbers = #tpu.dot_dimension_numbers<[1], [0], [0], [1], [0, 0, 1, 1], [], []>} : vector<32x32xf32>, vector<32x8xf32>, vector<32x8xf32> -> vector<32x8xf32>
    %535 = vector.extract_strided_slice %525 {offsets = [0, 0], sizes = [1, 8], strides = [1, 1]} : vector<1x32xf32> to vector<1x8xf32>
    %536 = vector.broadcast %535 : vector<1x8xf32> to vector<32x8xf32>
    %537 = arith.addf %534, %536 : vector<32x8xf32>
    %538 = vector.extract_strided_slice %522 {offsets = [0, 0], sizes = [32, 8], strides = [1, 1]} : vector<32x32xf32> to vector<32x8xf32>
    %cst_109 = arith.constant dense<0.000000e+00> : vector<32x8xf32>
    %539 = tpu.matmul %1, %538, %cst_109 {dimension_numbers = #tpu.dot_dimension_numbers<[1], [0], [0], [1], [0, 0, 1, 1], [], []>} : vector<32x32xf32>, vector<32x8xf32>, vector<32x8xf32> -> vector<32x8xf32>
    %540 = vector.extract_strided_slice %526 {offsets = [0, 0], sizes = [1, 8], strides = [1, 1]} : vector<1x32xf32> to vector<1x8xf32>
    %541 = vector.broadcast %540 : vector<1x8xf32> to vector<32x8xf32>
    %542 = arith.addf %539, %541 : vector<32x8xf32>
    %543 = vector.extract_strided_slice %520 {offsets = [0, 8], sizes = [32, 8], strides = [1, 1]} : vector<32x32xf32> to vector<32x8xf32>
    %cst_110 = arith.constant dense<0.000000e+00> : vector<16x8xf32>
    %544 = tpu.matmul %519, %543, %cst_110 {dimension_numbers = #tpu.dot_dimension_numbers<[1], [0], [0], [1], [0, 0, 1, 1], [], []>} : vector<16x32xf32>, vector<32x8xf32>, vector<16x8xf32> -> vector<16x8xf32>
    %545 = vector.extract_strided_slice %524 {offsets = [0, 8], sizes = [1, 8], strides = [1, 1]} : vector<1x32xf32> to vector<1x8xf32>
    %546 = vector.broadcast %545 : vector<1x8xf32> to vector<16x8xf32>
    %547 = arith.addf %544, %546 : vector<16x8xf32>
    %548 = vector.extract_strided_slice %521 {offsets = [0, 8], sizes = [32, 8], strides = [1, 1]} : vector<32x32xf32> to vector<32x8xf32>
    %cst_111 = arith.constant dense<0.000000e+00> : vector<32x8xf32>
    %549 = tpu.matmul %1, %548, %cst_111 {dimension_numbers = #tpu.dot_dimension_numbers<[1], [0], [0], [1], [0, 0, 1, 1], [], []>} : vector<32x32xf32>, vector<32x8xf32>, vector<32x8xf32> -> vector<32x8xf32>
    %550 = vector.extract_strided_slice %525 {offsets = [0, 8], sizes = [1, 8], strides = [1, 1]} : vector<1x32xf32> to vector<1x8xf32>
    %551 = vector.broadcast %550 : vector<1x8xf32> to vector<32x8xf32>
    %552 = arith.addf %549, %551 : vector<32x8xf32>
    %553 = vector.extract_strided_slice %522 {offsets = [0, 8], sizes = [32, 8], strides = [1, 1]} : vector<32x32xf32> to vector<32x8xf32>
    %cst_112 = arith.constant dense<0.000000e+00> : vector<32x8xf32>
    %554 = tpu.matmul %1, %553, %cst_112 {dimension_numbers = #tpu.dot_dimension_numbers<[1], [0], [0], [1], [0, 0, 1, 1], [], []>} : vector<32x32xf32>, vector<32x8xf32>, vector<32x8xf32> -> vector<32x8xf32>
    %555 = vector.extract_strided_slice %526 {offsets = [0, 8], sizes = [1, 8], strides = [1, 1]} : vector<1x32xf32> to vector<1x8xf32>
    %556 = vector.broadcast %555 : vector<1x8xf32> to vector<32x8xf32>
    %557 = arith.addf %554, %556 : vector<32x8xf32>
    %558 = vector.extract_strided_slice %520 {offsets = [0, 16], sizes = [32, 8], strides = [1, 1]} : vector<32x32xf32> to vector<32x8xf32>
    %cst_113 = arith.constant dense<0.000000e+00> : vector<16x8xf32>
    %559 = tpu.matmul %519, %558, %cst_113 {dimension_numbers = #tpu.dot_dimension_numbers<[1], [0], [0], [1], [0, 0, 1, 1], [], []>} : vector<16x32xf32>, vector<32x8xf32>, vector<16x8xf32> -> vector<16x8xf32>
    %560 = vector.extract_strided_slice %524 {offsets = [0, 16], sizes = [1, 8], strides = [1, 1]} : vector<1x32xf32> to vector<1x8xf32>
    %561 = vector.broadcast %560 : vector<1x8xf32> to vector<16x8xf32>
    %562 = arith.addf %559, %561 : vector<16x8xf32>
    %563 = vector.extract_strided_slice %521 {offsets = [0, 16], sizes = [32, 8], strides = [1, 1]} : vector<32x32xf32> to vector<32x8xf32>
    %cst_114 = arith.constant dense<0.000000e+00> : vector<32x8xf32>
    %564 = tpu.matmul %1, %563, %cst_114 {dimension_numbers = #tpu.dot_dimension_numbers<[1], [0], [0], [1], [0, 0, 1, 1], [], []>} : vector<32x32xf32>, vector<32x8xf32>, vector<32x8xf32> -> vector<32x8xf32>
    %565 = vector.extract_strided_slice %525 {offsets = [0, 16], sizes = [1, 8], strides = [1, 1]} : vector<1x32xf32> to vector<1x8xf32>
    %566 = vector.broadcast %565 : vector<1x8xf32> to vector<32x8xf32>
    %567 = arith.addf %564, %566 : vector<32x8xf32>
    %568 = vector.extract_strided_slice %522 {offsets = [0, 16], sizes = [32, 8], strides = [1, 1]} : vector<32x32xf32> to vector<32x8xf32>
    %cst_115 = arith.constant dense<0.000000e+00> : vector<32x8xf32>
    %569 = tpu.matmul %1, %568, %cst_115 {dimension_numbers = #tpu.dot_dimension_numbers<[1], [0], [0], [1], [0, 0, 1, 1], [], []>} : vector<32x32xf32>, vector<32x8xf32>, vector<32x8xf32> -> vector<32x8xf32>
    %570 = vector.extract_strided_slice %526 {offsets = [0, 16], sizes = [1, 8], strides = [1, 1]} : vector<1x32xf32> to vector<1x8xf32>
    %571 = vector.broadcast %570 : vector<1x8xf32> to vector<32x8xf32>
    %572 = arith.addf %569, %571 : vector<32x8xf32>
    %573 = vector.extract_strided_slice %520 {offsets = [0, 24], sizes = [32, 8], strides = [1, 1]} : vector<32x32xf32> to vector<32x8xf32>
    %cst_116 = arith.constant dense<0.000000e+00> : vector<16x8xf32>
    %574 = tpu.matmul %519, %573, %cst_116 {dimension_numbers = #tpu.dot_dimension_numbers<[1], [0], [0], [1], [0, 0, 1, 1], [], []>} : vector<16x32xf32>, vector<32x8xf32>, vector<16x8xf32> -> vector<16x8xf32>
    %575 = vector.extract_strided_slice %524 {offsets = [0, 24], sizes = [1, 8], strides = [1, 1]} : vector<1x32xf32> to vector<1x8xf32>
    %576 = vector.broadcast %575 : vector<1x8xf32> to vector<16x8xf32>
    %577 = arith.addf %574, %576 : vector<16x8xf32>
    %578 = vector.extract_strided_slice %521 {offsets = [0, 24], sizes = [32, 8], strides = [1, 1]} : vector<32x32xf32> to vector<32x8xf32>
    %cst_117 = arith.constant dense<0.000000e+00> : vector<32x8xf32>
    %579 = tpu.matmul %1, %578, %cst_117 {dimension_numbers = #tpu.dot_dimension_numbers<[1], [0], [0], [1], [0, 0, 1, 1], [], []>} : vector<32x32xf32>, vector<32x8xf32>, vector<32x8xf32> -> vector<32x8xf32>
    %580 = vector.extract_strided_slice %525 {offsets = [0, 24], sizes = [1, 8], strides = [1, 1]} : vector<1x32xf32> to vector<1x8xf32>
    %581 = vector.broadcast %580 : vector<1x8xf32> to vector<32x8xf32>
    %582 = arith.addf %579, %581 : vector<32x8xf32>
    %583 = vector.extract_strided_slice %522 {offsets = [0, 24], sizes = [32, 8], strides = [1, 1]} : vector<32x32xf32> to vector<32x8xf32>
    %cst_118 = arith.constant dense<0.000000e+00> : vector<32x8xf32>
    %584 = tpu.matmul %1, %583, %cst_118 {dimension_numbers = #tpu.dot_dimension_numbers<[1], [0], [0], [1], [0, 0, 1, 1], [], []>} : vector<32x32xf32>, vector<32x8xf32>, vector<32x8xf32> -> vector<32x8xf32>
    %585 = vector.extract_strided_slice %526 {offsets = [0, 24], sizes = [1, 8], strides = [1, 1]} : vector<1x32xf32> to vector<1x8xf32>
    %586 = vector.broadcast %585 : vector<1x8xf32> to vector<32x8xf32>
    %587 = arith.addf %584, %586 : vector<32x8xf32>
    %588 = tpu.concatenate %532, %547, %562, %577 in 0 : vector<16x8xf32>, vector<16x8xf32>, vector<16x8xf32>, vector<16x8xf32> -> vector<64x8xf32>
    %589 = vector.shape_cast %588 : vector<64x8xf32> to vector<8x8x8xf32>
    %590 = tpu.concatenate %537, %552, %567, %582 in 0 : vector<32x8xf32>, vector<32x8xf32>, vector<32x8xf32>, vector<32x8xf32> -> vector<128x8xf32>
    %591 = vector.shape_cast %590 : vector<128x8xf32> to vector<8x16x8xf32>
    %592 = tpu.concatenate %542, %557, %572, %587 in 0 : vector<32x8xf32>, vector<32x8xf32>, vector<32x8xf32>, vector<32x8xf32> -> vector<128x8xf32>
    %593 = vector.shape_cast %592 : vector<128x8xf32> to vector<8x16x8xf32>
    "tpu.trace_start"() <{level = 10 : i32, message = "bqd,bkd->bqk"}> : () -> ()
    %cst_119 = arith.constant dense<0.000000e+00> : vector<8x8x16xf32>
    %594 = tpu.matmul %589, %591, %cst_119 {dimension_numbers = #tpu.dot_dimension_numbers<[2], [2], [1], [1], [0, 0, 0, 1, 1, 1], [0], [0]>} : vector<8x8x8xf32>, vector<8x16x8xf32>, vector<8x8x16xf32> -> vector<8x8x16xf32>
    "tpu.trace_stop"() : () -> ()
    %595 = arith.addf %594, %47 : vector<8x8x16xf32>
    %cst_120 = arith.constant dense<0xFF800000> : vector<8x8xf32>
    %596 = vector.multi_reduction <maximumf>, %595, %cst_120 [2] : vector<8x8x16xf32> to vector<8x8xf32>
    %597 = vector.shape_cast %596 : vector<8x8xf32> to vector<8x8x1xf32>
    %598 = vector.broadcast %597 : vector<8x8x1xf32> to vector<8x8x16xf32>
    %599 = arith.subf %595, %598 : vector<8x8x16xf32>
    %600 = math.exp %599 : vector<8x8x16xf32>
    %cst_121 = arith.constant dense<0.000000e+00> : vector<8x8xf32>
    %601 = vector.multi_reduction <add>, %600, %cst_121 [2] : vector<8x8x16xf32> to vector<8x8xf32>
    %602 = vector.shape_cast %601 : vector<8x8xf32> to vector<8x8x1xf32>
    %603 = tpu.reciprocal %602 {approx = true} : vector<8x8x1xf32> -> vector<8x8x1xf32>
    %604 = vector.broadcast %603 : vector<8x8x1xf32> to vector<8x8x16xf32>
    %605 = arith.mulf %600, %604 : vector<8x8x16xf32>
    "tpu.trace_start"() <{level = 10 : i32, message = "bqk,bkd->bqd"}> : () -> ()
    %cst_122 = arith.constant dense<0.000000e+00> : vector<8x8x8xf32>
    %606 = tpu.matmul %605, %593, %cst_122 {dimension_numbers = #tpu.dot_dimension_numbers<[2], [1], [1], [2], [0, 0, 0, 1, 1, 2], [0], [0]>} : vector<8x8x16xf32>, vector<8x16x8xf32>, vector<8x8x8xf32> -> vector<8x8x8xf32>
    "tpu.trace_stop"() : () -> ()
    %607 = vector.shape_cast %606 : vector<8x8x8xf32> to vector<4x16x8xf32>
    %608 = vector.extract_strided_slice %607 {offsets = [0, 0, 0], sizes = [1, 16, 8], strides = [1, 1, 1]} : vector<4x16x8xf32> to vector<1x16x8xf32>
    %609 = vector.shape_cast %608 : vector<1x16x8xf32> to vector<16x8xf32>
    %610 = vector.extract_strided_slice %523 {offsets = [0, 0], sizes = [8, 32], strides = [1, 1]} : vector<32x32xf32> to vector<8x32xf32>
    %cst_123 = arith.constant dense<0.000000e+00> : vector<16x32xf32>
    %611 = tpu.matmul %609, %610, %cst_123 {dimension_numbers = #tpu.dot_dimension_numbers<[1], [0], [0], [1], [0, 0, 1, 1], [], []>} : vector<16x8xf32>, vector<8x32xf32>, vector<16x32xf32> -> vector<16x32xf32>
    %612 = vector.broadcast %527 : vector<1x32xf32> to vector<16x32xf32>
    %613 = arith.addf %612, %611 : vector<16x32xf32>
    %614 = vector.extract_strided_slice %607 {offsets = [1, 0, 0], sizes = [1, 16, 8], strides = [1, 1, 1]} : vector<4x16x8xf32> to vector<1x16x8xf32>
    %615 = vector.shape_cast %614 : vector<1x16x8xf32> to vector<16x8xf32>
    %616 = vector.extract_strided_slice %523 {offsets = [8, 0], sizes = [8, 32], strides = [1, 1]} : vector<32x32xf32> to vector<8x32xf32>
    %cst_124 = arith.constant dense<0.000000e+00> : vector<16x32xf32>
    %617 = tpu.matmul %615, %616, %cst_124 {dimension_numbers = #tpu.dot_dimension_numbers<[1], [0], [0], [1], [0, 0, 1, 1], [], []>} : vector<16x8xf32>, vector<8x32xf32>, vector<16x32xf32> -> vector<16x32xf32>
    %618 = arith.addf %613, %617 : vector<16x32xf32>
    %619 = vector.extract_strided_slice %607 {offsets = [2, 0, 0], sizes = [1, 16, 8], strides = [1, 1, 1]} : vector<4x16x8xf32> to vector<1x16x8xf32>
    %620 = vector.shape_cast %619 : vector<1x16x8xf32> to vector<16x8xf32>
    %621 = vector.extract_strided_slice %523 {offsets = [16, 0], sizes = [8, 32], strides = [1, 1]} : vector<32x32xf32> to vector<8x32xf32>
    %cst_125 = arith.constant dense<0.000000e+00> : vector<16x32xf32>
    %622 = tpu.matmul %620, %621, %cst_125 {dimension_numbers = #tpu.dot_dimension_numbers<[1], [0], [0], [1], [0, 0, 1, 1], [], []>} : vector<16x8xf32>, vector<8x32xf32>, vector<16x32xf32> -> vector<16x32xf32>
    %623 = arith.addf %618, %622 : vector<16x32xf32>
    %624 = vector.extract_strided_slice %607 {offsets = [3, 0, 0], sizes = [1, 16, 8], strides = [1, 1, 1]} : vector<4x16x8xf32> to vector<1x16x8xf32>
    %625 = vector.shape_cast %624 : vector<1x16x8xf32> to vector<16x8xf32>
    %626 = vector.extract_strided_slice %523 {offsets = [24, 0], sizes = [8, 32], strides = [1, 1]} : vector<32x32xf32> to vector<8x32xf32>
    %cst_126 = arith.constant dense<0.000000e+00> : vector<16x32xf32>
    %627 = tpu.matmul %625, %626, %cst_126 {dimension_numbers = #tpu.dot_dimension_numbers<[1], [0], [0], [1], [0, 0, 1, 1], [], []>} : vector<16x8xf32>, vector<8x32xf32>, vector<16x32xf32> -> vector<16x32xf32>
    %628 = arith.addf %623, %627 : vector<16x32xf32>
    %629 = arith.addf %495, %628 : vector<16x32xf32>
    %630 = vector.extract_strided_slice %361 {offsets = [12, 0], sizes = [1, 32], strides = [1, 1]} : vector<16x128xf32> to vector<1x32xf32>
    %631 = vector.extract_strided_slice %361 {offsets = [13, 0], sizes = [1, 32], strides = [1, 1]} : vector<16x128xf32> to vector<1x32xf32>
    %cst_127 = arith.constant dense<0.000000e+00> : vector<16xf32>
    %632 = vector.multi_reduction <add>, %629, %cst_127 [1] : vector<16x32xf32> to vector<16xf32>
    %633 = vector.shape_cast %632 : vector<16xf32> to vector<16x1xf32>
    %cst_128 = arith.constant 3.200000e+01 : f32
    %634 = vector.broadcast %cst_128 : f32 to vector<16x1xf32>
    %635 = arith.divf %633, %634 : vector<16x1xf32>
    %636 = vector.broadcast %635 : vector<16x1xf32> to vector<16x32xf32>
    %637 = arith.subf %629, %636 : vector<16x32xf32>
    %638 = arith.mulf %637, %637 : vector<16x32xf32>
    %cst_129 = arith.constant dense<0.000000e+00> : vector<16xf32>
    %639 = vector.multi_reduction <add>, %638, %cst_129 [1] : vector<16x32xf32> to vector<16xf32>
    %640 = vector.shape_cast %639 : vector<16xf32> to vector<16x1xf32>
    %cst_130 = arith.constant 3.200000e+01 : f32
    %641 = vector.broadcast %cst_130 : f32 to vector<16x1xf32>
    %642 = arith.divf %640, %641 : vector<16x1xf32>
    %643 = vector.broadcast %635 : vector<16x1xf32> to vector<16x32xf32>
    %644 = arith.subf %629, %643 : vector<16x32xf32>
    %cst_131 = arith.constant 9.99999974E-6 : f32
    %645 = vector.broadcast %cst_131 : f32 to vector<16x1xf32>
    %646 = arith.addf %642, %645 : vector<16x1xf32>
    %647 = math.rsqrt %646 : vector<16x1xf32>
    %648 = vector.broadcast %647 : vector<16x1xf32> to vector<16x32xf32>
    %649 = arith.mulf %644, %648 : vector<16x32xf32>
    %650 = vector.broadcast %630 : vector<1x32xf32> to vector<16x32xf32>
    %651 = arith.mulf %649, %650 : vector<16x32xf32>
    %652 = vector.broadcast %631 : vector<1x32xf32> to vector<16x32xf32>
    %653 = arith.addf %651, %652 : vector<16x32xf32>
    %654 = vector.extract_strided_slice %359 {offsets = [0, 256], sizes = [32, 64], strides = [1, 1]} : vector<32x320xf32> to vector<32x64xf32>
    %cst_132 = arith.constant dense<0.000000e+00> : vector<16x64xf32>
    %655 = tpu.matmul %653, %654, %cst_132 {dimension_numbers = #tpu.dot_dimension_numbers<[1], [0], [0], [1], [0, 0, 1, 1], [], []>} : vector<16x32xf32>, vector<32x64xf32>, vector<16x64xf32> -> vector<16x64xf32>
    %656 = vector.extract_strided_slice %361 {offsets = [14, 0], sizes = [1, 64], strides = [1, 1]} : vector<16x128xf32> to vector<1x64xf32>
    %657 = vector.broadcast %656 : vector<1x64xf32> to vector<16x64xf32>
    %658 = arith.addf %655, %657 : vector<16x64xf32>
    %cst_133 = arith.constant 0.000000e+00 : f32
    %659 = vector.broadcast %cst_133 : f32 to vector<16x64xf32>
    %660 = arith.maximumf %658, %659 : vector<16x64xf32>
    %661 = vector.extract_strided_slice %3 {offsets = [1, 0, 0], sizes = [1, 64, 32], strides = [1, 1, 1]} : vector<2x64x32xf32> to vector<1x64x32xf32>
    %662 = vector.shape_cast %661 : vector<1x64x32xf32> to vector<64x32xf32>
    %cst_134 = arith.constant dense<0.000000e+00> : vector<16x32xf32>
    %663 = tpu.matmul %660, %662, %cst_134 {dimension_numbers = #tpu.dot_dimension_numbers<[1], [0], [0], [1], [0, 0, 1, 1], [], []>} : vector<16x64xf32>, vector<64x32xf32>, vector<16x32xf32> -> vector<16x32xf32>
    %664 = arith.addf %629, %663 : vector<16x32xf32>
    %665 = vector.extract_strided_slice %361 {offsets = [15, 0], sizes = [1, 32], strides = [1, 1]} : vector<16x128xf32> to vector<1x32xf32>
    %666 = vector.broadcast %665 : vector<1x32xf32> to vector<16x32xf32>
    %667 = arith.addf %664, %666 : vector<16x32xf32>
    %cst_135 = arith.constant dense<0.000000e+00> : vector<16xf32>
    %668 = vector.multi_reduction <add>, %667, %cst_135 [1] : vector<16x32xf32> to vector<16xf32>
    %669 = vector.shape_cast %668 : vector<16xf32> to vector<16x1xf32>
    %cst_136 = arith.constant 3.200000e+01 : f32
    %670 = vector.broadcast %cst_136 : f32 to vector<16x1xf32>
    %671 = arith.divf %669, %670 : vector<16x1xf32>
    %672 = vector.broadcast %671 : vector<16x1xf32> to vector<16x32xf32>
    %673 = arith.subf %667, %672 : vector<16x32xf32>
    %674 = arith.mulf %673, %673 : vector<16x32xf32>
    %cst_137 = arith.constant dense<0.000000e+00> : vector<16xf32>
    %675 = vector.multi_reduction <add>, %674, %cst_137 [1] : vector<16x32xf32> to vector<16xf32>
    %676 = vector.shape_cast %675 : vector<16xf32> to vector<16x1xf32>
    %cst_138 = arith.constant 3.200000e+01 : f32
    %677 = vector.broadcast %cst_138 : f32 to vector<16x1xf32>
    %678 = arith.divf %676, %677 : vector<16x1xf32>
    %679 = vector.broadcast %671 : vector<16x1xf32> to vector<16x32xf32>
    %680 = arith.subf %667, %679 : vector<16x32xf32>
    %cst_139 = arith.constant 9.99999974E-6 : f32
    %681 = vector.broadcast %cst_139 : f32 to vector<16x1xf32>
    %682 = arith.addf %678, %681 : vector<16x1xf32>
    %683 = math.rsqrt %682 : vector<16x1xf32>
    %684 = vector.broadcast %683 : vector<16x1xf32> to vector<16x32xf32>
    %685 = arith.mulf %680, %684 : vector<16x32xf32>
    %686 = vector.broadcast %9 : vector<1x32xf32> to vector<16x32xf32>
    %687 = arith.mulf %685, %686 : vector<16x32xf32>
    %688 = vector.broadcast %10 : vector<1x32xf32> to vector<16x32xf32>
    %689 = arith.addf %687, %688 : vector<16x32xf32>
    %cst_140 = arith.constant dense<0.000000e+00> : vector<16x128xf32>
    %690 = tpu.matmul %689, %6, %cst_140 {dimension_numbers = #tpu.dot_dimension_numbers<[1], [0], [0], [1], [0, 0, 1, 1], [], []>} : vector<16x32xf32>, vector<32x128xf32>, vector<16x128xf32> -> vector<16x128xf32>
    %c0_141 = arith.constant 0 : index
    %c0_142 = arith.constant 0 : index
    %691 = vector.load %arg6[%c0_141, %c0_142] : memref<16x128xf32, #tpu.memory_space<vmem>>, vector<16x128xf32>
    tpu.vector_store %arg6[%c0_141, %c0_142], %690 {strides = array<i32>} : memref<16x128xf32, #tpu.memory_space<vmem>>, vector<16x128xf32>,
    return
  }
}

</mosaic_0001>

<bundles_post_ra>
// kernel: decoder_forward.1
= control target key start
LH: loop header
LB: loop body
LE: loop exit
PB: predicated region body
PF: predicated region fallthrough
CT: control target
= control target key end

     0   :  { %v15369_v0 = vmov 1   ;;  %v15370_v2 = vmov 0   ;;  %v93_v20 = vlaneseq  ;;  %vm119_vm0 = vcmask 588800   ;;  %s15372_s10 = smov 96   ;;  %s15374_s15 = smov 88   ;;  %s17287_s0 = inlined_call_operand.vmem [shape: s32[16,2], index: 0, kind: input, shape index: {}]   ;;  %s17288_s5 = inlined_call_operand.vmem [shape: f32[160,128], index: 5, kind: input, shape index: {}]   ;;  %s17289_s2 = inlined_call_operand.vmem [shape: f32[2,32,320], index: 2, kind: input, shape index: {}]   ;;  %s17290_s4 = inlined_call_operand.vmem [shape: f32[2,16,128], index: 4, kind: input, shape index: {}]   ;;  %s17291_s1 = inlined_call_operand.vmem [shape: f32[32,32], index: 1, kind: input, shape index: {}]   ;;  %s17292_s3 = inlined_call_operand.vmem [shape: f32[2,64,32], index: 3, kind: input, shape index: {}]   ;;  %s17293_s6 = inlined_call_operand.vmem [shape: f32[16,128], index: 6, kind: output, shape index: {}]  }
   0x1   :  { %14763 = vset.pattern.permute.xlu0 %v15369_v0  ;;  %v23_v1 = vld [vmem:[%s17287_s0] sm:$0xff]  ;;  %14764 = vset.pattern.permute.xlu1 %v15370_v2  ;;  %v83_v3 = vld [vmem:[%s17288_s5 + $0x50] sm:$0xff]  ;;  %v84_v4 = vld [vmem:[%s17288_s5 + $0x58] sm:$0xff]  ;;  %v15371_v24 = vmov 0.0   ;;  %vm201_vm4 = vcmask 392192   ;;  %vm322_vm6 = vcmask 261120  }
   0x2   :  { %108 = vperm.xlu0 %14763, %v23_v1   ;;  %96 = vperm.xlu1 %14764, %v23_v1   ;;  %v85_v5 = vld [vmem:[%s17288_s5 + $0x60] sm:$0xff]  ;;  %v86_v6 = vld [vmem:[%s17288_s5 + $0x68] sm:$0xff]  ;;  %v14130_v8 = vpack.c.bf16 %v84_v4, %v83_v3  ;;  %v87_v10 = vld [vmem:[%s17288_s5 + $0x70] sm:$0xff]  ;;  %v15463_v21 = vand.u32 127, %v93_v20  ;;  %s15375_s16 = smov 112   ;;  %s15376_s17 = smov 48  }
   0x3   :  { %v24_v7 = vld [vmem:[%s17287_s0 + $0x8] sm:$0xff]  ;;  %v14134_v9 = vpack.c.bf16 %v86_v6, %v85_v5  ;;  %v88_v11 = vld [vmem:[%s17288_s5 + $0x78] sm:$0xff]  ;;  %v89_v13 = vld [vmem:[%s17288_s5 + $0x80] sm:$0xff]  ;;  %s15373_s0 = smov 64   ;;  %s15377_s18 = smov 104   ;;  %vm15383_vm7 = vmmov 0  }
   0x4   :  { %14131 = vmatprep.subr.bf16.mxu0 %v14130_v8  ;;  %v14138_v12 = vpack.c.bf16 %v88_v11, %v87_v10  ;;  %v90_v14 = vld [vmem:[%s17288_s5 + $0x88] sm:$0xff]  ;;  %v91_v16 = vld [vmem:[%s17288_s5 + $0x90] sm:$0xff]  ;;  %v77_v17 = vld [vmem:[%s17288_s5 + $0x20] sm:$0xff]  ;;  %s15378_s19 = smov 40   ;;  %s15379_s20 = smov 120   ;;  %vm1446_vm8 = vcmask 64512  }
   0x5   :  { %14133 = vmatpush3.bf16.msra.mxu0 %v14130_v8  ;;  %v14142_v15 = vpack.c.bf16 %v90_v14, %v89_v13  ;;  %v78_v18 = vld [vmem:[%s17288_s5 + $0x28] sm:$0xff]  ;;  %v79_v26 = vld [vmem:[%s17288_s5 + $0x30] sm:$0xff]  ;;  %v80_v27 = vld [vmem:[%s17288_s5 + $0x38] sm:$0xff]  ;;  %s15380_s21 = smov 56   ;;  %s15381_s22 = smov 80   ;;  %v15594_v13 = vshrl.u32 %v93_v20, 7 }
   0x6   :  { %111 = vperm.xlu0 %14763, %v24_v7   ;;  %99 = vperm.xlu1 %14764, %v24_v7   ;;  %v14146_v19 = vpack.c.bf16 %v78_v18, %v77_v17  ;;  %v14150_v30 = vpack.c.bf16 %v80_v27, %v79_v26  ;;  %v81_v32 = vld [vmem:[%s17288_s5 + $0x40] sm:$0xff]  ;;  %v82_v33 = vld [vmem:[%s17288_s5 + $0x48] sm:$0xff]  ;;  %v15503_v42 = vld [vmem:[%s17289_s2 + $0x18] sm:$0xff]  ;;  %s15382_s23 = smov 72   ;;  %s15385_s26 = smov 32   ;;  %vm287_vm11 = vcmp.lt.s32.totalorder %v15463_v21, 12 }
   0x7   :  { %14135 = vmatprep.subr.bf16.mxu0 %v14134_v9  ;;  %v14154_v34 = vpack.c.bf16 %v82_v33, %v81_v32  ;;  %v15498_v41 = vld [vmem:[%s17289_s2] sm:$0xff]  ;;  %v15514_v44 = vld [vmem:[%s17289_s2 + $0x30] sm:$0xff]  ;;  %v15519_v45 = vld [vmem:[%s17289_s2 + $0x48] sm:$0xff]  ;;  %v15597_v14 = vsub.s32 3, %v15594_v13  ;;  %vm285_vm9 = vcmp.ge.s32.totalorder %v15594_v13, %v15463_v21  ;;  %vm4923_vm12 = vcmask 130048  }
   0x8   :  { %v15507_v43 = vpack.i.bf16 %v15503_v42, %v15498_v41  ;;  %v15525_v46 = vpack.i.bf16 %v15519_v45, %v15514_v44  ;;  %v14158_v63 = vpack.c.bf16 %v15503_v42, %v15498_v41  ;;  %v14162_v6 = vpack.c.bf16 %v15519_v45, %v15514_v44  ;;  %vm16144_vm10 = vmpackc.low %vm1446_vm8, %vm1446_vm8 }
   0x9   :  { %14137 = vmatpush3.bf16.msra.mxu0 %v14134_v9  ;;  %vm6071_vm13 = vcmask 523264  }
   0xa   :  { %14139 = vmatprep.subr.bf16.mxu0 %v14138_v12  ;;  %14159 = vmatprep.subr.bf16.mxu1 %v14158_v63 }
   0xb   :  { %14161 = vmatpush3.bf16.msra.mxu1 %v14158_v63 }
   0xc   :  { %14163 = vmatprep.subr.bf16.mxu1 %v14162_v6 }
   0xd   :  { %14141 = vmatpush3.bf16.msra.mxu0 %v14138_v12 }
   0xe   :  { %14143 = vmatprep.subr.bf16.mxu0 %v14142_v15 }
   0xf   :  { %14165 = vmatpush3.bf16.msra.mxu1 %v14162_v6 }
  0x11   :  { %14145 = vmatpush3.bf16.msra.mxu0 %v14142_v15  ;;  %v15600_v15 = vsub.s32 2, %v15594_v13 }
  0x12   :  { %12999 = vmatprep.subr.mxu0 %v91_v16 }
  0x15   :  { %13000 = vmatpush3.msra.mxu0 %v91_v16  ;;  %v15605_v16 = vld [vmem:[%s17290_s4] sm:$0xff] }
  0x16   :  { %14147 = vmatprep.subr.bf16.mxu0 %v14146_v19  ;;  %v15609_v17 = vrot.slane %v15605_v16, %v15597_v14  ;;  %v15613_v18 = vrot.slane %v15605_v16, %v15600_v15 }
  0x81   :  { %v109_v22 = vpop.permute.xlu0 %108  ;;  %v97_v23 = vpop.permute.xlu1 %96 }
  0x82   :  { %vm113_vm1 = vcmp.eq.s32.totalorder %v15463_v21, %v109_v22  ;;  %vm101_vm2 = vcmp.eq.s32.totalorder %v15463_v21, %v97_v23 }
  0x83   :  { %v12110_v25 = vsel %vm113_vm1, 1.0, %v15371_v24  ;;  %v12108_v29 = vsel %vm101_vm2, 1.0, %v15371_v24 }
  0x84   :  { %13001 = vmatprep.mubr.msk.f32.mxu0 %vm119_vm0, %v12110_v25 }
  0x85   :  { %v112_v28 = vpop.permute.xlu0 %111  ;;  %v100_v35 = vpop.permute.xlu1 %99 }
  0x86   :  { %vm114_vm3 = vcmp.eq.s32.totalorder %v15463_v21, %v112_v28  ;;  %vm102_vm5 = vcmp.eq.s32.totalorder %v15463_v21, %v100_v35  ;;  %v15628_v28 = vsub.s32 0, %v15594_v13 }
  0x87   :  { %v12111_v31 = vsel %vm114_vm3, 1.0, %v15371_v24  ;;  %v12109_v36 = vsel %vm102_vm5, 1.0, %v15371_v24 }
  0x88   :  { %13002 = vmatmul.mubr.msk.f32.vlgmr.msra.gmra.mrb[0].mxu0 %vm119_vm0, %v12111_v31  ;;  %v353_v31 = vrot.slane %v15605_v16, %v15628_v28 }
  0x89   :  { %14149 = vmatpush3.bf16.msra.mxu0 %v14146_v19  ;;  %13016 = vmatprep.mubr.msk.f32.mxu0 %vm201_vm4, %v12108_v29  ;;  %v15631_v29 = vsub.s32 1, %v15594_v13 }
  0x8a   :  { %14151 = vmatprep.subr.bf16.mxu0 %v14150_v30 }
  0x8d   :  { %14153 = vmatpush3.bf16.msra.mxu0 %v14150_v30 }
  0x8e   :  { %14155 = vmatprep.subr.bf16.mxu0 %v14154_v34 }
  0x91   :  { %14157 = vmatpush3.bf16.msra.mxu0 %v14154_v34  ;;  %v359_v34 = vrot.slane %v15605_v16, %v15631_v29 }
  0x94   :  { %13017 = vmatmul.mubr.msk.f32.vlgmr.msra.gmra.mrb[0].mxu0 %vm201_vm4, %v12109_v36 }
 0x167   :  { %v15487_v37 = vpop.f32.mrb[0].mxu0 }
 0x168   :  { %v15489_v38 = vpop.f32.mrb[1].mxu0  ;;  %v326_v39 = vsel %vm322_vm6, %v15487_v37, 0.0 }
 0x169   :  { %327 = vadd.xlane.f32.xlu1 %v326_v39  ;;  %v323_v40 = vsel %vm322_vm6, %v15489_v38, 0.0 }
 0x16a   :  { %324 = vadd.xlane.f32.xlu0 %v323_v40 }
 0x17a   :  { %14766 = vrot.lane.b32.xlu1 %v15507_v43, %s15372_s10 }
 0x17e   :  { %14776 = vrot.lane.b32.xlu1 %v15507_v43, %s15373_s0 }
 0x182   :  { %14781 = vrot.lane.b32.xlu1 %v15525_v46, %s15373_s0 }
 0x186   :  { %14791 = vrot.lane.b32.xlu1 %v15507_v43, %s15374_s15 }
 0x18a   :  { %14801 = vrot.lane.b32.xlu1 %v15525_v46, %s15374_s15 }
 0x18e   :  { %14811 = vrot.lane.b32.xlu1 %v15507_v43, %s15375_s16 }
 0x192   :  { %14821 = vrot.lane.b32.xlu1 %v15525_v46, %s15375_s16 }
 0x196   :  { %14831 = vrot.lane.b32.xlu1 %v15507_v43, %s15376_s17 }
 0x19a   :  { %14841 = vrot.lane.b32.xlu1 %v15525_v46, %s15376_s17 }
 0x19e   :  { %14851 = vrot.lane.b32.xlu1 %v15507_v43, %s15377_s18 }
 0x1a2   :  { %14861 = vrot.lane.b32.xlu1 %v15525_v46, %s15377_s18 }
 0x1a6   :  { %14871 = vrot.lane.b32.xlu1 %v15525_v46, %s15378_s19 }
 0x1aa   :  { %646 = vrot.lane.b32.xlu1 %v15613_v18, %s15379_s20 }
 0x1ae   :  { %918 = vrot.lane.b32.xlu1 %v15613_v18, %s15375_s16 }
 0x1b2   :  { %1188 = vrot.lane.b32.xlu1 %v15613_v18, %s15377_s18 }
 0x1f6   :  { %v328_v47 = vpop.xlane.xlu1 %327 }
 0x1f7   :  { %v331_v48 = vmul.f32 0.03125, %v328_v47  ;;  %v325_v49 = vpop.xlane.xlu0 %324 }
 0x1f8   :  { %v330_v50 = vmul.f32 0.03125, %v325_v49 }
 0x1f9   :  { %v15548_v51 = vsub.f32 %v15487_v37, %v331_v48 }
 0x1fa   :  { %v15551_v52 = vsub.f32 %v15489_v38, %v330_v50  ;;  %v14767_v57 = vpop.permute.xlu1 %14766 }
 0x1fb   :  { %v335_v55 = vmul.f32 %v15548_v51, %v15548_v51  ;;  %v14769_v4 = vunpack.i.h.bf16 %v14767_v57  ;;  %v14768_v5 = vunpack.i.l.bf16 %v14767_v57 }
 0x1fc   :  { %v334_v53 = vmul.f32 %v15551_v52, %v15551_v52 }
 0x1fd   :  { %v339_v56 = vsel %vm322_vm6, %v335_v55, 0.0  ;;  %v15573_v11 = vpack.c.bf16 %v14769_v4, %v14768_v5 }
 0x1fe   :  { %v336_v54 = vsel %vm322_vm6, %v334_v53, 0.0  ;;  %v15559_v58 = vpop.permute.xlu1 %14776 }
 0x1ff   :  { %337 = vadd.xlane.f32.xlu0 %v336_v54  ;;  %14167 = vmatprep.subr.bf16.mxu1 %v15573_v11 }
 0x202   :  { %v15561_v59 = vpop.permute.xlu1 %14781 }
 0x203   :  { %340 = vadd.xlane.f32.xlu0 %v339_v56  ;;  %v14778_v56 = vunpack.i.l.bf16 %v15559_v58  ;;  %v14783_v4 = vunpack.i.l.bf16 %v15561_v59 }
 0x206   :  { %v14792_v60 = vpop.permute.xlu1 %14791 }
 0x207   :  { %v14794_v61 = vunpack.i.h.bf16 %v14792_v60  ;;  %v14793_v62 = vunpack.i.l.bf16 %v14792_v60 }
 0x209   :  { %v14190_v0 = vpack.c.bf16 %v14794_v61, %v14793_v62 }
 0x20a   :  { %v14802_v1 = vpop.permute.xlu1 %14801 }
 0x20b   :  { %v14804_v2 = vunpack.i.h.bf16 %v14802_v1  ;;  %v14803_v3 = vunpack.i.l.bf16 %v14802_v1  ;;  %14191 = vmatprep.subr.bf16.mxu0 %v14190_v0 }
 0x20c   :  { %14193 = vmatpush3.bf16.msra.mxu0 %v14190_v0 }
 0x20d   :  { %v14194_v7 = vpack.c.bf16 %v14804_v2, %v14803_v3  ;;  %v14784_v3 = vunpack.i.h.bf16 %v15561_v59 }
 0x20e   :  { %v14812_v8 = vpop.permute.xlu1 %14811 }
 0x20f   :  { %v14814_v9 = vunpack.i.h.bf16 %v14812_v8  ;;  %v14813_v10 = vunpack.i.l.bf16 %v14812_v8  ;;  %14195 = vmatprep.subr.bf16.mxu0 %v14194_v7 }
 0x210   :  { %14197 = vmatpush3.bf16.msra.mxu0 %v14194_v7 }
 0x211   :  { %v15575_v12 = vpack.c.bf16 %v14814_v9, %v14813_v10  ;;  %v14178_v10 = vpack.c.bf16 %v14784_v3, %v14783_v4 }
 0x212   :  { %v14822_v32 = vpop.permute.xlu1 %14821 }
 0x213   :  { %14207 = vmatprep.subr.bf16.mxu0 %v15575_v12  ;;  %v14824_v53 = vunpack.i.h.bf16 %v14822_v32  ;;  %v14823_v54 = vunpack.i.l.bf16 %v14822_v32 }
 0x215   :  { %v14210_v63 = vpack.c.bf16 %v14824_v53, %v14823_v54 }
 0x216   :  { %v14832_v48 = vpop.permute.xlu1 %14831 }
 0x217   :  { %v14834_v60 = vunpack.i.h.bf16 %v14832_v48  ;;  %v14833_v61 = vunpack.i.l.bf16 %v14832_v48 }
 0x219   :  { %14771 = vrot.lane.b32.xlu0 %v15525_v46, %s15372_s10  ;;  %v14222_v2 = vpack.c.bf16 %v14834_v60, %v14833_v61 }
 0x21a   :  { %v14842_v0 = vpop.permute.xlu1 %14841 }
 0x21b   :  { %v14844_v5 = vunpack.i.h.bf16 %v14842_v0  ;;  %v14843_v6 = vunpack.i.l.bf16 %v14842_v0 }
 0x21d   :  { %14786 = vrot.lane.b32.xlu0 %v15507_v43, %s15379_s20 }
 0x21e   :  { %v14852_v48 = vpop.permute.xlu1 %14851 }
 0x221   :  { %14796 = vrot.lane.b32.xlu0 %v15525_v46, %s15379_s20 }
 0x225   :  { %14806 = vrot.lane.b32.xlu0 %v15507_v43, %s15380_s21 }
 0x229   :  { %14816 = vrot.lane.b32.xlu0 %v15525_v46, %s15380_s21 }
 0x22d   :  { %14826 = vrot.lane.b32.xlu0 %v15507_v43, %s15381_s22 }
 0x231   :  { %14836 = vrot.lane.b32.xlu0 %v15525_v46, %s15381_s22 }
 0x235   :  { %14846 = vrot.lane.b32.xlu0 %v15507_v43, %s15382_s23 }
 0x239   :  { %14856 = vrot.lane.b32.xlu0 %v15525_v46, %s15382_s23 }
 0x23d   :  { %14866 = vrot.lane.b32.xlu0 %v15507_v43, %s15378_s19 }
 0x241   :  { %737 = vrot.lane.b32.xlu0 %v15609_v17, %s15379_s20 }
 0x245   :  { %1008 = vrot.lane.b32.xlu0 %v15609_v17, %s15375_s16 }
 0x249   :  { %1278 = vrot.lane.b32.xlu0 %v15609_v17, %s15377_s18 }
 0x28c   :  { %v338_v19 = vpop.xlane.xlu0 %337 }
 0x28d   :  { %v342_v20 = vmul.f32 0.03125, %v338_v19 }
 0x28f   :  { %v344_v22 = vadd.f32 1e-05, %v342_v20 }
 0x290   :  { %v341_v23 = vpop.xlane.xlu0 %340 }
 0x291   :  { %15205 = vrsqrt.f32 %v344_v22  ;;  %v343_v25 = vmul.f32 0.03125, %v341_v23 }
 0x293   :  { %v345_v26 = vadd.f32 1e-05, %v343_v25 }
 0x294   :  { %v14772_v27 = vpop.permute.xlu0 %14771 }
 0x295   :  { %15207 = vrsqrt.f32 %v345_v26  ;;  %v14774_v49 = vunpack.i.h.bf16 %v14772_v27  ;;  %v14773_v50 = vunpack.i.l.bf16 %v14772_v27 }
 0x297   :  { %v14170_v62 = vpack.c.bf16 %v14774_v49, %v14773_v50 }
 0x298   :  { %v14787_v30 = vpop.permute.xlu0 %14786 }
 0x299   :  { %v14789_v7 = vunpack.i.h.bf16 %v14787_v30  ;;  %v14788_v8 = vunpack.i.l.bf16 %v14787_v30 }
 0x29b   :  { %v15206_v33 = vpop.eup %15205 }
 0x29c   :  { %v348_v35 = vmul.f32 %v15206_v33, %v15551_v52  ;;  %v15638_v36 = vpop.permute.xlu0 %14796  ;;  %v14779_v52 = vunpack.i.h.bf16 %v15559_v58 }
 0x29d   :  { %v14799_v19 = vunpack.i.h.bf16 %v15638_v36  ;;  %v14798_v20 = vunpack.i.l.bf16 %v15638_v36 }
 0x29e   :  { %v354_v39 = vmul.f32 %v353_v31, %v348_v35  ;;  %v14174_v1 = vpack.c.bf16 %v14779_v52, %v14778_v56  ;;  %v14853_v52 = vunpack.i.l.bf16 %v14852_v48  ;;  %v14862_v56 = vpop.permute.xlu1 %14861 }
 0x29f   :  { %v15208_v40 = vpop.eup %15207  ;;  %v14186_v33 = vpack.c.bf16 %v14799_v19, %v14798_v20  ;;  %v14863_v60 = vunpack.i.l.bf16 %v14862_v56 }
 0x2a0   :  { %v15640_v43 = vadd.f32 %v359_v34, %v354_v39  ;;  %v349_v46 = vmul.f32 %v15208_v40, %v15548_v51  ;;  %v15643_v47 = vpop.permute.xlu0 %14806 }
 0x2a1   :  { %v14809_v26 = vunpack.i.h.bf16 %v15643_v47  ;;  %v14808_v27 = vunpack.i.l.bf16 %v15643_v47 }
 0x2a2   :  { %v355_v55 = vmul.f32 %v353_v31, %v349_v46  ;;  %13027 = vmatprep.mubr.msk.f32.mxu1 %vm322_vm6, %v15640_v43  ;;  %13071 = vmatprep.mubr.msk.f32.mxu0 %vm322_vm6, %v15640_v43 }
 0x2a3   :  { %v14198_v39 = vpack.c.bf16 %v14809_v26, %v14808_v27 }
 0x2a4   :  { %v15651_v57 = vadd.f32 %v359_v34, %v355_v55  ;;  %v15653_v51 = vpop.permute.xlu0 %14816  ;;  %v14854_v55 = vunpack.i.h.bf16 %v14852_v48 }
 0x2a5   :  { %v14819_v35 = vunpack.i.h.bf16 %v15653_v51  ;;  %v14818_v36 = vunpack.i.l.bf16 %v15653_v51  ;;  %v14864_v51 = vunpack.i.h.bf16 %v14862_v56 }
 0x2a6   :  { %13028 = vmatmul.mubr.msk.f32.vlgmr.msra.gmra.mrb[0].mxu1 %vm322_vm6, %v15651_v57  ;;  %13072 = vmatmul.mubr.msk.f32.vlgmr.msra.gmra.mrb[2].mxu0 %vm322_vm6, %v15651_v57  ;;  %v14230_v61 = vpack.c.bf16 %v14854_v55, %v14853_v52 }
 0x2a7   :  { %14169 = vmatpush3.bf16.msra.mxu1 %v15573_v11  ;;  %14209 = vmatpush3.bf16.msra.mxu0 %v15575_v12  ;;  %v14226_v11 = vpack.c.bf16 %v14844_v5, %v14843_v6  ;;  %v14182_v12 = vpack.c.bf16 %v14789_v7, %v14788_v8  ;;  %v14202_v47 = vpack.c.bf16 %v14819_v35, %v14818_v36 }
 0x2a8   :  { %13038 = vmatprep.mubr.msk.f32.mxu1 %vm322_vm6, %v15640_v43  ;;  %13093 = vmatprep.mubr.msk.f32.mxu0 %vm322_vm6, %v15640_v43  ;;  %v15665_v58 = vpop.permute.xlu0 %14826 }
 0x2a9   :  { %14171 = vmatprep.subr.bf16.mxu1 %v14170_v62  ;;  %14211 = vmatprep.subr.bf16.mxu0 %v14210_v63  ;;  %v14829_v40 = vunpack.i.h.bf16 %v15665_v58  ;;  %v14828_v46 = vunpack.i.l.bf16 %v15665_v58  ;;  %v14234_v58 = vpack.c.bf16 %v14864_v51, %v14863_v60 }
 0x2ab   :  { %14173 = vmatpush3.bf16.msra.mxu1 %v14170_v62  ;;  %14213 = vmatpush3.bf16.msra.mxu0 %v14210_v63  ;;  %v14214_v53 = vpack.c.bf16 %v14829_v40, %v14828_v46 }
 0x2ac   :  { %14175 = vmatprep.subr.bf16.mxu1 %v14174_v1  ;;  %v14837_v9 = vpop.permute.xlu0 %14836  ;;  %14223 = vmatprep.subr.bf16.mxu0 %v14222_v2 }
 0x2ad   :  { %v14839_v49 = vunpack.i.h.bf16 %v14837_v9  ;;  %v14838_v50 = vunpack.i.l.bf16 %v14837_v9 }
 0x2ae   :  { %13039 = vmatmul.mubr.msk.f32.vlgmr.msra.gmra.mrb[2].mxu1 %vm322_vm6, %v15651_v57  ;;  %13094 = vmatmul.mubr.msk.f32.vlgmr.msra.gmra.mrb[4].mxu0 %vm322_vm6, %v15651_v57 }
 0x2af   :  { %14177 = vmatpush3.bf16.msra.mxu1 %v14174_v1  ;;  %13049 = vmatprep.mubr.msk.f32.mxu1 %vm322_vm6, %v15640_v43  ;;  %v14218_v54 = vpack.c.bf16 %v14839_v49, %v14838_v50  ;;  %v14872_v1 = vpop.permute.xlu1 %14871 }
 0x2b0   :  { %14225 = vmatpush3.bf16.msra.mxu0 %v14222_v2  ;;  %13115 = vmatprep.mubr.msk.f32.mxu0 %vm322_vm6, %v15640_v43  ;;  %v14847_v59 = vpop.permute.xlu0 %14846  ;;  %v14874_v2 = vunpack.i.h.bf16 %v14872_v1  ;;  %v14873_v3 = vunpack.i.l.bf16 %v14872_v1 }
 0x2b1   :  { %14179 = vmatprep.subr.bf16.mxu1 %v14178_v10  ;;  %v14849_v22 = vunpack.i.h.bf16 %v14847_v59  ;;  %v14848_v23 = vunpack.i.l.bf16 %v14847_v59  ;;  %14227 = vmatprep.subr.bf16.mxu0 %v14226_v11 }
 0x2b2   :  { %v14250_v5 = vpack.c.bf16 %v14874_v2, %v14873_v3 }
 0x2b3   :  { %14181 = vmatpush3.bf16.msra.mxu1 %v14178_v10  ;;  %v14238_v25 = vpack.c.bf16 %v14849_v22, %v14848_v23 }
 0x2b4   :  { %14229 = vmatpush3.bf16.msra.mxu0 %v14226_v11  ;;  %14183 = vmatprep.subr.bf16.mxu1 %v14182_v12  ;;  %v14857_v30 = vpop.permute.xlu0 %14856 }
 0x2b5   :  { %v14859_v31 = vunpack.i.h.bf16 %v14857_v30  ;;  %v14858_v32 = vunpack.i.l.bf16 %v14857_v30  ;;  %14239 = vmatprep.subr.bf16.mxu0 %v14238_v25  ;;  %v647_v30 = vpop.permute.xlu1 %646 }
 0x2b6   :  { %13050 = vmatmul.mubr.msk.f32.vlgmr.msra.gmra.mrb[4].mxu1 %vm322_vm6, %v15651_v57 }
 0x2b7   :  { %13116 = vmatmul.mubr.msk.f32.vlgmr.msra.gmra.mrb[6].mxu0 %vm322_vm6, %v15651_v57  ;;  %14185 = vmatpush3.bf16.msra.mxu1 %v14182_v12  ;;  %v14242_v34 = vpack.c.bf16 %v14859_v31, %v14858_v32 }
 0x2b8   :  { %13060 = vmatprep.mubr.msk.f32.mxu1 %vm322_vm6, %v15640_v43  ;;  %14241 = vmatpush3.bf16.msra.mxu0 %v14238_v25  ;;  %v14867_v62 = vpop.permute.xlu0 %14866 }
 0x2b9   :  { %13137 = vmatprep.mubr.msk.f32.mxu0 %vm322_vm6, %v15640_v43  ;;  %14187 = vmatprep.subr.bf16.mxu1 %v14186_v33  ;;  %v14869_v63 = vunpack.i.h.bf16 %v14867_v62  ;;  %v14868_v0 = vunpack.i.l.bf16 %v14867_v62  ;;  %v919_v48 = vpop.permute.xlu1 %918 }
 0x2ba   :  { %14243 = vmatprep.subr.bf16.mxu0 %v14242_v34 }
 0x2bb   :  { %14189 = vmatpush3.bf16.msra.mxu1 %v14186_v33  ;;  %v14246_v4 = vpack.c.bf16 %v14869_v63, %v14868_v0 }
 0x2bc   :  { %14245 = vmatpush3.bf16.msra.mxu0 %v14242_v34  ;;  %14199 = vmatprep.subr.bf16.mxu1 %v14198_v39  ;;  %v738_v19 = vpop.permute.xlu0 %737 }
 0x2bd   :  { %13151 = vmatprep.subr.mxu0 %v15371_v24  ;;  %v1189_v62 = vpop.permute.xlu1 %1188 }
 0x2be   :  { %13061 = vmatmul.mubr.msk.f32.vlgmr.msra.gmra.mrb[6].mxu1 %vm322_vm6, %v15651_v57 }
 0x2bf   :  { %13138 = vmatmul.mubr.msk.f32.vlgmr.msra.gmra.mrb[8].mxu0 %vm322_vm6, %v15651_v57  ;;  %14201 = vmatpush3.bf16.msra.mxu1 %v14198_v39 }
 0x2c0   :  { %13082 = vmatprep.mubr.msk.f32.mxu1 %vm322_vm6, %v15640_v43  ;;  %14203 = vmatprep.subr.bf16.mxu1 %v14202_v47  ;;  %v1009_v46 = vpop.permute.xlu0 %1008 }
 0x2c1   :  { %13153 = vmatprep.mubr.msk.f32.mxu0 %vm15383_vm7, %v15371_v24 }
 0x2c3   :  { %14205 = vmatpush3.bf16.msra.mxu1 %v14202_v47 }
 0x2c4   :  { %14215 = vmatprep.subr.bf16.mxu1 %v14214_v53 }
 0x2c6   :  { %13083 = vmatmul.mubr.msk.f32.vlgmr.msra.gmra.mrb[8].mxu1 %vm322_vm6, %v15651_v57 }
 0x2c7   :  { %14217 = vmatpush3.bf16.msra.mxu1 %v14214_v53  ;;  %13104 = vmatprep.mubr.msk.f32.mxu1 %vm322_vm6, %v15640_v43  ;;  %v15752_v53 = vsub.s32 4, %v15594_v13 }
 0x2c8   :  { %14219 = vmatprep.subr.bf16.mxu1 %v14218_v54 }
 0x2c9   :  { %v15760_v60 = vrot.slane %v15605_v16, %v15752_v53 }
 0x2cb   :  { %14221 = vmatpush3.bf16.msra.mxu1 %v14218_v54  ;;  %v1279_v54 = vpop.permute.xlu0 %1278 }
 0x2cc   :  { %14231 = vmatprep.subr.bf16.mxu1 %v14230_v61 }
 0x2ce   :  { %13105 = vmatmul.mubr.msk.f32.vlgmr.msra.gmra.mrb[10].mxu1 %vm322_vm6, %v15651_v57 }
 0x2cf   :  { %14233 = vmatpush3.bf16.msra.mxu1 %v14230_v61  ;;  %13126 = vmatprep.mubr.msk.f32.mxu1 %vm322_vm6, %v15640_v43 }
 0x2d0   :  { %14235 = vmatprep.subr.bf16.mxu1 %v14234_v58 }
 0x2d3   :  { %14237 = vmatpush3.bf16.msra.mxu1 %v14234_v58 }
 0x2d4   :  { %14247 = vmatprep.subr.bf16.mxu1 %v14246_v4 }
 0x2d6   :  { %13127 = vmatmul.mubr.msk.f32.vlgmr.msra.gmra.mrb[12].mxu1 %vm322_vm6, %v15651_v57 }
 0x2d7   :  { %14249 = vmatpush3.bf16.msra.mxu1 %v14246_v4  ;;  %13148 = vmatprep.mubr.msk.f32.mxu1 %vm322_vm6, %v15640_v43 }
 0x2d8   :  { %14251 = vmatprep.subr.bf16.mxu1 %v14250_v5 }
 0x2db   :  { %14253 = vmatpush3.bf16.msra.mxu1 %v14250_v5 }
 0x2dc   :  { %13156 = vmatprep.subr.mxu1 %v15371_v24 }
 0x2de   :  { %13149 = vmatmul.mubr.msk.f32.vlgmr.msra.gmra.mrb[14].mxu1 %vm322_vm6, %v15651_v57 }
 0x2df   :  { %13158 = vmatprep.mubr.msk.f32.mxu1 %vm15383_vm7, %v15371_v24 }
 0x379   :  { %v13029_v6 = vpop.f32.mrb[0].mxu1  ;;  %v13073_v7 = vpop.f32.mrb[2].mxu0 }
 0x37a   :  { %v438_v8 = vpop.f32.mrb[1].mxu1  ;;  %v806_v9 = vpop.f32.mrb[3].mxu0  ;;  %v444_v20 = vadd.f32 %v13029_v6, %v15613_v18  ;;  %v812_v22 = vadd.f32 %v13073_v7, %v738_v19  ;;  %v15384_v6 = vmov -1e+09  }
 0x37b   :  { %v439_v23 = vadd.f32 %v438_v8, %v15613_v18  ;;  %v807_v25 = vadd.f32 %v806_v9, %v738_v19  ;;  %v15789_v7 = vsel %vm285_vm9, 0.0, %v15384_v6 }
 0x381   :  { %v13040_v10 = vpop.f32.mrb[2].mxu1  ;;  %v13095_v43 = vpop.f32.mrb[4].mxu0 }
 0x382   :  { %v539_v11 = vadd.f32 %v13040_v10, %v15609_v17  ;;  %v533_v59 = vpop.f32.mrb[3].mxu1  ;;  %v987_v12 = vpop.f32.mrb[5].mxu0  ;;  %v993_v52 = vadd.f32 %v13095_v43, %v919_v48 }
 0x383   :  { %v534_v57 = vadd.f32 %v533_v59, %v15609_v17  ;;  %v988_v56 = vadd.f32 %v987_v12, %v919_v48 }
 0x384   :  { %13157 = vmatpush3.xpose.msk.msra.mxu1 %vm1446_vm8, %v539_v11 }
 0x385   :  { %13152 = vmatpush3.xpose.msk.msra.mxu0 %vm1446_vm8, %v534_v57  ;;  %13166 = vmatprep.subr.mxu1 %v15371_v24 }
 0x386   :  { %13161 = vmatprep.subr.mxu0 %v15371_v24 }
 0x387   :  { %13159 = vmatmul.mubr.msk.f32.vlgmr.msra.gmra.mrb[16].mxu1 %vm1446_vm8, %v444_v20 }
 0x388   :  { %13154 = vmatmul.mubr.msk.f32.vlgmr.msra.gmra.mrb[10].mxu0 %vm1446_vm8, %v439_v23  ;;  %13167 = vmatpush3.xpose.msk.msra.mxu1 %vm1446_vm8, %v812_v22 }
 0x389   :  { %v13051_v17 = vpop.f32.mrb[4].mxu1  ;;  %13162 = vmatpush3.xpose.msk.msra.mxu0 %vm1446_vm8, %v807_v25  ;;  %13168 = vmatprep.mubr.msk.f32.mxu1 %vm15383_vm7, %v15371_v24 }
 0x38a   :  { %v15733_v26 = vpop.f32.mrb[6].mxu0  ;;  %v624_v27 = vpop.f32.mrb[5].mxu1  ;;  %13163 = vmatprep.mubr.msk.f32.mxu0 %vm15383_vm7, %v15371_v24  ;;  %13176 = vmatprep.subr.mxu1 %v15371_v24  ;;  %v630_v1 = vadd.f32 %v13051_v17, %v15760_v60 }
 0x38b   :  { %v15738_v18 = vpop.f32.mrb[7].mxu0  ;;  %13171 = vmatprep.subr.mxu0 %v15371_v24  ;;  %v625_v3 = vadd.f32 %v624_v27, %v15760_v60 }
 0x391   :  { %v13062_v31 = vpop.f32.mrb[6].mxu1 }
 0x392   :  { %v721_v32 = vadd.f32 %v13062_v31, %v647_v30  ;;  %v13139_v33 = vpop.f32.mrb[8].mxu0  ;;  %v715_v34 = vpop.f32.mrb[7].mxu1 }
 0x393   :  { %v716_v35 = vadd.f32 %v715_v34, %v647_v30  ;;  %v1347_v36 = vpop.f32.mrb[9].mxu0  ;;  %v1353_v51 = vadd.f32 %v13139_v33, %v1279_v54 }
 0x394   :  { %13169 = vmatmul.mubr.msk.f32.vlgmr.msra.gmra.mrb[18].mxu1 %vm1446_vm8, %v721_v32  ;;  %v1348_v61 = vadd.f32 %v1347_v36, %v1279_v54 }
 0x395   :  { %13164 = vmatmul.mubr.msk.f32.vlgmr.msra.gmra.mrb[12].mxu0 %vm1446_vm8, %v716_v35  ;;  %13178 = vmatprep.mubr.msk.f32.mxu1 %vm15383_vm7, %v15371_v24 }
 0x396   :  { %13173 = vmatprep.mubr.msk.f32.mxu0 %vm15383_vm7, %v15371_v24 }
 0x399   :  { %v15747_v39 = vpop.f32.mrb[8].mxu1 }
 0x39a   :  { %v15749_v40 = vpop.f32.mrb[9].mxu1 }
 0x3a1   :  { %v13106_v47 = vpop.f32.mrb[10].mxu1 }
 0x3a2   :  { %v1083_v49 = vadd.f32 %v13106_v47, %v1009_v46  ;;  %v1077_v50 = vpop.f32.mrb[11].mxu1 }
 0x3a3   :  { %v1078_v55 = vadd.f32 %v1077_v50, %v1009_v46 }
 0x3a4   :  { %13177 = vmatpush3.xpose.msk.msra.mxu1 %vm1446_vm8, %v1083_v49 }
 0x3a5   :  { %13172 = vmatpush3.xpose.msk.msra.mxu0 %vm1446_vm8, %v1078_v55  ;;  %13186 = vmatprep.subr.mxu1 %v15371_v24 }
 0x3a6   :  { %13181 = vmatprep.subr.mxu0 %v15371_v24 }
 0x3a7   :  { %13179 = vmatmul.mubr.msk.f32.vlgmr.msra.gmra.mrb[20].mxu1 %vm1446_vm8, %v993_v52 }
 0x3a8   :  { %13174 = vmatmul.mubr.msk.f32.vlgmr.msra.gmra.mrb[14].mxu0 %vm1446_vm8, %v988_v56  ;;  %13187 = vmatpush3.xpose.msk.msra.mxu1 %vm1446_vm8, %v1353_v51 }
 0x3a9   :  { %v13128_v63 = vpop.f32.mrb[12].mxu1  ;;  %13182 = vmatpush3.xpose.msk.msra.mxu0 %vm1446_vm8, %v1348_v61  ;;  %13188 = vmatprep.mubr.msk.f32.mxu1 %vm15383_vm7, %v15371_v24 }
 0x3aa   :  { %v1263_v0 = vadd.f32 %v13128_v63, %v1189_v62  ;;  %v1257_v58 = vpop.f32.mrb[13].mxu1  ;;  %13196 = vmatprep.subr.mxu1 %v15371_v24  ;;  %13183 = vmatprep.mubr.msk.f32.mxu0 %vm15383_vm7, %v15371_v24 }
 0x3ab   :  { %v1258_v2 = vadd.f32 %v1257_v58, %v1189_v62  ;;  %13191 = vmatprep.subr.mxu0 %v15371_v24 }
 0x3ac   :  { %13189 = vmatmul.mubr.msk.f32.vlgmr.msra.gmra.mrb[22].mxu1 %vm1446_vm8, %v1263_v0 }
 0x3ad   :  { %13197 = vmatpush3.msra.mxu1 %v630_v1  ;;  %13184 = vmatmul.mubr.msk.f32.vlgmr.msra.gmra.mrb[16].mxu0 %vm1446_vm8, %v1258_v2 }
 0x3ae   :  { %13192 = vmatpush3.msra.mxu0 %v625_v3  ;;  %13198 = vmatprep.mubr.msk.f32.mxu1 %vm15383_vm7, %v15371_v24 }
 0x3af   :  { %13206 = vmatprep.subr.mxu1 %v15371_v24  ;;  %13193 = vmatprep.mubr.msk.f32.mxu0 %vm15383_vm7, %v15371_v24 }
 0x3b0   :  { %13201 = vmatprep.subr.mxu0 %v15371_v24 }
 0x3b1   :  { %v15782_v4 = vpop.f32.mrb[14].mxu1 }
 0x3b2   :  { %v15784_v5 = vpop.f32.mrb[15].mxu1 }
 0x45a   :  { %v1595_v8 = vpop.f32.mrb[16].mxu1 }
 0x45b   :  { %v1596_v9 = vadd.f32 %v1595_v8, %v15789_v7  ;;  %v1519_v10 = vpop.f32.mrb[10].mxu0  ;;  %v13160_v43 = vpop.f32.mrb[17].mxu1 }
 0x45c   :  { %v1520_v11 = vadd.f32 %v1519_v10, %v15789_v7  ;;  %v13155_v59 = vpop.f32.mrb[11].mxu0 }
 0x45d   :  { %v2058_v12 = vsel %vm1446_vm8, %v1596_v9, -inf }
 0x45e   :  { %2059 = vmax.xlane.f32.xlu1 %v2058_v12  ;;  %v2055_v19 = vsel %vm1446_vm8, %v1520_v11, -inf }
 0x45f   :  { %2056 = vmax.xlane.f32.xlu0 %v2055_v19 }
 0x467   :  { %v1747_v57 = vpop.f32.mrb[18].mxu1 }
 0x468   :  { %v1671_v20 = vpop.f32.mrb[12].mxu0  ;;  %v13170_v22 = vpop.f32.mrb[19].mxu1  ;;  %v1748_v17 = vadd.f32 %v1747_v57, %v15789_v7 }
 0x469   :  { %v1672_v23 = vadd.f32 %v1671_v20, %v15789_v7  ;;  %v13165_v25 = vpop.f32.mrb[13].mxu0 }
 0x46a   :  { %v2064_v30 = vsel %vm1446_vm8, %v1748_v17, -inf }
 0x46b   :  { %v2061_v27 = vsel %vm1446_vm8, %v1672_v23, -inf }
 0x46c   :  { %2062 = vmax.xlane.f32.xlu0 %v2061_v27 }
 0x470   :  { %2065 = vmax.xlane.f32.xlu0 %v2064_v30 }
 0x47a   :  { %v1899_v31 = vpop.f32.mrb[20].mxu1 }
 0x47b   :  { %v1900_v32 = vadd.f32 %v1899_v31, %v15789_v7  ;;  %v1823_v33 = vpop.f32.mrb[14].mxu0  ;;  %v13180_v34 = vpop.f32.mrb[21].mxu1 }
 0x47c   :  { %v1824_v35 = vadd.f32 %v1823_v33, %v15789_v7  ;;  %v13175_v36 = vpop.f32.mrb[15].mxu0 }
 0x47d   :  { %v2070_v46 = vsel %vm1446_vm8, %v1900_v32, -inf }
 0x47e   :  { %2071 = vmax.xlane.f32.xlu0 %v2070_v46  ;;  %v2067_v47 = vsel %vm1446_vm8, %v1824_v35, -inf }
 0x47f   :  { %v2051_v48 = vpop.f32.mrb[22].mxu1  ;;  %2068 = vmax.xlane.f32.xlu1 %v2067_v47 }
 0x480   :  { %v2052_v49 = vadd.f32 %v2051_v48, %v15789_v7  ;;  %v1975_v50 = vpop.f32.mrb[16].mxu0  ;;  %v13190_v54 = vpop.f32.mrb[23].mxu1 }
 0x481   :  { %v1976_v55 = vadd.f32 %v1975_v50, %v15789_v7  ;;  %v13185_v52 = vpop.f32.mrb[17].mxu0 }
 0x482   :  { %v2076_v56 = vsel %vm1446_vm8, %v2052_v49, -inf }
 0x483   :  { %2077 = vmax.xlane.f32.xlu0 %v2076_v56  ;;  %v2073_v51 = vsel %vm1446_vm8, %v1976_v55, -inf }
 0x484   :  { %2074 = vmax.xlane.f32.xlu1 %v2073_v51 }
 0x495   :  { %828 = vrot.lane.b32.xlu1 %v15760_v60, %s15379_s20 }
 0x4eb   :  { %v2060_v61 = vpop.xlane.xlu1 %2059 }
 0x4ec   :  { %v2080_v62 = vsub.f32 %v1596_v9, %v2060_v61  ;;  %v2057_v63 = vpop.xlane.xlu0 %2056 }
 0x4ed   :  { %v2079_v0 = vsub.f32 %v1520_v11, %v2057_v63 }
 0x4ee   :  { %v2089_v58 = vmul.f32 1.442695, %v2080_v62 }
 0x4ef   :  { %v2087_v1 = vmul.f32 1.442695, %v2079_v0 }
 0x4f0   :  { %15209 = vpow2.f32 %v2089_v58 }
 0x4f1   :  { %15211 = vpow2.f32 %v2087_v1 }
 0x4f9   :  { %v2063_v2 = vpop.xlane.xlu0 %2062 }
 0x4fa   :  { %v15210_v3 = vpop.eup %15209  ;;  %v2081_v8 = vsub.f32 %v1672_v23, %v2063_v2 }
 0x4fb   :  { %v15212_v10 = vpop.eup %15211  ;;  %v2106_v43 = vsel %vm1446_vm8, %v15210_v3, 0.0 }
 0x4fc   :  { %v2091_v59 = vmul.f32 1.442695, %v2081_v8  ;;  %2107 = vadd.xlane.f32.xlu0 %v2106_v43  ;;  %v2103_v12 = vsel %vm1446_vm8, %v15212_v10, 0.0 }
 0x4fd   :  { %v2066_v19 = vpop.xlane.xlu0 %2065  ;;  %2104 = vadd.xlane.f32.xlu1 %v2103_v12 }
 0x4fe   :  { %15213 = vpow2.f32 %v2091_v59  ;;  %v2082_v9 = vsub.f32 %v1748_v17, %v2066_v19 }
 0x500   :  { %v2093_v57 = vmul.f32 1.442695, %v2082_v9 }
 0x502   :  { %15215 = vpow2.f32 %v2093_v57 }
 0x508   :  { %v15811_v11 = vpop.eup %15213 }
 0x509   :  { %v2109_v20 = vsel %vm1446_vm8, %v15811_v11, 0.0 }
 0x50a   :  { %2110 = vadd.xlane.f32.xlu1 %v2109_v20 }
 0x50b   :  { %v2072_v22 = vpop.xlane.xlu0 %2071 }
 0x50c   :  { %v15815_v23 = vpop.eup %15215  ;;  %v2084_v25 = vsub.f32 %v1900_v32, %v2072_v22  ;;  %v2069_v27 = vpop.xlane.xlu1 %2068 }
 0x50d   :  { %v2083_v30 = vsub.f32 %v1824_v35, %v2069_v27  ;;  %v2112_v31 = vsel %vm1446_vm8, %v15815_v23, 0.0 }
 0x50e   :  { %v2097_v33 = vmul.f32 1.442695, %v2084_v25  ;;  %2113 = vadd.xlane.f32.xlu0 %v2112_v31 }
 0x50f   :  { %v2095_v17 = vmul.f32 1.442695, %v2083_v30 }
 0x510   :  { %15217 = vpow2.f32 %v2097_v33  ;;  %v2078_v34 = vpop.xlane.xlu0 %2077 }
 0x511   :  { %15219 = vpow2.f32 %v2095_v17  ;;  %v2086_v36 = vsub.f32 %v2052_v49, %v2078_v34  ;;  %v2075_v46 = vpop.xlane.xlu1 %2074 }
 0x512   :  { %v2085_v47 = vsub.f32 %v1976_v55, %v2075_v46 }
 0x513   :  { %v2101_v48 = vmul.f32 1.442695, %v2086_v36 }
 0x514   :  { %v2099_v50 = vmul.f32 1.442695, %v2085_v47 }
 0x515   :  { %15221 = vpow2.f32 %v2101_v48  ;;  %v829_v61 = vpop.permute.xlu1 %828 }
 0x516   :  { %15223 = vpow2.f32 %v2099_v50  ;;  %v903_v1 = vadd.f32 %v15747_v39, %v829_v61  ;;  %v898_v2 = vadd.f32 %v15749_v40, %v829_v61 }
 0x51a   :  { %v15819_v54 = vpop.eup %15217 }
 0x51b   :  { %v15821_v32 = vpop.eup %15219  ;;  %v2118_v35 = vsel %vm1446_vm8, %v15819_v54, 0.0 }
 0x51c   :  { %2119 = vadd.xlane.f32.xlu0 %v2118_v35  ;;  %v2115_v52 = vsel %vm1446_vm8, %v15821_v32, 0.0 }
 0x51d   :  { %2116 = vadd.xlane.f32.xlu1 %v2115_v52 }
 0x51f   :  { %v15827_v56 = vpop.eup %15221 }
 0x520   :  { %v15829_v49 = vpop.eup %15223  ;;  %v2124_v55 = vsel %vm1446_vm8, %v15827_v56, 0.0 }
 0x521   :  { %2125 = vadd.xlane.f32.xlu0 %v2124_v55  ;;  %v2121_v51 = vsel %vm1446_vm8, %v15829_v49, 0.0 }
 0x522   :  { %2122 = vadd.xlane.f32.xlu1 %v2121_v51 }
 0x533   :  { %1368 = vrot.lane.b32.xlu1 %v15760_v60, %s15377_s18 }
 0x537   :  { %1098 = vrot.lane.b32.xlu0 %v15760_v60, %s15375_s16  ;;  %2727 = vrot.lane.b32.xlu1 %v15498_v41, %s15385_s26 }
 0x53b   :  { %2817 = vrot.lane.b32.xlu0 %v15503_v42, %s15385_s26  ;;  %2903 = vrot.lane.b32.xlu1 %v15514_v44, %s15385_s26 }
 0x53f   :  { %2989 = vrot.lane.b32.xlu0 %v15519_v45, %s15385_s26 }
 0x589   :  { %v2108_v62 = vpop.xlane.xlu0 %2107 }
 0x58a   :  { %15225 = vrcp.f32 %v2108_v62  ;;  %v2105_v63 = vpop.xlane.xlu1 %2104 }
 0x58b   :  { %15227 = vrcp.f32 %v2105_v63  ;;  %v15892_v63 = vsub.s32 5, %v15594_v13 }
 0x594   :  { %v15226_v0 = vpop.eup %15225 }
 0x595   :  { %v15228_v60 = vpop.eup %15227  ;;  %v2136_v58 = vmul.f32 %v15226_v0, %v15210_v3  ;;  %v2814_v0 = vrot.slane %v15605_v16, %v15892_v63 }
 0x596   :  { %v2135_v41 = vmul.f32 %v15228_v60, %v15212_v10 }
 0x597   :  { %13199 = vmatmul.mubr.msk.f32.vlgmr.msra.gmra.mrb[24].mxu1 %vm1446_vm8, %v2136_v58  ;;  %v2111_v42 = vpop.xlane.xlu1 %2110 }
 0x598   :  { %13207 = vmatpush3.msra.mxu1 %v903_v1  ;;  %15229 = vrcp.f32 %v2111_v42  ;;  %13194 = vmatmul.mubr.msk.f32.vlgmr.msra.gmra.mrb[18].mxu0 %vm1446_vm8, %v2135_v41 }
 0x599   :  { %13202 = vmatpush3.msra.mxu0 %v898_v2  ;;  %13203 = vmatprep.mubr.msk.f32.mxu0 %vm15383_vm7, %v15371_v24 }
 0x59a   :  { %13208 = vmatprep.mubr.msk.f32.mxu1 %vm15383_vm7, %v15371_v24  ;;  %13211 = vmatprep.subr.mxu0 %v15371_v24 }
 0x59b   :  { %v2114_v44 = vpop.xlane.xlu0 %2113  ;;  %13216 = vmatprep.subr.mxu1 %v15371_v24 }
 0x59c   :  { %15231 = vrcp.f32 %v2114_v44 }
 0x5a2   :  { %v15230_v45 = vpop.eup %15229 }
 0x5a3   :  { %v2137_v39 = vmul.f32 %v15230_v45, %v15811_v11 }
 0x5a5   :  { %13204 = vmatmul.mubr.msk.f32.vlgmr.msra.gmra.mrb[20].mxu0 %vm1446_vm8, %v2137_v39 }
 0x5a6   :  { %v15232_v40 = vpop.eup %15231  ;;  %13213 = vmatprep.mubr.msk.f32.mxu0 %vm15383_vm7, %v15371_v24 }
 0x5a7   :  { %v2138_v3 = vmul.f32 %v15232_v40, %v15815_v23 }
 0x5a9   :  { %v2120_v8 = vpop.xlane.xlu0 %2119  ;;  %13209 = vmatmul.mubr.msk.f32.vlgmr.msra.gmra.mrb[26].mxu1 %vm1446_vm8, %v2138_v3 }
 0x5aa   :  { %15233 = vrcp.f32 %v2120_v8  ;;  %v2117_v10 = vpop.xlane.xlu1 %2116  ;;  %13218 = vmatprep.mubr.msk.f32.mxu1 %vm15383_vm7, %v15371_v24 }
 0x5ab   :  { %15235 = vrcp.f32 %v2117_v10 }
 0x5ae   :  { %v2126_v43 = vpop.xlane.xlu0 %2125 }
 0x5af   :  { %15237 = vrcp.f32 %v2126_v43  ;;  %v2123_v59 = vpop.xlane.xlu1 %2122 }
 0x5b0   :  { %15239 = vrcp.f32 %v2123_v59 }
 0x5b2   :  { %v1099_v12 = vpop.permute.xlu0 %1098 }
 0x5b3   :  { %v1168_v19 = vadd.f32 %v15738_v18, %v1099_v12  ;;  %v1173_v9 = vadd.f32 %v15733_v26, %v1099_v12  ;;  %v1369_v57 = vpop.permute.xlu1 %1368  ;;  %v15921_v12 = vld [vmem:[%s17289_s2 + $0x8] sm:$0xff] }
 0x5b4   :  { %v15234_v11 = vpop.eup %15233  ;;  %v1443_v20 = vadd.f32 %v15782_v4, %v1369_v57  ;;  %v1438_v27 = vadd.f32 %v15784_v5, %v1369_v57  ;;  %v15933_v57 = vld [vmem:[%s17289_s2 + $0x38] sm:$0xff] }
 0x5b5   :  { %v15236_v22 = vpop.eup %15235  ;;  %13212 = vmatpush3.msra.mxu0 %v1168_v19  ;;  %13217 = vmatpush3.msra.mxu1 %v1173_v9  ;;  %v2140_v23 = vmul.f32 %v15234_v11, %v15819_v54  ;;  %v15926_v19 = vld [vmem:[%s17289_s2 + $0x20] sm:$0xff]  ;;  %v15938_v11 = vld [vmem:[%s17289_s2 + $0x50] sm:$0xff] }
 0x5b6   :  { %13226 = vmatprep.subr.mxu1 %v15371_v24  ;;  %13221 = vmatprep.subr.mxu0 %v15371_v24  ;;  %v2139_v25 = vmul.f32 %v15236_v22, %v15821_v32  ;;  %v2818_v31 = vpop.permute.xlu0 %2817  ;;  %v14880_v9 = vpack.i.bf16 %v15926_v19, %v15921_v12  ;;  %v14254_v22 = vpack.c.bf16 %v15926_v19, %v15921_v12 }
 0x5b7   :  { %13219 = vmatmul.mubr.msk.f32.vlgmr.msra.gmra.mrb[28].mxu1 %vm1446_vm8, %v2140_v23  ;;  %v2728_v5 = vpop.permute.xlu1 %2727  ;;  %v15953_v23 = vld [vmem:[%s17291_s1] sm:$0xff] }
 0x5b8   :  { %13227 = vmatpush3.msra.mxu1 %v1443_v20  ;;  %13214 = vmatmul.mubr.msk.f32.vlgmr.msra.gmra.mrb[22].mxu0 %vm1446_vm8, %v2139_v25  ;;  %v14885_v20 = vpack.i.bf16 %v15938_v11, %v15933_v57  ;;  %v14258_v25 = vpack.c.bf16 %v15938_v11, %v15933_v57 }
 0x5b9   :  { %v15238_v26 = vpop.eup %15237  ;;  %13222 = vmatpush3.msra.mxu0 %v1438_v27  ;;  %13228 = vmatprep.mubr.msk.f32.mxu1 %vm15383_vm7, %v15371_v24  ;;  %v15976_v27 = vld [vmem:[%s17290_s4 + $0x8] sm:$0xff] }
 0x5ba   :  { %v15240_v18 = vpop.eup %15239  ;;  %13223 = vmatprep.mubr.msk.f32.mxu0 %vm15383_vm7, %v15371_v24  ;;  %v2142_v4 = vmul.f32 %v15238_v26, %v15827_v56  ;;  %13231 = vmatprep.subr.mxu0 %v2728_v5  ;;  %v2990_v54 = vpop.permute.xlu0 %2989  ;;  %v15981_v26 = vrot.slane %v15976_v27, %v15631_v29 }
 0x5bb   :  { %v2141_v30 = vmul.f32 %v15240_v18, %v15829_v49  ;;  %v2904_v46 = vpop.permute.xlu1 %2903  ;;  %14255 = vmatprep.subr.bf16.mxu1 %v14254_v22  ;;  %v15988_v18 = vrot.slane %v15976_v27, %v15628_v28 }
 0x5bc   :  { %13229 = vmatmul.mubr.msk.f32.vlgmr.msra.gmra.mrb[30].mxu1 %vm1446_vm8, %v2142_v4 }
 0x5bd   :  { %13224 = vmatmul.mubr.msk.f32.vlgmr.msra.gmra.mrb[24].mxu0 %vm1446_vm8, %v2141_v30  ;;  %14257 = vmatpush3.bf16.msra.mxu1 %v14254_v22 }
 0x5be   :  { %13232 = vmatpush3.msra.mxu0 %v2728_v5  ;;  %14259 = vmatprep.subr.bf16.mxu1 %v14258_v25 }
 0x5bf   :  { %13236 = vmatprep.subr.mxu0 %v2818_v31 }
 0x5c1   :  { %14261 = vmatpush3.bf16.msra.mxu1 %v14258_v25 }
 0x66a   :  { %v2285_v33 = vpop.f32.mrb[24].mxu1 }
 0x66b   :  { %v2212_v17 = vpop.f32.mrb[18].mxu0  ;;  %v13200_v34 = vpop.f32.mrb[25].mxu1 }
 0x66c   :  { %v13195_v36 = vpop.f32.mrb[19].mxu0  ;;  %13233 = vmatprep.mubr.msk.f32.mxu0 %vm1446_vm8, %v2212_v17 }
 0x66d   :  { %13234 = vmatmul.mubr.msk.f32.vlgmr.msra.gmra.mrb[26].mxu0 %vm1446_vm8, %v2285_v33 }
 0x66e   :  { %13237 = vmatpush3.msra.mxu0 %v2818_v31 }
 0x66f   :  { %13241 = vmatprep.subr.mxu0 %v2904_v46 }
 0x678   :  { %v2358_v47 = vpop.f32.mrb[20].mxu0 }
 0x679   :  { %v13205_v48 = vpop.f32.mrb[21].mxu0  ;;  %13238 = vmatprep.mubr.msk.f32.mxu0 %vm1446_vm8, %v2358_v47 }
 0x67c   :  { %v2431_v50 = vpop.f32.mrb[26].mxu1 }
 0x67d   :  { %v13210_v32 = vpop.f32.mrb[27].mxu1  ;;  %13239 = vmatmul.mubr.msk.f32.vlgmr.msra.gmra.mrb[26].mxu0 %vm1446_vm8, %v2431_v50 }
 0x67e   :  { %13242 = vmatpush3.msra.mxu0 %v2904_v46 }
 0x67f   :  { %13246 = vmatprep.subr.mxu0 %v2990_v54 }
 0x68a   :  { %v2577_v35 = vpop.f32.mrb[28].mxu1 }
 0x68b   :  { %v2504_v52 = vpop.f32.mrb[22].mxu0  ;;  %v13220_v56 = vpop.f32.mrb[29].mxu1 }
 0x68c   :  { %v13215_v49 = vpop.f32.mrb[23].mxu0  ;;  %13243 = vmatprep.mubr.msk.f32.mxu0 %vm1446_vm8, %v2504_v52 }
 0x68d   :  { %13244 = vmatmul.mubr.msk.f32.vlgmr.msra.gmra.mrb[26].mxu0 %vm1446_vm8, %v2577_v35 }
 0x68e   :  { %13247 = vmatpush3.msra.mxu0 %v2990_v54 }
 0x68f   :  { %v2723_v55 = vpop.f32.mrb[30].mxu1 }
 0x690   :  { %v2650_v51 = vpop.f32.mrb[24].mxu0  ;;  %v13230_v61 = vpop.f32.mrb[31].mxu1 }
 0x691   :  { %v13225_v62 = vpop.f32.mrb[25].mxu0  ;;  %13248 = vmatprep.mubr.msk.f32.mxu0 %vm1446_vm8, %v2650_v51 }
 0x695   :  { %13249 = vmatmul.mubr.msk.f32.vlgmr.msra.gmra.mrb[26].mxu0 %vm1446_vm8, %v2723_v55  ;;  %v16001_v55 = vsub.s32 6, %v15594_v13 }
 0x696   :  { %13284 = vmatprep.mubr.msk.f32.mxu0 %vm322_vm6, %v15953_v23 }
 0x768   :  { %v13250_v60 = vpop.f32.mrb[26].mxu0 }
 0x769   :  { %v14710_v58 = vadd.f32 %v13250_v60, %v2814_v0  ;;  %v3064_v1 = vpop.f32.mrb[27].mxu0 }
 0x76a   :  { %v14711_v41 = vadd.f32 %v3064_v1, %v2814_v0  ;;  %v16004_v0 = vsub.s32 7, %v15594_v13  ;;  %v15361_v1 = vld [vmem:[%s17290_s4] sm:$0xff] }
 0x76b   :  { %v15897_v2 = vadd.f32 %v14710_v58, %v15487_v37 }
 0x76c   :  { %v15900_v42 = vadd.f32 %v14711_v41, %v15489_v38  ;;  %v3106_v41 = vrot.slane %v15361_v1, %v16001_v55 }
 0x76d   :  { %v3080_v44 = vsel %vm322_vm6, %v15897_v2, 0.0 }
 0x76e   :  { %3081 = vadd.xlane.f32.xlu0 %v3080_v44  ;;  %v3077_v45 = vsel %vm322_vm6, %v15900_v42, 0.0 }
 0x76f   :  { %3078 = vadd.xlane.f32.xlu1 %v3077_v45  ;;  %v16013_v45 = vld [vmem:[%s17291_s1 + $0x8] sm:$0xff] }
 0x7fb   :  { %v3082_v39 = vpop.xlane.xlu0 %3081 }
 0x7fc   :  { %v3084_v16 = vmul.f32 0.03125, %v3082_v39  ;;  %v3079_v40 = vpop.xlane.xlu1 %3078 }
 0x7fd   :  { %v3083_v3 = vmul.f32 0.03125, %v3079_v40 }
 0x7fe   :  { %v15907_v8 = vsub.f32 %v15897_v2, %v3084_v16 }
 0x7ff   :  { %v15910_v37 = vsub.f32 %v15900_v42, %v3083_v3  ;;  %v16019_v3 = vld [vmem:[%s17291_s1 + $0x10] sm:$0xff] }
 0x800   :  { %v3088_v38 = vmul.f32 %v15907_v8, %v15907_v8 }
 0x801   :  { %v3087_v10 = vmul.f32 %v15910_v37, %v15910_v37 }
 0x802   :  { %v3092_v43 = vsel %vm322_vm6, %v3088_v38, 0.0 }
 0x803   :  { %3093 = vadd.xlane.f32.xlu1 %v3092_v43  ;;  %v3089_v59 = vsel %vm322_vm6, %v3087_v10, 0.0 }
 0x804   :  { %3090 = vadd.xlane.f32.xlu0 %v3089_v59  ;;  %v3112_v59 = vrot.slane %v15361_v1, %v16004_v0 }
 0x814   :  { %14881 = vrot.lane.b32.xlu1 %v14880_v9, %s15373_s0 }
 0x818   :  { %14886 = vrot.lane.b32.xlu1 %v14885_v20, %s15372_s10 }
 0x81a   :  { %14876 = vrot.lane.b32.xlu0 %v14880_v9, %s15372_s10 }
 0x81c   :  { %14896 = vrot.lane.b32.xlu1 %v14880_v9, %s15379_s20 }
 0x81e   :  { %14891 = vrot.lane.b32.xlu0 %v14885_v20, %s15373_s0 }
 0x820   :  { %14906 = vrot.lane.b32.xlu1 %v14885_v20, %s15379_s20 }
 0x822   :  { %14901 = vrot.lane.b32.xlu0 %v14880_v9, %s15374_s15 }
 0x824   :  { %14916 = vrot.lane.b32.xlu1 %v14880_v9, %s15380_s21 }
 0x826   :  { %14911 = vrot.lane.b32.xlu0 %v14885_v20, %s15374_s15 }
 0x828   :  { %14926 = vrot.lane.b32.xlu1 %v14885_v20, %s15380_s21 }
 0x82a   :  { %14921 = vrot.lane.b32.xlu0 %v14880_v9, %s15375_s16 }
 0x82c   :  { %14936 = vrot.lane.b32.xlu1 %v14880_v9, %s15381_s22 }
 0x82e   :  { %14931 = vrot.lane.b32.xlu0 %v14885_v20, %s15375_s16 }
 0x830   :  { %14946 = vrot.lane.b32.xlu1 %v14885_v20, %s15381_s22 }
 0x832   :  { %14941 = vrot.lane.b32.xlu0 %v14880_v9, %s15376_s17 }
 0x834   :  { %14956 = vrot.lane.b32.xlu1 %v14880_v9, %s15382_s23 }
 0x836   :  { %14951 = vrot.lane.b32.xlu0 %v14885_v20, %s15376_s17 }
 0x838   :  { %14966 = vrot.lane.b32.xlu1 %v14880_v9, %s15377_s18 }
 0x83a   :  { %14961 = vrot.lane.b32.xlu0 %v14885_v20, %s15382_s23 }
 0x83c   :  { %14976 = vrot.lane.b32.xlu1 %v14880_v9, %s15378_s19 }
 0x83e   :  { %14971 = vrot.lane.b32.xlu0 %v14885_v20, %s15377_s18 }
 0x840   :  { %3522 = vrot.lane.b32.xlu1 %v15981_v26, %s15379_s20 }
 0x842   :  { %14981 = vrot.lane.b32.xlu0 %v14885_v20, %s15378_s19 }
 0x844   :  { %3431 = vrot.lane.b32.xlu1 %v15988_v18, %s15379_s20 }
 0x846   :  { %3813 = vrot.lane.b32.xlu0 %v15981_v26, %s15375_s16 }
 0x848   :  { %3723 = vrot.lane.b32.xlu1 %v15988_v18, %s15375_s16 }
 0x84a   :  { %4103 = vrot.lane.b32.xlu0 %v15981_v26, %s15377_s18 }
 0x84e   :  { %4013 = vrot.lane.b32.xlu0 %v15988_v18, %s15377_s18 }
 0x890   :  { %v3094_v4 = vpop.xlane.xlu1 %3093 }
 0x891   :  { %v3096_v30 = vmul.f32 0.03125, %v3094_v4  ;;  %v3091_v5 = vpop.xlane.xlu0 %3090  ;;  %v16030_v4 = vld [vmem:[%s17291_s1 + $0x18] sm:$0xff] }
 0x892   :  { %v3095_v31 = vmul.f32 0.03125, %v3091_v5 }
 0x893   :  { %v3098_v33 = vadd.f32 1e-05, %v3096_v30 }
 0x894   :  { %v3097_v17 = vadd.f32 1e-05, %v3095_v31  ;;  %v14882_v34 = vpop.permute.xlu1 %14881 }
 0x895   :  { %15241 = vrsqrt.f32 %v3098_v33  ;;  %v14877_v36 = vpop.permute.xlu0 %14876  ;;  %v14884_v46 = vunpack.i.h.bf16 %v14882_v34  ;;  %v14883_v47 = vunpack.i.l.bf16 %v14882_v34 }
 0x896   :  { %15243 = vrsqrt.f32 %v3097_v17  ;;  %v14879_v48 = vunpack.i.h.bf16 %v14877_v36  ;;  %v14878_v50 = vunpack.i.l.bf16 %v14877_v36 }
 0x897   :  { %v14270_v54 = vpack.c.bf16 %v14884_v46, %v14883_v47 }
 0x898   :  { %v14887_v32 = vpop.permute.xlu1 %14886  ;;  %v14262_v35 = vpack.c.bf16 %v14879_v48, %v14878_v50 }
 0x899   :  { %v14892_v52 = vpop.permute.xlu0 %14891  ;;  %14271 = vmatprep.subr.bf16.mxu0 %v14270_v54  ;;  %v14888_v25 = vunpack.i.l.bf16 %v14887_v32 }
 0x89a   :  { %v14894_v56 = vunpack.i.h.bf16 %v14892_v52  ;;  %v14893_v49 = vunpack.i.l.bf16 %v14892_v52  ;;  %14273 = vmatpush3.bf16.msra.mxu0 %v14270_v54  ;;  %14263 = vmatprep.subr.bf16.mxu1 %v14262_v35 }
 0x89c   :  { %v14274_v51 = vpack.c.bf16 %v14894_v56, %v14893_v49  ;;  %v14897_v61 = vpop.permute.xlu1 %14896 }
 0x89d   :  { %v14902_v62 = vpop.permute.xlu0 %14901  ;;  %v14899_v46 = vunpack.i.h.bf16 %v14897_v61  ;;  %v14898_v47 = vunpack.i.l.bf16 %v14897_v61 }
 0x89e   :  { %v14904_v60 = vunpack.i.h.bf16 %v14902_v62  ;;  %v14903_v58 = vunpack.i.l.bf16 %v14902_v62  ;;  %14275 = vmatprep.subr.bf16.mxu0 %v14274_v51 }
 0x89f   :  { %v15242_v44 = vpop.eup %15241  ;;  %14277 = vmatpush3.bf16.msra.mxu0 %v14274_v51  ;;  %v14278_v61 = vpack.c.bf16 %v14899_v46, %v14898_v47 }
 0x8a0   :  { %v15244_v39 = vpop.eup %15243  ;;  %v3102_v16 = vmul.f32 %v15242_v44, %v15907_v8  ;;  %v14286_v40 = vpack.c.bf16 %v14904_v60, %v14903_v58  ;;  %v14907_v38 = vpop.permute.xlu1 %14906  ;;  %v14889_v8 = vunpack.i.h.bf16 %v14887_v32 }
 0x8a1   :  { %v14912_v10 = vpop.permute.xlu0 %14911  ;;  %v3101_v43 = vmul.f32 %v15244_v39, %v15910_v37  ;;  %v14909_v52 = vunpack.i.h.bf16 %v14907_v38  ;;  %v14908_v56 = vunpack.i.l.bf16 %v14907_v38 }
 0x8a2   :  { %v14914_v9 = vunpack.i.h.bf16 %v14912_v10  ;;  %v14913_v20 = vunpack.i.l.bf16 %v14912_v10  ;;  %13285 = vmatmul.mubr.msk.f32.vlgmr.msra.gmra.mrb[28].mxu0 %vm322_vm6, %v16013_v45  ;;  %14287 = vmatprep.subr.bf16.mxu0 %v14286_v40  ;;  %v3108_v22 = vmul.f32 %v3106_v41, %v3102_v16  ;;  %v14266_v48 = vpack.c.bf16 %v14889_v8, %v14888_v25 }
 0x8a3   :  { %14289 = vmatpush3.bf16.msra.mxu0 %v14286_v40  ;;  %13287 = vmatprep.mubr.msk.f32.mxu0 %vm322_vm6, %v16019_v3  ;;  %v3107_v37 = vmul.f32 %v3106_v41, %v3101_v43  ;;  %v14282_v60 = vpack.c.bf16 %v14909_v52, %v14908_v56 }
 0x8a4   :  { %v14290_v30 = vpack.c.bf16 %v14914_v9, %v14913_v20  ;;  %v14917_v5 = vpop.permute.xlu1 %14916  ;;  %v16036_v36 = vadd.f32 %v3112_v59, %v3108_v22 }
 0x8a5   :  { %v14922_v31 = vpop.permute.xlu0 %14921  ;;  %v16032_v33 = vadd.f32 %v3112_v59, %v3107_v37  ;;  %v14919_v1 = vunpack.i.h.bf16 %v14917_v5  ;;  %v14918_v41 = vunpack.i.l.bf16 %v14917_v5 }
 0x8a6   :  { %v14924_v17 = vunpack.i.h.bf16 %v14922_v31  ;;  %v14923_v34 = vunpack.i.l.bf16 %v14922_v31  ;;  %13288 = vmatmul.mubr.msk.f32.gmra.mrb[30].mxu0 %vm322_vm6, %v16030_v4  ;;  %14291 = vmatprep.subr.bf16.mxu0 %v14290_v30 }
 0x8a7   :  { %13259 = vmatprep.mubr.msk.f32.mxu1 %vm322_vm6, %v16032_v33  ;;  %14293 = vmatpush3.bf16.msra.mxu0 %v14290_v30  ;;  %v14294_v59 = vpack.c.bf16 %v14919_v1, %v14918_v41 }
 0x8a8   :  { %13260 = vmatmul.mubr.msk.f32.vlgmr.msra.gmra.mrb[32].mxu1 %vm322_vm6, %v16036_v36  ;;  %13309 = vmatprep.mubr.msk.f32.mxu0 %vm322_vm6, %v15953_v23  ;;  %v14302_v50 = vpack.c.bf16 %v14924_v17, %v14923_v34  ;;  %v14927_v54 = vpop.permute.xlu1 %14926 }
 0x8a9   :  { %14265 = vmatpush3.bf16.msra.mxu1 %v14262_v35  ;;  %v14932_v32 = vpop.permute.xlu0 %14931  ;;  %13270 = vmatprep.mubr.msk.f32.mxu1 %vm322_vm6, %v15953_v23  ;;  %v14929_v38 = vunpack.i.h.bf16 %v14927_v54  ;;  %v14928_v10 = vunpack.i.l.bf16 %v14927_v54 }
 0x8aa   :  { %v14934_v49 = vunpack.i.h.bf16 %v14932_v32  ;;  %v14933_v51 = vunpack.i.l.bf16 %v14932_v32  ;;  %13310 = vmatmul.mubr.msk.f32.vlgmr.msra.gmra.mrb[32].mxu0 %vm322_vm6, %v16013_v45  ;;  %14303 = vmatprep.subr.bf16.mxu0 %v14302_v50 }
 0x8ab   :  { %14267 = vmatprep.subr.bf16.mxu1 %v14266_v48  ;;  %14305 = vmatpush3.bf16.msra.mxu0 %v14302_v50  ;;  %v14298_v25 = vpack.c.bf16 %v14929_v38, %v14928_v10 }
 0x8ac   :  { %13312 = vmatprep.mubr.msk.f32.mxu0 %vm322_vm6, %v16019_v3  ;;  %v14306_v62 = vpack.c.bf16 %v14934_v49, %v14933_v51  ;;  %v14937_v35 = vpop.permute.xlu1 %14936 }
 0x8ad   :  { %14269 = vmatpush3.bf16.msra.mxu1 %v14266_v48  ;;  %v14942_v58 = vpop.permute.xlu0 %14941  ;;  %v14939_v31 = vunpack.i.h.bf16 %v14937_v35  ;;  %v14938_v17 = vunpack.i.l.bf16 %v14937_v35 }
 0x8ae   :  { %13313 = vmatmul.mubr.msk.f32.gmra.mrb[34].mxu0 %vm322_vm6, %v16030_v4  ;;  %14307 = vmatprep.subr.bf16.mxu0 %v14306_v62  ;;  %v14944_v44 = vunpack.i.h.bf16 %v14942_v58  ;;  %v14943_v39 = vunpack.i.l.bf16 %v14942_v58 }
 0x8af   :  { %14279 = vmatprep.subr.bf16.mxu1 %v14278_v61  ;;  %14309 = vmatpush3.bf16.msra.mxu0 %v14306_v62  ;;  %v14310_v32 = vpack.c.bf16 %v14939_v31, %v14938_v17 }
 0x8b0   :  { %13271 = vmatmul.mubr.msk.f32.vlgmr.msra.gmra.mrb[34].mxu1 %vm322_vm6, %v16013_v45  ;;  %13337 = vmatprep.mubr.msk.f32.mxu0 %vm322_vm6, %v16032_v33  ;;  %v14947_v16 = vpop.permute.xlu1 %14946  ;;  %v14318_v40 = vpack.c.bf16 %v14944_v44, %v14943_v39 }
 0x8b1   :  { %14281 = vmatpush3.bf16.msra.mxu1 %v14278_v61  ;;  %13273 = vmatprep.mubr.msk.f32.mxu1 %vm322_vm6, %v16019_v3  ;;  %v14952_v43 = vpop.permute.xlu0 %14951  ;;  %v14949_v50 = vunpack.i.h.bf16 %v14947_v16  ;;  %v14948_v54 = vunpack.i.l.bf16 %v14947_v16 }
 0x8b2   :  { %13338 = vmatmul.mubr.msk.f32.vlgmr.msra.gmra.mrb[36].mxu0 %vm322_vm6, %v16036_v36  ;;  %14283 = vmatprep.subr.bf16.mxu1 %v14282_v60  ;;  %v14954_v9 = vunpack.i.h.bf16 %v14952_v43  ;;  %v14953_v20 = vunpack.i.l.bf16 %v14952_v43 }
 0x8b3   :  { %14319 = vmatprep.subr.bf16.mxu0 %v14318_v40  ;;  %13362 = vmatprep.mubr.msk.f32.mxu0 %vm322_vm6, %v15953_v23  ;;  %v14314_v51 = vpack.c.bf16 %v14949_v50, %v14948_v54 }
 0x8b4   :  { %13274 = vmatmul.mubr.msk.f32.gmra.mrb[36].mxu1 %vm322_vm6, %v16030_v4  ;;  %v14957_v22 = vpop.permute.xlu1 %14956  ;;  %14321 = vmatpush3.bf16.msra.mxu0 %v14318_v40  ;;  %v14322_v8 = vpack.c.bf16 %v14954_v9, %v14953_v20 }
 0x8b5   :  { %14285 = vmatpush3.bf16.msra.mxu1 %v14282_v60  ;;  %13298 = vmatprep.mubr.msk.f32.mxu1 %vm322_vm6, %v16032_v33  ;;  %v14959_v37 = vunpack.i.h.bf16 %v14957_v22  ;;  %v14958_v30 = vunpack.i.l.bf16 %v14957_v22  ;;  %v14962_v5 = vpop.permute.xlu0 %14961 }
 0x8b6   :  { %14295 = vmatprep.subr.bf16.mxu1 %v14294_v59  ;;  %v14964_v34 = vunpack.i.h.bf16 %v14962_v5  ;;  %v14963_v46 = vunpack.i.l.bf16 %v14962_v5  ;;  %14323 = vmatprep.subr.bf16.mxu0 %v14322_v8 }
 0x8b7   :  { %v14334_v47 = vpack.c.bf16 %v14959_v37, %v14958_v30 }
 0x8b8   :  { %13299 = vmatmul.mubr.msk.f32.vlgmr.msra.gmra.mrb[38].mxu1 %vm322_vm6, %v16036_v36  ;;  %14325 = vmatpush3.bf16.msra.mxu0 %v14322_v8  ;;  %v14338_v48 = vpack.c.bf16 %v14964_v34, %v14963_v46  ;;  %v14967_v52 = vpop.permute.xlu1 %14966 }
 0x8b9   :  { %14297 = vmatpush3.bf16.msra.mxu1 %v14294_v59  ;;  %13323 = vmatprep.mubr.msk.f32.mxu1 %vm322_vm6, %v15953_v23  ;;  %v14969_v56 = vunpack.i.h.bf16 %v14967_v52  ;;  %v14968_v49 = vunpack.i.l.bf16 %v14967_v52  ;;  %v14972_v61 = vpop.permute.xlu0 %14971 }
 0x8ba   :  { %14299 = vmatprep.subr.bf16.mxu1 %v14298_v25  ;;  %14335 = vmatprep.subr.bf16.mxu0 %v14334_v47  ;;  %v14974_v62 = vunpack.i.h.bf16 %v14972_v61  ;;  %v14973_v35 = vunpack.i.l.bf16 %v14972_v61 }
 0x8bb   :  { %13363 = vmatmul.mubr.msk.f32.vlgmr.msra.gmra.mrb[38].mxu0 %vm322_vm6, %v16013_v45  ;;  %v14326_v60 = vpack.c.bf16 %v14969_v56, %v14968_v49 }
 0x8bc   :  { %14337 = vmatpush3.bf16.msra.mxu0 %v14334_v47  ;;  %13365 = vmatprep.mubr.msk.f32.mxu0 %vm322_vm6, %v16019_v3  ;;  %v14330_v58 = vpack.c.bf16 %v14974_v62, %v14973_v35  ;;  %v14977_v1 = vpop.permute.xlu1 %14976 }
 0x8bd   :  { %14301 = vmatpush3.bf16.msra.mxu1 %v14298_v25  ;;  %14339 = vmatprep.subr.bf16.mxu0 %v14338_v48  ;;  %v14979_v41 = vunpack.i.h.bf16 %v14977_v1  ;;  %v14978_v44 = vunpack.i.l.bf16 %v14977_v1  ;;  %v14982_v39 = vpop.permute.xlu0 %14981 }
 0x8be   :  { %14311 = vmatprep.subr.bf16.mxu1 %v14310_v32  ;;  %v14984_v40 = vunpack.i.h.bf16 %v14982_v39  ;;  %v14983_v38 = vunpack.i.l.bf16 %v14982_v39 }
 0x8bf   :  { %13366 = vmatmul.mubr.msk.f32.gmra.mrb[40].mxu0 %vm322_vm6, %v16030_v4  ;;  %v14342_v16 = vpack.c.bf16 %v14979_v41, %v14978_v44 }
 0x8c0   :  { %13324 = vmatmul.mubr.msk.f32.vlgmr.msra.gmra.mrb[40].mxu1 %vm322_vm6, %v16013_v45  ;;  %14341 = vmatpush3.bf16.msra.mxu0 %v14338_v48  ;;  %v14346_v10 = vpack.c.bf16 %v14984_v40, %v14983_v38  ;;  %v3523_v25 = vpop.permute.xlu1 %3522 }
 0x8c1   :  { %14313 = vmatpush3.bf16.msra.mxu1 %v14310_v32  ;;  %13326 = vmatprep.mubr.msk.f32.mxu1 %vm322_vm6, %v16019_v3 }
 0x8c2   :  { %14315 = vmatprep.subr.bf16.mxu1 %v14314_v51  ;;  %13387 = vmatprep.mubr.msk.f32.mxu0 %vm322_vm6, %v15953_v23 }
 0x8c3   :  { %13388 = vmatmul.mubr.msk.f32.vlgmr.msra.gmra.mrb[42].mxu0 %vm322_vm6, %v16013_v45 }
 0x8c4   :  { %13327 = vmatmul.mubr.msk.f32.gmra.mrb[42].mxu1 %vm322_vm6, %v16030_v4  ;;  %13390 = vmatprep.mubr.msk.f32.mxu0 %vm322_vm6, %v16019_v3 }
 0x8c5   :  { %14317 = vmatpush3.bf16.msra.mxu1 %v14314_v51  ;;  %13348 = vmatprep.mubr.msk.f32.mxu1 %vm322_vm6, %v15953_v23 }
 0x8c6   :  { %14327 = vmatprep.subr.bf16.mxu1 %v14326_v60 }
 0x8c7   :  { %13391 = vmatmul.mubr.msk.f32.gmra.mrb[44].mxu0 %vm322_vm6, %v16030_v4 }
 0x8c8   :  { %13349 = vmatmul.mubr.msk.f32.vlgmr.msra.gmra.mrb[44].mxu1 %vm322_vm6, %v16013_v45  ;;  %13411 = vmatprep.mubr.msk.f32.mxu0 %vm15383_vm7, %v15371_v24 }
 0x8c9   :  { %14329 = vmatpush3.bf16.msra.mxu1 %v14326_v60  ;;  %13351 = vmatprep.mubr.msk.f32.mxu1 %vm322_vm6, %v16019_v3 }
 0x8ca   :  { %14331 = vmatprep.subr.bf16.mxu1 %v14330_v58 }
 0x8cc   :  { %13352 = vmatmul.mubr.msk.f32.gmra.mrb[46].mxu1 %vm322_vm6, %v16030_v4 }
 0x8cd   :  { %14333 = vmatpush3.bf16.msra.mxu1 %v14330_v58  ;;  %13376 = vmatprep.mubr.msk.f32.mxu1 %vm322_vm6, %v16032_v33  ;;  %v15386_v33 = vmov 0.0|0.0  }
 0x8ce   :  { %14343 = vmatprep.subr.bf16.mxu1 %v14342_v16  ;;  %14350 = vmatprep.subr.bf16.mxu0 %v15386_v33 }
 0x8d0   :  { %13377 = vmatmul.mubr.msk.f32.vlgmr.msra.gmra.mrb[48].mxu1 %vm322_vm6, %v16036_v36 }
 0x8d1   :  { %13401 = vmatprep.mubr.msk.f32.mxu1 %vm322_vm6, %v15953_v23  ;;  %14345 = vmatpush3.bf16.msra.mxu1 %v14342_v16  ;;  %v16118_v23 = vrot.slane %v15976_v27, %v15600_v15 }
 0x8d2   :  { %14347 = vmatprep.subr.bf16.mxu1 %v14346_v10 }
 0x8d5   :  { %14349 = vmatpush3.bf16.msra.mxu1 %v14346_v10 }
 0x8d6   :  { %14354 = vmatprep.subr.bf16.mxu1 %v15386_v33 }
 0x8d8   :  { %13402 = vmatmul.mubr.msk.f32.vlgmr.msra.gmra.mrb[50].mxu1 %vm322_vm6, %v16013_v45 }
 0x8d9   :  { %13404 = vmatprep.mubr.msk.f32.mxu1 %vm322_vm6, %v16019_v3 }
 0x8dc   :  { %13405 = vmatmul.mubr.msk.f32.gmra.mrb[52].mxu1 %vm322_vm6, %v16030_v4 }
 0x8dd   :  { %13418 = vmatprep.mubr.msk.f32.mxu1 %vm15383_vm7, %v15371_v24 }
 0x975   :  { %v13286_v36 = vpop.f32.mrb[28].mxu0 }
 0x976   :  { %v16121_v45 = vadd.f32 %v13286_v36, %v16118_v23  ;;  %v3399_v43 = vpop.f32.mrb[29].mxu0 }
 0x977   :  { %v16124_v59 = vadd.f32 %v3399_v43, %v16118_v23 }
 0x979   :  { %v14383_v3 = vpack.c.bf16 %v16121_v45, %v16124_v59  ;;  %v13289_v9 = vpop.f32.mrb[30].mxu0 }
 0x97a   :  { %v16129_v4 = vadd.f32 %v13289_v9, %v16118_v23  ;;  %v3409_v20 = vpop.f32.mrb[31].mxu0 }
 0x97b   :  { %v13261_v22 = vpop.f32.mrb[32].mxu1  ;;  %v16132_v27 = vadd.f32 %v3409_v20, %v16118_v23 }
 0x97c   :  { %v3191_v8 = vpop.f32.mrb[33].mxu1  ;;  %v3197_v36 = vadd.f32 %v13261_v22, %v15988_v18 }
 0x97d   :  { %v14386_v37 = vpack.c.bf16 %v16129_v4, %v16132_v27  ;;  %v13311_v30 = vpop.f32.mrb[32].mxu0  ;;  %v3192_v40 = vadd.f32 %v3191_v8, %v15988_v18  ;;  %v288_v27 = vsel %vm287_vm11, 0.0, %v15384_v6 }
 0x97e   :  { %v3597_v5 = vadd.f32 %v13311_v30, %v3523_v25  ;;  %v3591_v31 = vpop.f32.mrb[33].mxu0 }
 0x97f   :  { %v3592_v17 = vadd.f32 %v3591_v31, %v3523_v25 }
 0x981   :  { %v14359_v34 = vpack.c.bf16 %v3597_v5, %v3592_v17  ;;  %v13314_v46 = vpop.f32.mrb[34].mxu0 }
 0x982   :  { %v3607_v47 = vadd.f32 %v13314_v46, %v3523_v25  ;;  %v3601_v48 = vpop.f32.mrb[35].mxu0 }
 0x983   :  { %v13272_v50 = vpop.f32.mrb[34].mxu1  ;;  %v3602_v54 = vadd.f32 %v3601_v48, %v3523_v25  ;;  %v3432_v25 = vpop.permute.xlu1 %3431 }
 0x984   :  { %v3304_v32 = vadd.f32 %v13272_v50, %v15981_v26  ;;  %v3298_v52 = vpop.f32.mrb[35].mxu1 }
 0x985   :  { %v3299_v56 = vadd.f32 %v3298_v52, %v15981_v26  ;;  %v14363_v49 = vpack.c.bf16 %v3607_v47, %v3602_v54  ;;  %v16138_v51 = vpop.f32.mrb[36].mxu0 }
 0x986   :  { %v16140_v61 = vpop.f32.mrb[37].mxu0 }
 0x987   :  { %v14351_v35 = vpack.c.bf16 %v3304_v32, %v3299_v56  ;;  %v13275_v60 = vpop.f32.mrb[36].mxu1 }
 0x988   :  { %v3314_v58 = vadd.f32 %v13275_v60, %v15981_v26  ;;  %v3308_v1 = vpop.f32.mrb[37].mxu1 }
 0x989   :  { %v3309_v41 = vadd.f32 %v3308_v1, %v15981_v26  ;;  %14353 = vmatpush3.bf16.xpose.msk.msra.mxu0 %vm16144_vm10, %v14351_v35  ;;  %v3814_v26 = vpop.permute.xlu0 %3813 }
 0x98a   :  { %14358 = vmatprep.subr.bf16.mxu0 %v15386_v33 }
 0x98b   :  { %v14355_v44 = vpack.c.bf16 %v3314_v58, %v3309_v41  ;;  %v13300_v39 = vpop.f32.mrb[38].mxu1 }
 0x98c   :  { %v3500_v16 = vpop.f32.mrb[39].mxu1  ;;  %v3506_v47 = vadd.f32 %v13300_v39, %v3432_v25 }
 0x98d   :  { %14357 = vmatpush3.bf16.xpose.msk.msra.mxu1 %vm16144_vm10, %v14355_v44  ;;  %v3501_v18 = vadd.f32 %v3500_v16, %v3432_v25  ;;  %v4104_v22 = vpop.permute.xlu0 %4103 }
 0x98e   :  { %14362 = vmatprep.subr.bf16.mxu1 %v15386_v33  ;;  %v16157_v38 = vpop.f32.mrb[38].mxu0 }
 0x98f   :  { %v16159_v10 = vpop.f32.mrb[39].mxu0 }
 0x990   :  { %13412 = vmatmul.mubr.msk.f32.vlgmr.msra.gmra.mrb[46].mxu0 %vm1446_vm8, %v3192_v40  ;;  %v3724_v40 = vpop.permute.xlu1 %3723 }
 0x991   :  { %14361 = vmatpush3.bf16.xpose.msk.msra.mxu0 %vm16144_vm10, %v14359_v34  ;;  %13425 = vmatprep.mubr.msk.f32.mxu0 %vm15383_vm7, %v15371_v24 }
 0x992   :  { %14366 = vmatprep.subr.bf16.mxu0 %v15386_v33  ;;  %v16168_v43 = vpop.f32.mrb[40].mxu0 }
 0x993   :  { %v16170_v9 = vpop.f32.mrb[40].mxu1  ;;  %v16172_v20 = vpop.f32.mrb[41].mxu0 }
 0x994   :  { %v16174_v8 = vpop.f32.mrb[41].mxu1  ;;  %13419 = vmatmul.mubr.msk.f32.vlgmr.msra.gmra.mrb[54].mxu1 %vm1446_vm8, %v3197_v36 }
 0x995   :  { %14365 = vmatpush3.bf16.xpose.msk.msra.mxu1 %vm16144_vm10, %v14363_v49  ;;  %13432 = vmatprep.mubr.msk.f32.mxu1 %vm15383_vm7, %v15371_v24 }
 0x996   :  { %v13389_v30 = vpop.f32.mrb[42].mxu0  ;;  %14370 = vmatprep.subr.bf16.mxu1 %v15386_v33 }
 0x997   :  { %v16182_v5 = vpop.f32.mrb[42].mxu1  ;;  %v4178_v31 = vadd.f32 %v13389_v30, %v4104_v22  ;;  %v4172_v17 = vpop.f32.mrb[43].mxu0 }
 0x998   :  { %v16184_v34 = vpop.f32.mrb[43].mxu1  ;;  %13426 = vmatmul.mubr.msk.f32.vlgmr.msra.gmra.mrb[48].mxu0 %vm1446_vm8, %v3501_v18  ;;  %v4173_v46 = vadd.f32 %v4172_v17, %v4104_v22  ;;  %v4014_v30 = vpop.permute.xlu0 %4013  ;;  %v15387_v17 = vmov 1966171168  }
 0x999   :  { %13439 = vmatprep.mubr.msk.f32.mxu0 %vm15383_vm7, %v15371_v24 }
 0x99a   :  { %v14375_v48 = vpack.c.bf16 %v4178_v31, %v4173_v46  ;;  %v13392_v50 = vpop.f32.mrb[44].mxu0  ;;  %v291_v46 = vunpack.c.l.s4 %v15387_v17 }
 0x99b   :  { %v13350_v54 = vpop.f32.mrb[44].mxu1  ;;  %v4188_v32 = vadd.f32 %v13392_v50, %v4104_v22  ;;  %v4182_v52 = vpop.f32.mrb[45].mxu0 }
 0x99c   :  { %v3888_v56 = vadd.f32 %v13350_v54, %v3814_v26  ;;  %v3882_v49 = vpop.f32.mrb[45].mxu1  ;;  %13433 = vmatmul.mubr.msk.f32.vlgmr.msra.gmra.mrb[56].mxu1 %vm1446_vm8, %v3506_v47  ;;  %v4183_v35 = vadd.f32 %v4182_v52, %v4104_v22  ;;  %v3793_v22 = vadd.f32 %v16140_v61, %v3724_v40  ;;  %v292_v47 = vunpack.c.0.s8 %v291_v46 }
 0x99d   :  { %v3883_v60 = vadd.f32 %v3882_v49, %v3814_v26  ;;  %13446 = vmatprep.mubr.msk.f32.mxu1 %vm15383_vm7, %v15371_v24 }
 0x99e   :  { %v14379_v58 = vpack.c.bf16 %v4188_v32, %v4183_v35  ;;  %v295_v4 = vsub.s32 %v292_v47, %v15594_v13 }
 0x99f   :  { %v14367_v1 = vpack.c.bf16 %v3888_v56, %v3883_v60  ;;  %v13353_v41 = vpop.f32.mrb[46].mxu1 }
 0x9a0   :  { %v3898_v44 = vadd.f32 %v13353_v41, %v3814_v26  ;;  %v3892_v16 = vpop.f32.mrb[47].mxu1 }
 0x9a1   :  { %v3893_v39 = vadd.f32 %v3892_v16, %v3814_v26  ;;  %14369 = vmatpush3.bf16.xpose.msk.msra.mxu0 %vm16144_vm10, %v14367_v1  ;;  %v3798_v26 = vadd.f32 %v16138_v51, %v3724_v40 }
 0x9a2   :  { %14374 = vmatprep.subr.bf16.mxu0 %v15386_v33 }
 0x9a3   :  { %v14371_v36 = vpack.c.bf16 %v3898_v44, %v3893_v39  ;;  %v13378_v25 = vpop.f32.mrb[48].mxu1 }
 0x9a4   :  { %v4082_v18 = vpop.f32.mrb[49].mxu1  ;;  %v4088_v51 = vadd.f32 %v13378_v25, %v4014_v30 }
 0x9a5   :  { %14373 = vmatpush3.bf16.xpose.msk.msra.mxu1 %vm16144_vm10, %v14371_v36  ;;  %v4083_v61 = vadd.f32 %v4082_v18, %v4014_v30 }
 0x9a6   :  { %14378 = vmatprep.subr.bf16.mxu1 %v15386_v33 }
 0x9a8   :  { %13440 = vmatmul.mubr.msk.f32.vlgmr.msra.gmra.mrb[50].mxu0 %vm1446_vm8, %v3793_v22 }
 0x9a9   :  { %14377 = vmatpush3.bf16.xpose.msk.msra.mxu0 %vm16144_vm10, %v14375_v48  ;;  %13453 = vmatprep.mubr.msk.f32.mxu0 %vm15383_vm7, %v15371_v24 }
 0x9aa   :  { %14382 = vmatprep.subr.bf16.mxu0 %v15386_v33 }
 0x9ab   :  { %v16226_v31 = vpop.f32.mrb[50].mxu1 }
 0x9ac   :  { %13447 = vmatmul.mubr.msk.f32.vlgmr.msra.gmra.mrb[58].mxu1 %vm1446_vm8, %v3798_v26  ;;  %v16228_v45 = vpop.f32.mrb[51].mxu1 }
 0x9ad   :  { %14381 = vmatpush3.bf16.xpose.msk.msra.mxu1 %vm16144_vm10, %v14379_v58  ;;  %13460 = vmatprep.mubr.msk.f32.mxu1 %vm15383_vm7, %v15371_v24 }
 0x9ae   :  { %14385 = vmatprep.subr.bf16.mxu1 %v15386_v33 }
 0x9af   :  { %v16230_v59 = vpop.f32.mrb[52].mxu1 }
 0x9b0   :  { %13454 = vmatmul.mubr.msk.f32.vlgmr.msra.gmra.mrb[52].mxu0 %vm1446_vm8, %v4083_v61 }
 0x9b1   :  { %14384 = vmatpush3.bf16.msra.mxu0 %v14383_v3  ;;  %13467 = vmatprep.mubr.msk.f32.mxu0 %vm15383_vm7, %v15371_v24  ;;  %v16232_v3 = vpop.f32.mrb[53].mxu1 }
 0x9b2   :  { %14388 = vmatprep.subr.bf16.mxu0 %v15386_v33 }
 0x9b4   :  { %13461 = vmatmul.mubr.msk.f32.vlgmr.msra.gmra.mrb[60].mxu1 %vm1446_vm8, %v4088_v51 }
 0x9b5   :  { %14387 = vmatpush3.bf16.msra.mxu1 %v14386_v37  ;;  %13474 = vmatprep.mubr.msk.f32.mxu1 %vm15383_vm7, %v15371_v24  ;;  %v296_v37 = vrot.slane %v288_v27, %v295_v4 }
 0x9b6   :  { %14391 = vmatprep.subr.bf16.mxu1 %v15386_v33 }
 0x9b7   :  { %v304_v48 = vrot.slane %v296_v37, %v295_v4  ;;  %v297_v50 = vcombine.high %v296_v37, %v296_v37 }
 0x9b9   :  { %v16238_v54 = vrot.slane %v304_v48, %v15628_v28  ;;  %v311_v32 = vrot.slane %v297_v50, %v295_v4 }
 0x9bb   :  { %v16242_v35 = vrot.slane %v311_v32, %v15628_v28 }
 0xa63   :  { %v4366_v52 = vpop.f32.mrb[46].mxu0 }
 0xa64   :  { %v4367_v56 = vadd.f32 %v4366_v52, %v16238_v54  ;;  %v13413_v49 = vpop.f32.mrb[47].mxu0 }
 0xa66   :  { %v4924_v21 = vsel %vm4923_vm12, %v4367_v56, -inf }
 0xa67   :  { %v4445_v13 = vpop.f32.mrb[54].mxu1  ;;  %4925 = vmax.xlane.f32.xlu1 %v4924_v21 }
 0xa68   :  { %v4446_v6 = vadd.f32 %v4445_v13, %v16242_v35  ;;  %v13420_v60 = vpop.f32.mrb[55].mxu1 }
 0xa6a   :  { %v4927_v58 = vsel %vm4923_vm12, %v4446_v6, -inf }
 0xa6b   :  { %4928 = vmax.xlane.f32.xlu0 %v4927_v58  ;;  %v4524_v1 = vpop.f32.mrb[48].mxu0 }
 0xa6c   :  { %v4525_v41 = vadd.f32 %v4524_v1, %v16238_v54  ;;  %v13427_v44 = vpop.f32.mrb[49].mxu0 }
 0xa6e   :  { %v4930_v16 = vsel %vm4923_vm12, %v4525_v41, -inf }
 0xa6f   :  { %v4603_v39 = vpop.f32.mrb[56].mxu1  ;;  %4931 = vmax.xlane.f32.xlu0 %v4930_v16 }
 0xa70   :  { %v4604_v40 = vadd.f32 %v4603_v39, %v16242_v35  ;;  %v13434_v36 = vpop.f32.mrb[57].mxu1 }
 0xa72   :  { %v4933_v25 = vsel %vm4923_vm12, %v4604_v40, -inf }
 0xa73   :  { %4934 = vmax.xlane.f32.xlu1 %v4933_v25 }
 0xa7b   :  { %v4682_v18 = vpop.f32.mrb[50].mxu0 }
 0xa7c   :  { %v4683_v22 = vadd.f32 %v4682_v18, %v16238_v54  ;;  %v13441_v26 = vpop.f32.mrb[51].mxu0 }
 0xa7e   :  { %v4936_v30 = vsel %vm4923_vm12, %v4683_v22, -inf }
 0xa7f   :  { %v4761_v61 = vpop.f32.mrb[58].mxu1  ;;  %4937 = vmax.xlane.f32.xlu0 %v4936_v30 }
 0xa80   :  { %v4762_v51 = vadd.f32 %v4761_v61, %v16242_v35  ;;  %v13448_v17 = vpop.f32.mrb[59].mxu1 }
 0xa82   :  { %v4939_v46 = vsel %vm4923_vm12, %v4762_v51, -inf }
 0xa83   :  { %4940 = vmax.xlane.f32.xlu1 %v4939_v46  ;;  %v4840_v47 = vpop.f32.mrb[52].mxu0 }
 0xa84   :  { %v4841_v4 = vadd.f32 %v4840_v47, %v16238_v54  ;;  %v13455_v27 = vpop.f32.mrb[53].mxu0 }
 0xa86   :  { %v4942_v37 = vsel %vm4923_vm12, %v4841_v4, -inf }
 0xa87   :  { %v4919_v48 = vpop.f32.mrb[60].mxu1  ;;  %4943 = vmax.xlane.f32.xlu0 %v4942_v37 }
 0xa88   :  { %v4920_v50 = vadd.f32 %v4919_v48, %v16242_v35  ;;  %v13462_v32 = vpop.f32.mrb[61].mxu1 }
 0xa8a   :  { %v4945_v52 = vsel %vm4923_vm12, %v4920_v50, -inf }
 0xa8b   :  { %4946 = vmax.xlane.f32.xlu1 %v4945_v52 }
 0xaf4   :  { %v4926_v49 = vpop.xlane.xlu1 %4925 }
 0xaf5   :  { %v4948_v21 = vsub.f32 %v4367_v56, %v4926_v49 }
 0xaf7   :  { %v4956_v13 = vmul.f32 1.442695, %v4948_v21 }
 0xaf8   :  { %v4929_v60 = vpop.xlane.xlu0 %4928 }
 0xaf9   :  { %15245 = vpow2.f32 %v4956_v13  ;;  %v4949_v58 = vsub.f32 %v4446_v6, %v4929_v60 }
 0xafb   :  { %v4958_v1 = vmul.f32 1.442695, %v4949_v58 }
 0xafc   :  { %v4932_v44 = vpop.xlane.xlu0 %4931 }
 0xafd   :  { %15247 = vpow2.f32 %v4958_v1  ;;  %v4950_v16 = vsub.f32 %v4525_v41, %v4932_v44 }
 0xaff   :  { %v4960_v39 = vmul.f32 1.442695, %v4950_v16 }
 0xb00   :  { %v4935_v36 = vpop.xlane.xlu1 %4934 }
 0xb01   :  { %15249 = vpow2.f32 %v4960_v39  ;;  %v4951_v25 = vsub.f32 %v4604_v40, %v4935_v36 }
 0xb03   :  { %v15246_v18 = vpop.eup %15245  ;;  %v4962_v26 = vmul.f32 1.442695, %v4951_v25 }
 0xb04   :  { %v4972_v30 = vsel %vm4923_vm12, %v15246_v18, 0.0 }
 0xb05   :  { %15251 = vpow2.f32 %v4962_v26  ;;  %4973 = vadd.xlane.f32.xlu0 %v4972_v30 }
 0xb07   :  { %v15248_v61 = vpop.eup %15247 }
 0xb08   :  { %v4975_v56 = vsel %vm4923_vm12, %v15248_v61, 0.0 }
 0xb09   :  { %4976 = vadd.xlane.f32.xlu1 %v4975_v56 }
 0xb0b   :  { %v16261_v17 = vpop.eup %15249 }
 0xb0c   :  { %v4938_v6 = vpop.xlane.xlu0 %4937  ;;  %v4978_v41 = vsel %vm4923_vm12, %v16261_v17, 0.0 }
 0xb0d   :  { %v4952_v46 = vsub.f32 %v4683_v22, %v4938_v6  ;;  %4979 = vadd.xlane.f32.xlu0 %v4978_v41 }
 0xb0f   :  { %v16265_v47 = vpop.eup %15251  ;;  %v4964_v40 = vmul.f32 1.442695, %v4952_v46 }
 0xb10   :  { %v4941_v27 = vpop.xlane.xlu1 %4940  ;;  %v4981_v37 = vsel %vm4923_vm12, %v16265_v47, 0.0 }
 0xb11   :  { %15253 = vpow2.f32 %v4964_v40  ;;  %v4953_v48 = vsub.f32 %v4762_v51, %v4941_v27  ;;  %4982 = vadd.xlane.f32.xlu1 %v4981_v37 }
 0xb13   :  { %v4966_v32 = vmul.f32 1.442695, %v4953_v48 }
 0xb14   :  { %v4944_v52 = vpop.xlane.xlu0 %4943 }
 0xb15   :  { %15255 = vpow2.f32 %v4966_v32  ;;  %v4954_v49 = vsub.f32 %v4841_v4, %v4944_v52 }
 0xb17   :  { %v4968_v21 = vmul.f32 1.442695, %v4954_v49 }
 0xb18   :  { %v4947_v4 = vpop.xlane.xlu1 %4946 }
 0xb19   :  { %15257 = vpow2.f32 %v4968_v21  ;;  %v4955_v44 = vsub.f32 %v4920_v50, %v4947_v4 }
 0xb1b   :  { %v16269_v13 = vpop.eup %15253  ;;  %v4970_v16 = vmul.f32 1.442695, %v4955_v44 }
 0xb1c   :  { %v4984_v22 = vsel %vm4923_vm12, %v16269_v13, 0.0 }
 0xb1d   :  { %4985 = vadd.xlane.f32.xlu0 %v4984_v22  ;;  %15259 = vpow2.f32 %v4970_v16 }
 0xb1f   :  { %v16273_v60 = vpop.eup %15255 }
 0xb20   :  { %v4987_v58 = vsel %vm4923_vm12, %v16273_v60, 0.0 }
 0xb21   :  { %4988 = vadd.xlane.f32.xlu1 %v4987_v58 }
 0xb23   :  { %v16277_v51 = vpop.eup %15257 }
 0xb24   :  { %v4990_v1 = vsel %vm4923_vm12, %v16277_v51, 0.0 }
 0xb25   :  { %4991 = vadd.xlane.f32.xlu0 %v4990_v1 }
 0xb27   :  { %v16289_v39 = vpop.eup %15259 }
 0xb28   :  { %v4993_v36 = vsel %vm4923_vm12, %v16289_v39, 0.0 }
 0xb32   :  { %3913 = vrot.lane.b32.xlu1 %v16118_v23, %s15375_s16 }
 0xb3b   :  { %3623 = vrot.lane.b32.xlu0 %v16118_v23, %s15379_s20 }
 0xb3f   :  { %5596 = vrot.lane.b32.xlu0 %v15921_v12, %s15385_s26 }
 0xb43   :  { %5772 = vrot.lane.b32.xlu0 %v15933_v57, %s15385_s26 }
 0xb56   :  { %4994 = vadd.xlane.f32.xlu1 %v4993_v36 }
 0xb67   :  { %4203 = vrot.lane.b32.xlu1 %v16118_v23, %s15377_s18 }
 0xb6b   :  { %5686 = vrot.lane.b32.xlu1 %v15926_v19, %s15385_s26 }
 0xb6f   :  { %5858 = vrot.lane.b32.xlu1 %v15938_v11, %s15385_s26 }
 0xb92   :  { %v4974_v12 = vpop.xlane.xlu0 %4973 }
 0xb93   :  { %15261 = vrcp.f32 %v4974_v12 }
 0xb96   :  { %v4977_v57 = vpop.xlane.xlu1 %4976 }
 0xb97   :  { %15263 = vrcp.f32 %v4977_v57 }
 0xb9a   :  { %v4980_v19 = vpop.xlane.xlu0 %4979 }
 0xb9b   :  { %15265 = vrcp.f32 %v4980_v19 }
 0xb9d   :  { %v15262_v50 = vpop.eup %15261 }
 0xb9e   :  { %v5004_v25 = vmul.f32 %v15262_v50, %v15246_v18  ;;  %v4983_v11 = vpop.xlane.xlu1 %4982 }
 0xb9f   :  { %15267 = vrcp.f32 %v4983_v11 }
 0xba0   :  { %13468 = vmatmul.mubr.msk.f32.vlgmr.msra.gmra.mrb[54].mxu0 %vm4923_vm12, %v5004_v25 }
 0xba1   :  { %v15264_v26 = vpop.eup %15263  ;;  %13481 = vmatprep.mubr.msk.f32.mxu0 %vm15383_vm7, %v15371_v24 }
 0xba2   :  { %v5005_v30 = vmul.f32 %v15264_v26, %v15248_v61 }
 0xba4   :  { %13475 = vmatmul.mubr.msk.f32.vlgmr.msra.gmra.mrb[62].mxu1 %vm4923_vm12, %v5005_v30 }
 0xba5   :  { %13488 = vmatprep.mubr.msk.f32.mxu1 %vm15383_vm7, %v15371_v24  ;;  %v15266_v22 = vpop.eup %15265 }
 0xba9   :  { %v15268_v58 = vpop.eup %15267 }
 0xbaa   :  { %v4986_v23 = vpop.xlane.xlu0 %4985  ;;  %v5007_v4 = vmul.f32 %v15268_v58, %v16265_v47 }
 0xbab   :  { %15269 = vrcp.f32 %v4986_v23 }
 0xbae   :  { %v4989_v56 = vpop.xlane.xlu1 %4988 }
 0xbaf   :  { %15271 = vrcp.f32 %v4989_v56 }
 0xbb2   :  { %v3914_v18 = vpop.permute.xlu1 %3913  ;;  %v4992_v6 = vpop.xlane.xlu0 %4991 }
 0xbb3   :  { %v3983_v41 = vadd.f32 %v16159_v10, %v3914_v18  ;;  %v3988_v46 = vadd.f32 %v16157_v38, %v3914_v18  ;;  %v3993_v61 = vadd.f32 %v16172_v20, %v3914_v18  ;;  %v3998_v40 = vadd.f32 %v16168_v43, %v3914_v18 }
 0xbb4   :  { %v5006_v43 = vmul.f32 %v15266_v22, %v16261_v17  ;;  %15273 = vrcp.f32 %v4992_v6 }
 0xbb5   :  { %v14395_v27 = vpack.c.bf16 %v3988_v46, %v3983_v41  ;;  %v14398_v37 = vpack.c.bf16 %v3998_v40, %v3993_v61  ;;  %v15270_v38 = vpop.eup %15269 }
 0xbb6   :  { %v3624_v48 = vpop.permute.xlu0 %3623 }
 0xbb7   :  { %v3693_v32 = vadd.f32 %v16174_v8, %v3624_v48  ;;  %v3698_v52 = vadd.f32 %v16170_v9, %v3624_v48  ;;  %v3703_v49 = vadd.f32 %v16184_v34, %v3624_v48  ;;  %v3708_v21 = vadd.f32 %v16182_v5, %v3624_v48 }
 0xbb8   :  { %v5008_v9 = vmul.f32 %v15270_v38, %v16269_v13 }
 0xbb9   :  { %v14389_v10 = vpack.c.bf16 %v3698_v52, %v3693_v32  ;;  %v14392_v1 = vpack.c.bf16 %v3708_v21, %v3703_v49  ;;  %v15272_v20 = vpop.eup %15271 }
 0xbba   :  { %v5009_v8 = vmul.f32 %v15272_v20, %v16273_v60 }
 0xbbb   :  { %14390 = vmatpush3.bf16.msra.mxu0 %v14389_v10  ;;  %14393 = vmatpush3.bf16.msra.mxu1 %v14392_v1 }
 0xbbc   :  { %14394 = vmatprep.subr.bf16.mxu0 %v15386_v33  ;;  %14397 = vmatprep.subr.bf16.mxu1 %v15386_v33 }
 0xbbe   :  { %13482 = vmatmul.mubr.msk.f32.vlgmr.msra.gmra.mrb[56].mxu0 %vm4923_vm12, %v5006_v43  ;;  %13489 = vmatmul.mubr.msk.f32.vlgmr.msra.gmra.mrb[64].mxu1 %vm4923_vm12, %v5007_v4  ;;  %v15274_v44 = vpop.eup %15273 }
 0xbbf   :  { %14396 = vmatpush3.bf16.msra.mxu0 %v14395_v27  ;;  %14399 = vmatpush3.bf16.msra.mxu1 %v14398_v37  ;;  %v5010_v12 = vmul.f32 %v15274_v44, %v16277_v51  ;;  %v16352_v37 = vld [vmem:[%s17290_s4 + $0x8] sm:$0xff]  ;;  %v40_v44 = vld [vmem:[%s17289_s2 + $0x58] sm:$0xff] }
 0xbc0   :  { %13495 = vmatprep.mubr.msk.f32.mxu0 %vm15383_vm7, %v15371_v24  ;;  %13502 = vmatprep.mubr.msk.f32.mxu1 %vm15383_vm7, %v15371_v24  ;;  %v5683_v48 = vrot.slane %v16352_v37, %v15597_v14 }
 0xbc1   :  { %14400 = vmatprep.subr.bf16.mxu0 %v15386_v33  ;;  %14403 = vmatprep.subr.bf16.mxu1 %v15386_v33 }
 0xbc2   :  { %13496 = vmatmul.mubr.msk.f32.vlgmr.msra.gmra.mrb[58].mxu0 %vm4923_vm12, %v5008_v9  ;;  %13503 = vmatmul.mubr.msk.f32.vlgmr.msra.gmra.mrb[66].mxu1 %vm4923_vm12, %v5009_v8 }
 0xbc3   :  { %13509 = vmatprep.mubr.msk.f32.mxu0 %vm15383_vm7, %v15371_v24  ;;  %13516 = vmatprep.mubr.msk.f32.mxu1 %vm15383_vm7, %v15371_v24 }
 0xbe3   :  { %v4995_v5 = vpop.xlane.xlu1 %4994 }
 0xbe4   :  { %15275 = vrcp.f32 %v4995_v5 }
 0xbe7   :  { %v4204_v34 = vpop.permute.xlu1 %4203 }
 0xbe8   :  { %v4273_v17 = vadd.f32 %v16228_v45, %v4204_v34  ;;  %v4278_v47 = vadd.f32 %v16226_v31, %v4204_v34  ;;  %v4283_v13 = vadd.f32 %v16232_v3, %v4204_v34  ;;  %v4288_v60 = vadd.f32 %v16230_v59, %v4204_v34  ;;  %v5597_v45 = vpop.permute.xlu0 %5596 }
 0xbea   :  { %v14401_v16 = vpack.c.bf16 %v4278_v47, %v4273_v17  ;;  %v14404_v36 = vpack.c.bf16 %v4288_v60, %v4283_v13  ;;  %v31_v17 = vld [vmem:[%s17289_s2 + $0x10] sm:$0xff]  ;;  %v34_v47 = vld [vmem:[%s17289_s2 + $0x28] sm:$0xff]  ;;  %v37_v60 = vld [vmem:[%s17289_s2 + $0x40] sm:$0xff] }
 0xbeb   :  { %v5687_v31 = vpop.permute.xlu1 %5686  ;;  %v14406_v13 = vpack.c.bf16 %v34_v47, %v31_v17 }
 0xbec   :  { %14402 = vmatpush3.bf16.msra.mxu0 %v14401_v16  ;;  %14405 = vmatpush3.bf16.msra.mxu1 %v14404_v36  ;;  %v5773_v26 = vpop.permute.xlu0 %5772  ;;  %v14410_v16 = vpack.c.bf16 %v40_v44, %v37_v60  ;;  %v53_v36 = vld [vmem:[%s17292_s3] sm:$0xff]  ;;  %v16444_v60 = vld [vmem:[%s17289_s2 + $0x90] sm:$0xff]  ;;  %v16449_v44 = vld [vmem:[%s17289_s2 + $0xa8] sm:$0xff] }
 0xbed   :  { %13519 = vmatprep.subr.mxu0 %v5597_v45  ;;  %14407 = vmatprep.subr.bf16.mxu1 %v14406_v13 }
 0xbee   :  { %v15276_v57 = vpop.eup %15275 }
 0xbef   :  { %13510 = vmatmul.mubr.msk.f32.vlgmr.msra.gmra.mrb[60].mxu0 %vm4923_vm12, %v5010_v12  ;;  %v5011_v50 = vmul.f32 %v15276_v57, %v16289_v39  ;;  %v5859_v51 = vpop.permute.xlu1 %5858  ;;  %v54_v12 = vld [vmem:[%s17292_s3 + $0x8] sm:$0xff] }
 0xbf0   :  { %13520 = vmatpush3.msra.mxu0 %v5597_v45  ;;  %v14414_v57 = vpack.c.bf16 %v54_v12, %v53_v36  ;;  %v14434_v36 = vpack.c.bf16 %v16449_v44, %v16444_v60 }
 0xbf1   :  { %13517 = vmatmul.mubr.msk.f32.vlgmr.msra.gmra.mrb[68].mxu1 %vm4923_vm12, %v5011_v50  ;;  %13524 = vmatprep.subr.mxu0 %v5687_v31 }
 0xbf2   :  { %14409 = vmatpush3.bf16.msra.mxu1 %v14406_v13 }
 0xbf3   :  { %14411 = vmatprep.subr.bf16.mxu1 %v14410_v16 }
 0xbf6   :  { %14413 = vmatpush3.bf16.msra.mxu1 %v14410_v16 }
 0xbf7   :  { %14415 = vmatprep.subr.bf16.mxu1 %v14414_v57 }
 0xc73   :  { %v5081_v59 = vpop.f32.mrb[54].mxu0 }
 0xc74   :  { %v13469_v3 = vpop.f32.mrb[55].mxu0  ;;  %13521 = vmatprep.mubr.msk.f32.mxu0 %vm1446_vm8, %v5081_v59 }
 0xc77   :  { %v5154_v25 = vpop.f32.mrb[62].mxu1 }
 0xc78   :  { %v13476_v30 = vpop.f32.mrb[63].mxu1  ;;  %13522 = vmatmul.mubr.msk.f32.vlgmr.msra.gmra.mrb[62].mxu0 %vm1446_vm8, %v5154_v25 }
 0xc79   :  { %13525 = vmatpush3.msra.mxu0 %v5687_v31 }
 0xc7a   :  { %13529 = vmatprep.subr.mxu0 %v5773_v26 }
 0xc91   :  { %v5227_v39 = vpop.f32.mrb[56].mxu0  ;;  %v5300_v19 = vpop.f32.mrb[64].mxu1 }
 0xc92   :  { %v13483_v11 = vpop.f32.mrb[57].mxu0  ;;  %v13490_v23 = vpop.f32.mrb[65].mxu1  ;;  %13526 = vmatprep.mubr.msk.f32.mxu0 %vm1446_vm8, %v5227_v39  ;;  %v5981_v39 = vrot.slane %v16352_v37, %v15892_v63 }
 0xc93   :  { %13527 = vmatmul.mubr.msk.f32.vlgmr.msra.gmra.mrb[62].mxu0 %vm1446_vm8, %v5300_v19 }
 0xc94   :  { %13530 = vmatpush3.msra.mxu0 %v5773_v26  ;;  %v5975_v26 = vrot.slane %v16352_v37, %v15752_v53 }
 0xc95   :  { %v5373_v56 = vpop.f32.mrb[58].mxu0  ;;  %v5446_v18 = vpop.f32.mrb[66].mxu1  ;;  %13534 = vmatprep.subr.mxu0 %v5859_v51 }
 0xc96   :  { %v13497_v6 = vpop.f32.mrb[59].mxu0  ;;  %v13504_v41 = vpop.f32.mrb[67].mxu1  ;;  %13531 = vmatprep.mubr.msk.f32.mxu0 %vm1446_vm8, %v5373_v56 }
 0xc97   :  { %v56_v6 = vld [vmem:[%s17292_s3 + $0x18] sm:$0xff] }
 0xc9b   :  { %13532 = vmatmul.mubr.msk.f32.vlgmr.msra.gmra.mrb[62].mxu0 %vm1446_vm8, %v5446_v18  ;;  %v55_v18 = vld [vmem:[%s17292_s3 + $0x10] sm:$0xff] }
 0xc9c   :  { %13535 = vmatpush3.msra.mxu0 %v5859_v51 }
 0xcc2   :  { %v5519_v46 = vpop.f32.mrb[60].mxu0 }
 0xcc3   :  { %v13511_v61 = vpop.f32.mrb[61].mxu0  ;;  %13536 = vmatprep.mubr.msk.f32.mxu0 %vm1446_vm8, %v5519_v46 }
 0xcc4   :  { %v5592_v40 = vpop.f32.mrb[68].mxu1  ;;  %v14418_v61 = vpack.c.bf16 %v56_v6, %v55_v18 }
 0xcc5   :  { %v13518_v27 = vpop.f32.mrb[69].mxu1  ;;  %13537 = vmatmul.mubr.msk.f32.vlgmr.msra.gmra.mrb[62].mxu0 %vm1446_vm8, %v5592_v40  ;;  %v57_v40 = vld [vmem:[%s17292_s3 + $0x20] sm:$0xff] }
 0xcc6   :  { %v58_v27 = vld [vmem:[%s17292_s3 + $0x28] sm:$0xff] }
 0xd98   :  { %v13538_v32 = vpop.f32.mrb[62].mxu0 }
 0xd99   :  { %v14712_v52 = vadd.f32 %v13538_v32, %v5683_v48  ;;  %v5933_v49 = vpop.f32.mrb[63].mxu0  ;;  %v59_v32 = vld [vmem:[%s17292_s3 + $0x30] sm:$0xff] }
 0xd9a   :  { %v14713_v21 = vadd.f32 %v5933_v49, %v5683_v48  ;;  %v14422_v48 = vpack.c.bf16 %v58_v27, %v57_v40 }
 0xd9b   :  { %v16357_v22 = vadd.f32 %v14712_v52, %v15897_v2  ;;  %v60_v52 = vld [vmem:[%s17292_s3 + $0x38] sm:$0xff] }
 0xd9c   :  { %v16360_v58 = vadd.f32 %v14713_v21, %v15900_v42  ;;  %v14426_v49 = vpack.c.bf16 %v60_v52, %v59_v32  ;;  %v5987_v21 = vrot.slane %v16352_v37, %v16001_v55 }
 0xd9d   :  { %v5949_v10 = vsel %vm322_vm6, %v16357_v22, 0.0 }
 0xd9e   :  { %5950 = vadd.xlane.f32.xlu1 %v5949_v10  ;;  %v5946_v1 = vsel %vm322_vm6, %v16360_v58, 0.0 }
 0xd9f   :  { %5947 = vadd.xlane.f32.xlu0 %v5946_v1 }
 0xe2b   :  { %v5951_v38 = vpop.xlane.xlu1 %5950 }
 0xe2c   :  { %v5953_v20 = vmul.f32 0.03125, %v5951_v38  ;;  %v5948_v43 = vpop.xlane.xlu0 %5947 }
 0xe2d   :  { %v5952_v4 = vmul.f32 0.03125, %v5948_v43 }
 0xe2e   :  { %v5955_v9 = vsub.f32 %v16357_v22, %v5953_v20 }
 0xe2f   :  { %v5954_v2 = vsub.f32 %v16360_v58, %v5952_v4 }
 0xe30   :  { %v5957_v5 = vmul.f32 %v5955_v9, %v5955_v9 }
 0xe31   :  { %v5956_v8 = vmul.f32 %v5954_v2, %v5954_v2 }
 0xe32   :  { %v5961_v34 = vsel %vm322_vm6, %v5957_v5, 0.0 }
 0xe33   :  { %v5958_v42 = vsel %vm322_vm6, %v5956_v8, 0.0 }
 0xe34   :  { %5959 = vadd.xlane.f32.xlu0 %v5958_v42 }
 0xe38   :  { %5962 = vadd.xlane.f32.xlu0 %v5961_v34 }
 0xec1   :  { %v5960_v50 = vpop.xlane.xlu0 %5959 }
 0xec2   :  { %v5964_v45 = vmul.f32 0.03125, %v5960_v50 }
 0xec4   :  { %v5966_v31 = vadd.f32 1e-05, %v5964_v45 }
 0xec5   :  { %v5963_v59 = vpop.xlane.xlu0 %5962 }
 0xec6   :  { %15277 = vrsqrt.f32 %v5966_v31  ;;  %v5965_v3 = vmul.f32 0.03125, %v5963_v59 }
 0xec8   :  { %v5967_v25 = vadd.f32 1e-05, %v5965_v3 }
 0xeca   :  { %15279 = vrsqrt.f32 %v5967_v25 }
 0xed0   :  { %v15278_v30 = vpop.eup %15277 }
 0xed1   :  { %v5970_v51 = vmul.f32 %v15278_v30, %v5954_v2 }
 0xed3   :  { %v5976_v19 = vmul.f32 %v5975_v26, %v5970_v51 }
 0xed4   :  { %v15280_v11 = vpop.eup %15279 }
 0xed5   :  { %v5971_v23 = vmul.f32 %v15280_v11, %v5955_v9  ;;  %v5982_v56 = vadd.f32 %v5981_v39, %v5976_v19  ;;  %v6158_v9 = vrot.slane %v16352_v37, %v16004_v0  ;;  %v16431_v37 = vld [vmem:[%s17289_s2 + $0x60] sm:$0xff] }
 0xed7   :  { %v5977_v41 = vmul.f32 %v5975_v26, %v5971_v23  ;;  %13547 = vmatprep.mubr.msk.f32.mxu1 %vm322_vm6, %v5982_v56  ;;  %v14995_v23 = vpack.i.bf16 %v16449_v44, %v16444_v60  ;;  %v16496_v56 = vld [vmem:[%s17290_s4 + $0x10] sm:$0xff] }
 0xed8   :  { %v16500_v18 = vrot.slane %v16496_v56, %v15597_v14  ;;  %v16504_v6 = vrot.slane %v16496_v56, %v15600_v15 }
 0xed9   :  { %v5983_v46 = vadd.f32 %v5981_v39, %v5977_v41 }
 0xedb   :  { %13548 = vmatmul.mubr.msk.f32.vlgmr.msra.gmra.mrb[70].mxu1 %vm322_vm6, %v5983_v46 }
 0xedc   :  { %14417 = vmatpush3.bf16.msra.mxu1 %v14414_v57 }
 0xedd   :  { %14419 = vmatprep.subr.bf16.mxu1 %v14418_v61 }
 0xee0   :  { %14421 = vmatpush3.bf16.msra.mxu1 %v14418_v61 }
 0xee1   :  { %14423 = vmatprep.subr.bf16.mxu1 %v14422_v48 }
 0xee4   :  { %14425 = vmatpush3.bf16.msra.mxu1 %v14422_v48 }
 0xee5   :  { %14427 = vmatprep.subr.bf16.mxu1 %v14426_v49 }
 0xee8   :  { %14429 = vmatpush3.bf16.msra.mxu1 %v14426_v49 }
 0xfae   :  { %v13549_v10 = vpop.f32.mrb[70].mxu1 }
 0xfaf   :  { %v6066_v1 = vadd.f32 %v13549_v10, %v5987_v21  ;;  %v6060_v38 = vpop.f32.mrb[71].mxu1 }
 0xfb0   :  { %v6061_v20 = vadd.f32 %v6060_v38, %v5987_v21 }
 0xfb1   :  { %v6070_v4 = vmax.f32 %v6066_v1, 0.0 }
 0xfb2   :  { %v6069_v43 = vmax.f32 %v6061_v20, 0.0 }
 0xfb4   :  { %13566 = vmatprep.mubr.msk.f32.mxu1 %vm6071_vm13, %v6069_v43 }
 0xfb5   :  { %13567 = vmatmul.mubr.msk.f32.vlgmr.msra.gmra.mrb[72].mxu1 %vm6071_vm13, %v6070_v4 }
0x1088   :  { %v13568_v2 = vpop.f32.mrb[72].mxu1 }
0x1089   :  { %v6154_v8 = vadd.f32 %v13568_v2, %v16357_v22  ;;  %v6144_v42 = vpop.f32.mrb[73].mxu1  ;;  %v16436_v22 = vld [vmem:[%s17289_s2 + $0x78] sm:$0xff] }
0x108a   :  { %v6153_v5 = vadd.f32 %v6144_v42, %v16360_v58  ;;  %v14985_v58 = vpack.i.bf16 %v16436_v22, %v16431_v37  ;;  %v14430_v16 = vpack.c.bf16 %v16436_v22, %v16431_v37 }
0x108b   :  { %v16420_v34 = vadd.f32 %v6158_v9, %v6154_v8  ;;  %v6190_v8 = vrot.slane %v16496_v56, %v15628_v28 }
0x108c   :  { %v16422_v17 = vadd.f32 %v6158_v9, %v6153_v5  ;;  %14431 = vmatprep.subr.bf16.mxu0 %v14430_v16 }
0x108d   :  { %v6164_v47 = vsel %vm322_vm6, %v16420_v34, 0.0  ;;  %14433 = vmatpush3.bf16.msra.mxu0 %v14430_v16 }
0x108e   :  { %6165 = vadd.xlane.f32.xlu0 %v6164_v47  ;;  %v6161_v13 = vsel %vm322_vm6, %v16422_v17, 0.0  ;;  %14435 = vmatprep.subr.bf16.mxu0 %v14434_v36 }
0x108f   :  { %6162 = vadd.xlane.f32.xlu1 %v6161_v13 }
0x1091   :  { %14437 = vmatpush3.bf16.msra.mxu0 %v14434_v36 }
0x10a0   :  { %14986 = vrot.lane.b32.xlu1 %v14985_v58, %s15372_s10 }
0x111b   :  { %v6166_v12 = vpop.xlane.xlu0 %6165 }
0x111c   :  { %v6168_v57 = vmul.f32 0.03125, %v6166_v12  ;;  %v6163_v50 = vpop.xlane.xlu1 %6162  ;;  %v6196_v12 = vrot.slane %v16496_v56, %v15631_v29 }
0x111d   :  { %v6167_v45 = vmul.f32 0.03125, %v6163_v50 }
0x111e   :  { %v16456_v31 = vsub.f32 %v16420_v34, %v6168_v57 }
0x111f   :  { %v16459_v59 = vsub.f32 %v16422_v17, %v6167_v45 }
0x1120   :  { %v6172_v3 = vmul.f32 %v16456_v31, %v16456_v31  ;;  %v14987_v25 = vpop.permute.xlu1 %14986 }
0x1121   :  { %v6171_v26 = vmul.f32 %v16459_v59, %v16459_v59  ;;  %v14989_v30 = vunpack.i.h.bf16 %v14987_v25  ;;  %v14988_v51 = vunpack.i.l.bf16 %v14987_v25 }
0x1122   :  { %v6176_v39 = vsel %vm322_vm6, %v6172_v3, 0.0 }
0x1123   :  { %6177 = vadd.xlane.f32.xlu0 %v6176_v39  ;;  %v6173_v19 = vsel %vm322_vm6, %v6171_v26, 0.0  ;;  %v16467_v11 = vpack.c.bf16 %v14989_v30, %v14988_v51 }
0x1124   :  { %6174 = vadd.xlane.f32.xlu1 %v6173_v19 }
0x1125   :  { %14439 = vmatprep.subr.bf16.mxu0 %v16467_v11 }
0x1135   :  { %14996 = vrot.lane.b32.xlu1 %v14995_v23, %s15372_s10 }
0x1139   :  { %14991 = vrot.lane.b32.xlu0 %v14985_v58, %s15373_s0  ;;  %15001 = vrot.lane.b32.xlu1 %v14995_v23, %s15373_s0 }
0x113d   :  { %15006 = vrot.lane.b32.xlu0 %v14985_v58, %s15379_s20  ;;  %15011 = vrot.lane.b32.xlu1 %v14985_v58, %s15374_s15 }
0x1141   :  { %15016 = vrot.lane.b32.xlu0 %v14995_v23, %s15379_s20  ;;  %15021 = vrot.lane.b32.xlu1 %v14995_v23, %s15374_s15 }
0x1145   :  { %15026 = vrot.lane.b32.xlu0 %v14985_v58, %s15380_s21  ;;  %15031 = vrot.lane.b32.xlu1 %v14985_v58, %s15375_s16 }
0x1149   :  { %15036 = vrot.lane.b32.xlu0 %v14995_v23, %s15380_s21  ;;  %15041 = vrot.lane.b32.xlu1 %v14995_v23, %s15375_s16 }
0x114d   :  { %15046 = vrot.lane.b32.xlu0 %v14985_v58, %s15381_s22  ;;  %15051 = vrot.lane.b32.xlu1 %v14985_v58, %s15376_s17 }
0x1151   :  { %15056 = vrot.lane.b32.xlu0 %v14995_v23, %s15381_s22  ;;  %15061 = vrot.lane.b32.xlu1 %v14995_v23, %s15376_s17 }
0x1155   :  { %15066 = vrot.lane.b32.xlu0 %v14985_v58, %s15382_s23  ;;  %15071 = vrot.lane.b32.xlu1 %v14985_v58, %s15377_s18 }
0x1159   :  { %15076 = vrot.lane.b32.xlu0 %v14995_v23, %s15382_s23  ;;  %15081 = vrot.lane.b32.xlu1 %v14995_v23, %s15377_s18 }
0x115d   :  { %15086 = vrot.lane.b32.xlu0 %v14985_v58, %s15378_s19  ;;  %15091 = vrot.lane.b32.xlu1 %v14995_v23, %s15378_s19 }
0x1161   :  { %6574 = vrot.lane.b32.xlu0 %v16500_v18, %s15379_s20  ;;  %6483 = vrot.lane.b32.xlu1 %v16504_v6, %s15379_s20 }
0x1165   :  { %6755 = vrot.lane.b32.xlu1 %v16504_v6, %s15375_s16  ;;  %6845 = vrot.lane.b32.xlu0 %v16500_v18, %s15375_s16 }
0x1169   :  { %7115 = vrot.lane.b32.xlu0 %v16500_v18, %s15377_s18  ;;  %7025 = vrot.lane.b32.xlu1 %v16504_v6, %s15377_s18 }
0x11b0   :  { %v6178_v41 = vpop.xlane.xlu0 %6177 }
0x11b1   :  { %v6180_v46 = vmul.f32 0.03125, %v6178_v41  ;;  %v6175_v61 = vpop.xlane.xlu1 %6174 }
0x11b2   :  { %v6179_v40 = vmul.f32 0.03125, %v6175_v61 }
0x11b3   :  { %v6182_v27 = vadd.f32 1e-05, %v6180_v46 }
0x11b4   :  { %v6181_v48 = vadd.f32 1e-05, %v6179_v40  ;;  %v14992_v32 = vpop.permute.xlu0 %14991 }
0x11b5   :  { %15281 = vrsqrt.f32 %v6182_v27  ;;  %v14994_v52 = vunpack.i.h.bf16 %v14992_v32  ;;  %v14993_v49 = vunpack.i.l.bf16 %v14992_v32  ;;  %v14997_v21 = vpop.permute.xlu1 %14996 }
0x11b6   :  { %15283 = vrsqrt.f32 %v6181_v48  ;;  %v14999_v30 = vunpack.i.h.bf16 %v14997_v21  ;;  %v14998_v51 = vunpack.i.l.bf16 %v14997_v21 }
0x11b7   :  { %v14446_v10 = vpack.c.bf16 %v14994_v52, %v14993_v49 }
0x11b8   :  { %v15007_v1 = vpop.permute.xlu0 %15006  ;;  %v14442_v27 = vpack.c.bf16 %v14999_v30, %v14998_v51 }
0x11b9   :  { %v15002_v38 = vpop.permute.xlu1 %15001  ;;  %14447 = vmatprep.subr.bf16.mxu1 %v14446_v10  ;;  %v15008_v46 = vunpack.i.l.bf16 %v15007_v1 }
0x11ba   :  { %v15004_v20 = vunpack.i.h.bf16 %v15002_v38  ;;  %v15003_v43 = vunpack.i.l.bf16 %v15002_v38  ;;  %14449 = vmatpush3.bf16.msra.mxu1 %v14446_v10 }
0x11bc   :  { %v14450_v4 = vpack.c.bf16 %v15004_v20, %v15003_v43  ;;  %v15017_v9 = vpop.permute.xlu0 %15016 }
0x11bd   :  { %v15012_v2 = vpop.permute.xlu1 %15011  ;;  %v15019_v21 = vunpack.i.h.bf16 %v15017_v9  ;;  %v15018_v10 = vunpack.i.l.bf16 %v15017_v9 }
0x11be   :  { %v15014_v42 = vunpack.i.h.bf16 %v15012_v2  ;;  %v15013_v5 = vunpack.i.l.bf16 %v15012_v2  ;;  %14451 = vmatprep.subr.bf16.mxu1 %v14450_v4 }
0x11bf   :  { %v15282_v47 = vpop.eup %15281  ;;  %14453 = vmatpush3.bf16.msra.mxu1 %v14450_v4  ;;  %v14458_v2 = vpack.c.bf16 %v15019_v21, %v15018_v10 }
0x11c0   :  { %v15284_v13 = vpop.eup %15283  ;;  %v6186_v58 = vmul.f32 %v15282_v47, %v16456_v31  ;;  %v14462_v16 = vpack.c.bf16 %v15014_v42, %v15013_v5  ;;  %v15027_v36 = vpop.permute.xlu0 %15026  ;;  %v15009_v31 = vunpack.i.h.bf16 %v15007_v1 }
0x11c1   :  { %v6185_v57 = vmul.f32 %v15284_v13, %v16459_v59  ;;  %v15022_v50 = vpop.permute.xlu1 %15021  ;;  %v15029_v43 = vunpack.i.h.bf16 %v15027_v36  ;;  %v15028_v4 = vunpack.i.l.bf16 %v15027_v36 }
0x11c2   :  { %v6192_v45 = vmul.f32 %v6190_v8, %v6186_v58  ;;  %14463 = vmatprep.subr.bf16.mxu1 %v14462_v16  ;;  %v15024_v25 = vunpack.i.h.bf16 %v15022_v50  ;;  %v15023_v26 = vunpack.i.l.bf16 %v15022_v50  ;;  %v14454_v52 = vpack.c.bf16 %v15009_v31, %v15008_v46 }
0x11c3   :  { %v6191_v3 = vmul.f32 %v6190_v8, %v6185_v57  ;;  %v14470_v47 = vpack.c.bf16 %v15029_v43, %v15028_v4 }
0x11c4   :  { %v16524_v39 = vpop.permute.xlu0 %15036  ;;  %v16528_v41 = vadd.f32 %v6196_v12, %v6192_v45  ;;  %v14466_v59 = vpack.c.bf16 %v15024_v25, %v15023_v26 }
0x11c5   :  { %v16526_v19 = vadd.f32 %v6196_v12, %v6191_v3  ;;  %v15032_v23 = vpop.permute.xlu1 %15031  ;;  %v15039_v13 = vunpack.i.h.bf16 %v16524_v39  ;;  %v15038_v58 = vunpack.i.l.bf16 %v16524_v39 }
0x11c6   :  { %v15034_v61 = vunpack.i.h.bf16 %v15032_v23  ;;  %v15033_v40 = vunpack.i.l.bf16 %v15032_v23 }
0x11c7   :  { %13577 = vmatprep.mubr.msk.f32.mxu0 %vm322_vm6, %v16526_v19  ;;  %13599 = vmatprep.mubr.msk.f32.mxu1 %vm322_vm6, %v16526_v19  ;;  %v14474_v3 = vpack.c.bf16 %v15039_v13, %v15038_v58 }
0x11c8   :  { %13578 = vmatmul.mubr.msk.f32.vlgmr.msra.gmra.mrb[64].mxu0 %vm322_vm6, %v16528_v41  ;;  %13600 = vmatmul.mubr.msk.f32.vlgmr.msra.gmra.mrb[74].mxu1 %vm322_vm6, %v16528_v41  ;;  %v15047_v48 = vpop.permute.xlu0 %15046  ;;  %v14478_v49 = vpack.c.bf16 %v15034_v61, %v15033_v40 }
0x11c9   :  { %14441 = vmatpush3.bf16.msra.mxu0 %v16467_v11  ;;  %14465 = vmatpush3.bf16.msra.mxu1 %v14462_v16  ;;  %v15042_v32 = vpop.permute.xlu1 %15041  ;;  %v15049_v50 = vunpack.i.h.bf16 %v15047_v48  ;;  %v15048_v45 = vunpack.i.l.bf16 %v15047_v48 }
0x11ca   :  { %14443 = vmatprep.subr.bf16.mxu0 %v14442_v27  ;;  %13588 = vmatprep.mubr.msk.f32.mxu0 %vm322_vm6, %v16526_v19  ;;  %v15044_v1 = vunpack.i.h.bf16 %v15042_v32  ;;  %v15043_v38 = vunpack.i.l.bf16 %v15042_v32 }
0x11cb   :  { %13621 = vmatprep.mubr.msk.f32.mxu1 %vm322_vm6, %v16526_v19  ;;  %14467 = vmatprep.subr.bf16.mxu1 %v14466_v59  ;;  %v14486_v31 = vpack.c.bf16 %v15049_v50, %v15048_v45 }
0x11cc   :  { %v15057_v11 = vpop.permute.xlu0 %15056  ;;  %v14482_v5 = vpack.c.bf16 %v15044_v1, %v15043_v38 }
0x11cd   :  { %14445 = vmatpush3.bf16.msra.mxu0 %v14442_v27  ;;  %14469 = vmatpush3.bf16.msra.mxu1 %v14466_v59  ;;  %v15052_v20 = vpop.permute.xlu1 %15051  ;;  %v15059_v23 = vunpack.i.h.bf16 %v15057_v11  ;;  %v15058_v46 = vunpack.i.l.bf16 %v15057_v11 }
0x11ce   :  { %14455 = vmatprep.subr.bf16.mxu0 %v14454_v52  ;;  %14479 = vmatprep.subr.bf16.mxu1 %v14478_v49  ;;  %v15054_v8 = vunpack.i.h.bf16 %v15052_v20  ;;  %v15053_v42 = vunpack.i.l.bf16 %v15052_v20 }
0x11cf   :  { %v14490_v32 = vpack.c.bf16 %v15059_v23, %v15058_v46 }
0x11d0   :  { %13589 = vmatmul.mubr.msk.f32.vlgmr.msra.gmra.mrb[66].mxu0 %vm322_vm6, %v16528_v41  ;;  %13622 = vmatmul.mubr.msk.f32.vlgmr.msra.gmra.mrb[76].mxu1 %vm322_vm6, %v16528_v41  ;;  %v14494_v16 = vpack.c.bf16 %v15054_v8, %v15053_v42  ;;  %v15067_v36 = vpop.permute.xlu0 %15066 }
0x11d1   :  { %14457 = vmatpush3.bf16.msra.mxu0 %v14454_v52  ;;  %13610 = vmatprep.mubr.msk.f32.mxu0 %vm322_vm6, %v16526_v19  ;;  %v15062_v9 = vpop.permute.xlu1 %15061  ;;  %v15069_v25 = vunpack.i.h.bf16 %v15067_v36  ;;  %v15068_v26 = vunpack.i.l.bf16 %v15067_v36 }
0x11d2   :  { %14481 = vmatpush3.bf16.msra.mxu1 %v14478_v49  ;;  %13643 = vmatprep.mubr.msk.f32.mxu1 %vm322_vm6, %v16526_v19  ;;  %v15064_v12 = vunpack.i.h.bf16 %v15062_v9  ;;  %v15063_v57 = vunpack.i.l.bf16 %v15062_v9 }
0x11d3   :  { %14459 = vmatprep.subr.bf16.mxu0 %v14458_v2  ;;  %14483 = vmatprep.subr.bf16.mxu1 %v14482_v5  ;;  %v14510_v61 = vpack.c.bf16 %v15069_v25, %v15068_v26 }
0x11d4   :  { %v14498_v30 = vpack.c.bf16 %v15064_v12, %v15063_v57  ;;  %v15077_v51 = vpop.permute.xlu0 %15076 }
0x11d5   :  { %14461 = vmatpush3.bf16.msra.mxu0 %v14458_v2  ;;  %v15072_v39 = vpop.permute.xlu1 %15071  ;;  %v15079_v40 = vunpack.i.h.bf16 %v15077_v51  ;;  %v15078_v59 = vunpack.i.l.bf16 %v15077_v51 }
0x11d6   :  { %14485 = vmatpush3.bf16.msra.mxu1 %v14482_v5  ;;  %14471 = vmatprep.subr.bf16.mxu0 %v14470_v47  ;;  %v15074_v27 = vunpack.i.h.bf16 %v15072_v39  ;;  %v15073_v48 = vunpack.i.l.bf16 %v15072_v39 }
0x11d7   :  { %14495 = vmatprep.subr.bf16.mxu1 %v14494_v16  ;;  %v14514_v49 = vpack.c.bf16 %v15079_v40, %v15078_v59 }
0x11d8   :  { %13611 = vmatmul.mubr.msk.f32.vlgmr.msra.gmra.mrb[68].mxu0 %vm322_vm6, %v16528_v41  ;;  %v14502_v21 = vpack.c.bf16 %v15074_v27, %v15073_v48  ;;  %v15087_v38 = vpop.permute.xlu0 %15086 }
0x11d9   :  { %13644 = vmatmul.mubr.msk.f32.vlgmr.msra.gmra.mrb[78].mxu1 %vm322_vm6, %v16528_v41  ;;  %14473 = vmatpush3.bf16.msra.mxu0 %v14470_v47  ;;  %v15082_v52 = vpop.permute.xlu1 %15081  ;;  %v15089_v11 = vunpack.i.h.bf16 %v15087_v38  ;;  %v15088_v43 = vunpack.i.l.bf16 %v15087_v38 }
0x11da   :  { %13632 = vmatprep.mubr.msk.f32.mxu0 %vm322_vm6, %v16526_v19  ;;  %14497 = vmatpush3.bf16.msra.mxu1 %v14494_v16  ;;  %v15084_v10 = vunpack.i.h.bf16 %v15082_v52  ;;  %v15083_v1 = vunpack.i.l.bf16 %v15082_v52 }
0x11db   :  { %13665 = vmatprep.mubr.msk.f32.mxu1 %vm322_vm6, %v16526_v19  ;;  %14475 = vmatprep.subr.bf16.mxu0 %v14474_v3  ;;  %v14518_v2 = vpack.c.bf16 %v15089_v11, %v15088_v43 }
0x11dc   :  { %14499 = vmatprep.subr.bf16.mxu1 %v14498_v30  ;;  %v14506_v20 = vpack.c.bf16 %v15084_v10, %v15083_v1  ;;  %v6575_v16 = vpop.permute.xlu0 %6574 }
0x11dd   :  { %14477 = vmatpush3.bf16.msra.mxu0 %v14474_v3  ;;  %v15092_v4 = vpop.permute.xlu1 %15091 }
0x11de   :  { %14501 = vmatpush3.bf16.msra.mxu1 %v14498_v30  ;;  %14487 = vmatprep.subr.bf16.mxu0 %v14486_v31  ;;  %v15094_v8 = vunpack.i.h.bf16 %v15092_v4  ;;  %v15093_v42 = vunpack.i.l.bf16 %v15092_v4  ;;  %v16629_v4 = vrot.slane %v16496_v56, %v15752_v53 }
0x11df   :  { %14511 = vmatprep.subr.bf16.mxu1 %v14510_v61 }
0x11e0   :  { %13633 = vmatmul.mubr.msk.f32.vlgmr.msra.gmra.mrb[70].mxu0 %vm322_vm6, %v16528_v41  ;;  %v14522_v5 = vpack.c.bf16 %v15094_v8, %v15093_v42  ;;  %v6846_v27 = vpop.permute.xlu0 %6845 }
0x11e1   :  { %13666 = vmatmul.mubr.msk.f32.vlgmr.msra.gmra.mrb[80].mxu1 %vm322_vm6, %v16528_v41  ;;  %14489 = vmatpush3.bf16.msra.mxu0 %v14486_v31  ;;  %v6484_v25 = vpop.permute.xlu1 %6483 }
0x11e2   :  { %13654 = vmatprep.mubr.msk.f32.mxu0 %vm322_vm6, %v16526_v19  ;;  %14513 = vmatpush3.bf16.msra.mxu1 %v14510_v61 }
0x11e3   :  { %13687 = vmatprep.mubr.msk.f32.mxu1 %vm322_vm6, %v16526_v19  ;;  %14491 = vmatprep.subr.bf16.mxu0 %v14490_v32 }
0x11e4   :  { %14515 = vmatprep.subr.bf16.mxu1 %v14514_v49  ;;  %v7116_v10 = vpop.permute.xlu0 %7115 }
0x11e5   :  { %14493 = vmatpush3.bf16.msra.mxu0 %v14490_v32  ;;  %v6756_v48 = vpop.permute.xlu1 %6755 }
0x11e6   :  { %14517 = vmatpush3.bf16.msra.mxu1 %v14514_v49  ;;  %14503 = vmatprep.subr.bf16.mxu0 %v14502_v21 }
0x11e7   :  { %13701 = vmatprep.subr.mxu1 %v15371_v24 }
0x11e8   :  { %13655 = vmatmul.mubr.msk.f32.vlgmr.msra.gmra.mrb[72].mxu0 %vm322_vm6, %v16528_v41 }
0x11e9   :  { %13688 = vmatmul.mubr.msk.f32.vlgmr.msra.gmra.mrb[82].mxu1 %vm322_vm6, %v16528_v41  ;;  %14505 = vmatpush3.bf16.msra.mxu0 %v14502_v21  ;;  %v7026_v8 = vpop.permute.xlu1 %7025 }
0x11ea   :  { %13676 = vmatprep.mubr.msk.f32.mxu0 %vm322_vm6, %v16526_v19  ;;  %14507 = vmatprep.subr.bf16.mxu0 %v14506_v20 }
0x11eb   :  { %13703 = vmatprep.mubr.msk.f32.mxu1 %vm15383_vm7, %v15371_v24 }
0x11ed   :  { %14509 = vmatpush3.bf16.msra.mxu0 %v14506_v20 }
0x11ee   :  { %14519 = vmatprep.subr.bf16.mxu0 %v14518_v2 }
0x11f0   :  { %13677 = vmatmul.mubr.msk.f32.vlgmr.msra.gmra.mrb[74].mxu0 %vm322_vm6, %v16528_v41 }
0x11f1   :  { %14521 = vmatpush3.bf16.msra.mxu0 %v14518_v2  ;;  %13698 = vmatprep.mubr.msk.f32.mxu0 %vm322_vm6, %v16526_v19 }
0x11f2   :  { %14523 = vmatprep.subr.bf16.mxu0 %v14522_v5 }
0x11f5   :  { %14525 = vmatpush3.bf16.msra.mxu0 %v14522_v5 }
0x11f6   :  { %13711 = vmatprep.subr.mxu0 %v15371_v24 }
0x11f8   :  { %13699 = vmatmul.mubr.msk.f32.vlgmr.msra.gmra.mrb[76].mxu0 %vm322_vm6, %v16528_v41 }
0x11f9   :  { %13713 = vmatprep.mubr.msk.f32.mxu0 %vm15383_vm7, %v15371_v24 }
0x129b   :  { %v13579_v9 = vpop.f32.mrb[64].mxu0  ;;  %v16587_v47 = vpop.f32.mrb[74].mxu1 }
0x129c   :  { %v6275_v13 = vpop.f32.mrb[65].mxu0  ;;  %v16589_v58 = vpop.f32.mrb[75].mxu1  ;;  %v6281_v30 = vadd.f32 %v13579_v9, %v16504_v6 }
0x129d   :  { %v6276_v41 = vadd.f32 %v6275_v13, %v16504_v6  ;;  %v6467_v13 = vadd.f32 %v16587_v47, %v16629_v4 }
0x12a3   :  { %v13590_v36 = vpop.f32.mrb[66].mxu0  ;;  %v13623_v12 = vpop.f32.mrb[76].mxu1 }
0x12a4   :  { %v6370_v19 = vpop.f32.mrb[67].mxu0  ;;  %v6643_v57 = vpop.f32.mrb[77].mxu1  ;;  %v6376_v3 = vadd.f32 %v13590_v36, %v16500_v18  ;;  %v6649_v31 = vadd.f32 %v13623_v12, %v6575_v16  ;;  %v6462_v36 = vadd.f32 %v16589_v58, %v16629_v4 }
0x12a5   :  { %v6371_v50 = vadd.f32 %v6370_v19, %v16500_v18  ;;  %v6644_v45 = vadd.f32 %v6643_v57, %v6575_v16 }
0x12a7   :  { %13702 = vmatpush3.xpose.msk.msra.mxu1 %vm1446_vm8, %v6371_v50  ;;  %13712 = vmatpush3.xpose.msk.msra.mxu0 %vm1446_vm8, %v6644_v45 }
0x12a8   :  { %13706 = vmatprep.subr.mxu1 %v15371_v24  ;;  %13721 = vmatprep.subr.mxu0 %v15371_v24 }
0x12aa   :  { %13704 = vmatmul.mubr.msk.f32.vlgmr.msra.gmra.mrb[84].mxu1 %vm1446_vm8, %v6276_v41 }
0x12ab   :  { %v13612_v26 = vpop.f32.mrb[68].mxu0  ;;  %13707 = vmatpush3.xpose.msk.msra.mxu1 %vm1446_vm8, %v6376_v3  ;;  %13708 = vmatprep.mubr.msk.f32.mxu1 %vm15383_vm7, %v15371_v24 }
0x12ac   :  { %v13645_v51 = vpop.f32.mrb[78].mxu1  ;;  %v6552_v39 = vpop.f32.mrb[69].mxu0  ;;  %13716 = vmatprep.subr.mxu1 %v15371_v24  ;;  %v6558_v18 = vadd.f32 %v13612_v26, %v6484_v25 }
0x12ad   :  { %v6553_v23 = vadd.f32 %v6552_v39, %v6484_v25  ;;  %v6824_v46 = vpop.f32.mrb[79].mxu1  ;;  %v6830_v20 = vadd.f32 %v13645_v51, %v6756_v48 }
0x12ae   :  { %13709 = vmatmul.mubr.msk.f32.vlgmr.msra.gmra.mrb[86].mxu1 %vm1446_vm8, %v6281_v30  ;;  %v6825_v11 = vadd.f32 %v6824_v46, %v6756_v48 }
0x12af   :  { %13714 = vmatmul.mubr.msk.f32.vlgmr.msra.gmra.mrb[78].mxu0 %vm1446_vm8, %v6553_v23  ;;  %13717 = vmatpush3.xpose.msk.msra.mxu1 %vm1446_vm8, %v6649_v31 }
0x12b0   :  { %13718 = vmatprep.mubr.msk.f32.mxu1 %vm15383_vm7, %v15371_v24  ;;  %13726 = vmatprep.subr.mxu1 %v15371_v24 }
0x12b1   :  { %13723 = vmatprep.mubr.msk.f32.mxu0 %vm15383_vm7, %v15371_v24 }
0x12b2   :  { %13719 = vmatmul.mubr.msk.f32.vlgmr.msra.gmra.mrb[88].mxu1 %vm1446_vm8, %v6558_v18 }
0x12b3   :  { %v16613_v6 = vpop.f32.mrb[70].mxu0  ;;  %13728 = vmatprep.mubr.msk.f32.mxu1 %vm15383_vm7, %v15371_v24 }
0x12b4   :  { %v16617_v61 = vpop.f32.mrb[80].mxu1  ;;  %v16619_v40 = vpop.f32.mrb[71].mxu0 }
0x12b5   :  { %v16621_v59 = vpop.f32.mrb[81].mxu1 }
0x12bb   :  { %v13656_v32 = vpop.f32.mrb[72].mxu0 }
0x12bc   :  { %v6920_v52 = vadd.f32 %v13656_v32, %v6846_v27  ;;  %v13689_v49 = vpop.f32.mrb[82].mxu1  ;;  %v6914_v21 = vpop.f32.mrb[73].mxu0 }
0x12bd   :  { %v6915_v1 = vadd.f32 %v6914_v21, %v6846_v27  ;;  %v7184_v38 = vpop.f32.mrb[83].mxu1  ;;  %v7190_v43 = vadd.f32 %v13689_v49, %v7116_v10 }
0x12be   :  { %13727 = vmatpush3.xpose.msk.msra.mxu1 %vm1446_vm8, %v6920_v52  ;;  %v7185_v2 = vadd.f32 %v7184_v38, %v7116_v10 }
0x12bf   :  { %13722 = vmatpush3.xpose.msk.msra.mxu0 %vm1446_vm8, %v6915_v1  ;;  %13736 = vmatprep.subr.mxu1 %v15371_v24 }
0x12c0   :  { %13731 = vmatprep.subr.mxu0 %v15371_v24 }
0x12c1   :  { %13729 = vmatmul.mubr.msk.f32.vlgmr.msra.gmra.mrb[90].mxu1 %vm1446_vm8, %v6830_v20 }
0x12c2   :  { %13724 = vmatmul.mubr.msk.f32.vlgmr.msra.gmra.mrb[80].mxu0 %vm1446_vm8, %v6825_v11  ;;  %13737 = vmatpush3.xpose.msk.msra.mxu1 %vm1446_vm8, %v7190_v43 }
0x12c3   :  { %v13678_v42 = vpop.f32.mrb[74].mxu0  ;;  %13732 = vmatpush3.xpose.msk.msra.mxu0 %vm1446_vm8, %v7185_v2  ;;  %13738 = vmatprep.mubr.msk.f32.mxu1 %vm15383_vm7, %v15371_v24 }
0x12c4   :  { %v7100_v5 = vadd.f32 %v13678_v42, %v7026_v8  ;;  %v7094_v9 = vpop.f32.mrb[75].mxu0  ;;  %13746 = vmatprep.subr.mxu1 %v15371_v24  ;;  %13733 = vmatprep.mubr.msk.f32.mxu0 %vm15383_vm7, %v15371_v24 }
0x12c5   :  { %v7095_v16 = vadd.f32 %v7094_v9, %v7026_v8  ;;  %13741 = vmatprep.subr.mxu0 %v15371_v24 }
0x12c6   :  { %13739 = vmatmul.mubr.msk.f32.vlgmr.msra.gmra.mrb[92].mxu1 %vm1446_vm8, %v7100_v5 }
0x12c7   :  { %13747 = vmatpush3.msra.mxu1 %v6467_v13  ;;  %13734 = vmatmul.mubr.msk.f32.vlgmr.msra.gmra.mrb[82].mxu0 %vm1446_vm8, %v7095_v16 }
0x12c8   :  { %13742 = vmatpush3.msra.mxu0 %v6462_v36  ;;  %13743 = vmatprep.mubr.msk.f32.mxu0 %vm15383_vm7, %v15371_v24 }
0x12c9   :  { %13751 = vmatprep.subr.mxu0 %v15371_v24  ;;  %13748 = vmatprep.mubr.msk.f32.mxu1 %vm15383_vm7, %v15371_v24 }
0x12ca   :  { %13756 = vmatprep.subr.mxu1 %v15371_v24 }
0x12cb   :  { %v16653_v47 = vpop.f32.mrb[76].mxu0 }
0x12cc   :  { %v16655_v12 = vpop.f32.mrb[77].mxu0 }
0x137d   :  { %v7355_v58 = vpop.f32.mrb[84].mxu1 }
0x137e   :  { %v7356_v19 = vadd.f32 %v7355_v58, %v15789_v7  ;;  %v13705_v57 = vpop.f32.mrb[85].mxu1 }
0x1380   :  { %v7891_v50 = vsel %vm1446_vm8, %v7356_v19, -inf }
0x1381   :  { %7892 = vmax.xlane.f32.xlu0 %v7891_v50  ;;  %v7431_v45 = vpop.f32.mrb[86].mxu1 }
0x1382   :  { %v7432_v41 = vadd.f32 %v7431_v45, %v15789_v7  ;;  %v13710_v3 = vpop.f32.mrb[87].mxu1  ;;  %v7507_v25 = vpop.f32.mrb[78].mxu0 }
0x1383   :  { %v7508_v26 = vadd.f32 %v7507_v25, %v15789_v7  ;;  %v13715_v30 = vpop.f32.mrb[79].mxu0 }
0x1384   :  { %v7894_v51 = vsel %vm1446_vm8, %v7432_v41, -inf }
0x1385   :  { %7895 = vmax.xlane.f32.xlu1 %v7894_v51  ;;  %v7583_v39 = vpop.f32.mrb[88].mxu1  ;;  %v7897_v31 = vsel %vm1446_vm8, %v7508_v26, -inf }
0x1386   :  { %v7584_v23 = vadd.f32 %v7583_v39, %v15789_v7  ;;  %7898 = vmax.xlane.f32.xlu0 %v7897_v31  ;;  %v13720_v46 = vpop.f32.mrb[89].mxu1 }
0x1388   :  { %v7900_v18 = vsel %vm1446_vm8, %v7584_v23, -inf }
0x138a   :  { %7901 = vmax.xlane.f32.xlu0 %v7900_v18 }
0x1394   :  { %v7735_v27 = vpop.f32.mrb[90].mxu1 }
0x1395   :  { %v7736_v48 = vadd.f32 %v7735_v27, %v15789_v7  ;;  %v7659_v32 = vpop.f32.mrb[80].mxu0  ;;  %v13730_v52 = vpop.f32.mrb[91].mxu1 }
0x1396   :  { %v7660_v49 = vadd.f32 %v7659_v32, %v15789_v7  ;;  %v13725_v21 = vpop.f32.mrb[81].mxu0 }
0x1397   :  { %v7906_v10 = vsel %vm1446_vm8, %v7736_v48, -inf }
0x1398   :  { %7907 = vmax.xlane.f32.xlu0 %v7906_v10  ;;  %v7903_v1 = vsel %vm1446_vm8, %v7660_v49, -inf }
0x1399   :  { %7904 = vmax.xlane.f32.xlu1 %v7903_v1  ;;  %v7887_v38 = vpop.f32.mrb[92].mxu1 }
0x139a   :  { %v7888_v20 = vadd.f32 %v7887_v38, %v15789_v7  ;;  %v7811_v11 = vpop.f32.mrb[82].mxu0  ;;  %v13740_v43 = vpop.f32.mrb[93].mxu1 }
0x139b   :  { %v7812_v2 = vadd.f32 %v7811_v11, %v15789_v7  ;;  %v13735_v8 = vpop.f32.mrb[83].mxu0 }
0x139c   :  { %v7912_v42 = vsel %vm1446_vm8, %v7888_v20, -inf }
0x139d   :  { %7913 = vmax.xlane.f32.xlu0 %v7912_v42  ;;  %v7909_v5 = vsel %vm1446_vm8, %v7812_v2, -inf }
0x139e   :  { %7910 = vmax.xlane.f32.xlu1 %v7909_v5 }
0x13af   :  { %6665 = vrot.lane.b32.xlu1 %v16629_v4, %s15379_s20 }
0x140e   :  { %v7893_v9 = vpop.xlane.xlu0 %7892 }
0x140f   :  { %v7915_v13 = vsub.f32 %v7356_v19, %v7893_v9 }
0x1411   :  { %v7923_v16 = vmul.f32 1.442695, %v7915_v13 }
0x1412   :  { %v7896_v36 = vpop.xlane.xlu1 %7895 }
0x1413   :  { %15285 = vpow2.f32 %v7923_v16  ;;  %v7916_v58 = vsub.f32 %v7432_v41, %v7896_v36  ;;  %v7899_v57 = vpop.xlane.xlu0 %7898 }
0x1414   :  { %v7917_v50 = vsub.f32 %v7508_v26, %v7899_v57 }
0x1415   :  { %v7925_v45 = vmul.f32 1.442695, %v7916_v58 }
0x1416   :  { %v7927_v7 = vmul.f32 1.442695, %v7917_v50 }
0x1417   :  { %15287 = vpow2.f32 %v7925_v45  ;;  %v7902_v3 = vpop.xlane.xlu0 %7901 }
0x1418   :  { %15289 = vpow2.f32 %v7927_v7  ;;  %v7918_v25 = vsub.f32 %v7584_v23, %v7902_v3 }
0x141a   :  { %v7929_v30 = vmul.f32 1.442695, %v7918_v25 }
0x141c   :  { %15291 = vpow2.f32 %v7929_v30 }
0x141d   :  { %v15286_v51 = vpop.eup %15285 }
0x141e   :  { %v7939_v39 = vsel %vm1446_vm8, %v15286_v51, 0.0 }
0x141f   :  { %7940 = vadd.xlane.f32.xlu1 %v7939_v39 }
0x1421   :  { %v15288_v31 = vpop.eup %15287 }
0x1422   :  { %v15290_v19 = vpop.eup %15289  ;;  %v7942_v46 = vsel %vm1446_vm8, %v15288_v31, 0.0 }
0x1423   :  { %7943 = vadd.xlane.f32.xlu0 %v7942_v46  ;;  %v7945_v41 = vsel %vm1446_vm8, %v15290_v19, 0.0 }
0x1424   :  { %7946 = vadd.xlane.f32.xlu1 %v7945_v41 }
0x1425   :  { %v7908_v26 = vpop.xlane.xlu0 %7907 }
0x1426   :  { %v16678_v18 = vpop.eup %15291  ;;  %v7920_v27 = vsub.f32 %v7736_v48, %v7908_v26  ;;  %v7905_v32 = vpop.xlane.xlu1 %7904 }
0x1427   :  { %v7919_v23 = vsub.f32 %v7660_v49, %v7905_v32  ;;  %v7948_v52 = vsel %vm1446_vm8, %v16678_v18, 0.0 }
0x1428   :  { %v7933_v21 = vmul.f32 1.442695, %v7920_v27  ;;  %7949 = vadd.xlane.f32.xlu0 %v7948_v52 }
0x1429   :  { %v7931_v10 = vmul.f32 1.442695, %v7919_v23 }
0x142a   :  { %15293 = vpow2.f32 %v7933_v21  ;;  %v7914_v1 = vpop.xlane.xlu0 %7913 }
0x142b   :  { %15295 = vpow2.f32 %v7931_v10  ;;  %v7922_v38 = vsub.f32 %v7888_v20, %v7914_v1  ;;  %v7911_v11 = vpop.xlane.xlu1 %7910 }
0x142c   :  { %v7921_v43 = vsub.f32 %v7812_v2, %v7911_v11 }
0x142d   :  { %v7937_v8 = vmul.f32 1.442695, %v7922_v38 }
0x142e   :  { %v7935_v42 = vmul.f32 1.442695, %v7921_v43 }
0x142f   :  { %15297 = vpow2.f32 %v7937_v8  ;;  %v6666_v36 = vpop.permute.xlu1 %6665 }
0x1430   :  { %15299 = vpow2.f32 %v7935_v42  ;;  %v6735_v7 = vadd.f32 %v16619_v40, %v6666_v36  ;;  %v6740_v3 = vadd.f32 %v16613_v6, %v6666_v36 }
0x1434   :  { %v16682_v5 = vpop.eup %15293 }
0x1435   :  { %v16684_v48 = vpop.eup %15295  ;;  %v7954_v49 = vsel %vm1446_vm8, %v16682_v5, 0.0 }
0x1436   :  { %7955 = vadd.xlane.f32.xlu0 %v7954_v49  ;;  %v7951_v9 = vsel %vm1446_vm8, %v16684_v48, 0.0 }
0x1437   :  { %7952 = vadd.xlane.f32.xlu1 %v7951_v9 }
0x1439   :  { %v16690_v13 = vpop.eup %15297 }
0x143a   :  { %v16692_v20 = vpop.eup %15299  ;;  %v7960_v2 = vsel %vm1446_vm8, %v16690_v13, 0.0 }
0x143b   :  { %7961 = vadd.xlane.f32.xlu0 %v7960_v2  ;;  %v7957_v16 = vsel %vm1446_vm8, %v16692_v20, 0.0 }
0x143c   :  { %7958 = vadd.xlane.f32.xlu1 %v7957_v16 }
0x144d   :  { %7205 = vrot.lane.b32.xlu1 %v16629_v4, %s15377_s18 }
0x1451   :  { %6935 = vrot.lane.b32.xlu0 %v16629_v4, %s15375_s16  ;;  %8563 = vrot.lane.b32.xlu1 %v16431_v37, %s15385_s26 }
0x1455   :  { %8653 = vrot.lane.b32.xlu0 %v16436_v22, %s15385_s26  ;;  %8739 = vrot.lane.b32.xlu1 %v16444_v60, %s15385_s26 }
0x1459   :  { %8825 = vrot.lane.b32.xlu0 %v16449_v44, %s15385_s26 }
0x14ac   :  { %v7941_v58 = vpop.xlane.xlu1 %7940 }
0x14ad   :  { %15301 = vrcp.f32 %v7941_v58 }
0x14b0   :  { %v7944_v57 = vpop.xlane.xlu0 %7943 }
0x14b1   :  { %15303 = vrcp.f32 %v7944_v57  ;;  %v7947_v50 = vpop.xlane.xlu1 %7946 }
0x14b2   :  { %15305 = vrcp.f32 %v7947_v50 }
0x14b5   :  { %v7950_v4 = vpop.xlane.xlu0 %7949 }
0x14b6   :  { %15307 = vrcp.f32 %v7950_v4 }
0x14b7   :  { %v15302_v45 = vpop.eup %15301 }
0x14b8   :  { %v7971_v37 = vmul.f32 %v15302_v45, %v15286_v51  ;;  %v16756_v45 = vld [vmem:[%s17291_s1] sm:$0xff] }
0x14ba   :  { %13744 = vmatmul.mubr.msk.f32.vlgmr.msra.gmra.mrb[84].mxu0 %vm1446_vm8, %v7971_v37  ;;  %v8650_v37 = vrot.slane %v16496_v56, %v15892_v63 }
0x14bb   :  { %v15304_v22 = vpop.eup %15303  ;;  %13752 = vmatpush3.msra.mxu0 %v6735_v7  ;;  %13753 = vmatprep.mubr.msk.f32.mxu0 %vm15383_vm7, %v15371_v24 }
0x14bc   :  { %v15306_v60 = vpop.eup %15305  ;;  %v7972_v44 = vmul.f32 %v15304_v22, %v15288_v31  ;;  %13761 = vmatprep.subr.mxu0 %v15371_v24 }
0x14bd   :  { %v7973_v25 = vmul.f32 %v15306_v60, %v15290_v19 }
0x14be   :  { %13749 = vmatmul.mubr.msk.f32.vlgmr.msra.gmra.mrb[94].mxu1 %vm1446_vm8, %v7972_v44 }
0x14bf   :  { %13757 = vmatpush3.msra.mxu1 %v6740_v3  ;;  %13754 = vmatmul.mubr.msk.f32.vlgmr.msra.gmra.mrb[86].mxu0 %vm1446_vm8, %v7973_v25 }
0x14c0   :  { %v15308_v40 = vpop.eup %15307  ;;  %13758 = vmatprep.mubr.msk.f32.mxu1 %vm15383_vm7, %v15371_v24  ;;  %13766 = vmatprep.subr.mxu1 %v15371_v24 }
0x14c1   :  { %v7974_v30 = vmul.f32 %v15308_v40, %v16678_v18  ;;  %13763 = vmatprep.mubr.msk.f32.mxu0 %vm15383_vm7, %v15371_v24 }
0x14c3   :  { %13759 = vmatmul.mubr.msk.f32.vlgmr.msra.gmra.mrb[96].mxu1 %vm1446_vm8, %v7974_v30  ;;  %v7956_v6 = vpop.xlane.xlu0 %7955 }
0x14c4   :  { %15309 = vrcp.f32 %v7956_v6  ;;  %v7953_v51 = vpop.xlane.xlu1 %7952  ;;  %13768 = vmatprep.mubr.msk.f32.mxu1 %vm15383_vm7, %v15371_v24 }
0x14c5   :  { %15311 = vrcp.f32 %v7953_v51 }
0x14c8   :  { %v7962_v39 = vpop.xlane.xlu0 %7961 }
0x14c9   :  { %15313 = vrcp.f32 %v7962_v39  ;;  %v7959_v31 = vpop.xlane.xlu1 %7958 }
0x14ca   :  { %15315 = vrcp.f32 %v7959_v31 }
0x14cc   :  { %v6936_v19 = vpop.permute.xlu0 %6935 }
0x14cd   :  { %v7005_v46 = vadd.f32 %v16621_v59, %v6936_v19  ;;  %v7010_v41 = vadd.f32 %v16617_v61, %v6936_v19  ;;  %v7206_v26 = vpop.permute.xlu1 %7205 }
0x14ce   :  { %v15310_v18 = vpop.eup %15309  ;;  %v7280_v27 = vadd.f32 %v16653_v47, %v7206_v26  ;;  %v7275_v21 = vadd.f32 %v16655_v12, %v7206_v26  ;;  %v16787_v26 = vld [vmem:[%s17289_s2 + $0x68] sm:$0xff] }
0x14cf   :  { %v15312_v32 = vpop.eup %15311  ;;  %v7976_v23 = vmul.f32 %v15310_v18, %v16682_v5  ;;  %13762 = vmatpush3.msra.mxu0 %v7005_v46  ;;  %13767 = vmatpush3.msra.mxu1 %v7010_v41  ;;  %v16792_v18 = vld [vmem:[%s17289_s2 + $0x80] sm:$0xff] }
0x14d0   :  { %v7975_v52 = vmul.f32 %v15312_v32, %v16684_v48  ;;  %13776 = vmatprep.subr.mxu1 %v15371_v24  ;;  %13771 = vmatprep.subr.mxu0 %v15371_v24  ;;  %v8654_v1 = vpop.permute.xlu0 %8653  ;;  %v16799_v32 = vld [vmem:[%s17289_s2 + $0x98] sm:$0xff] }
0x14d1   :  { %13769 = vmatmul.mubr.msk.f32.vlgmr.msra.gmra.mrb[98].mxu1 %vm1446_vm8, %v7976_v23  ;;  %v8564_v12 = vpop.permute.xlu1 %8563  ;;  %v16804_v23 = vld [vmem:[%s17289_s2 + $0xb0] sm:$0xff] }
0x14d2   :  { %13777 = vmatpush3.msra.mxu1 %v7280_v27  ;;  %13764 = vmatmul.mubr.msk.f32.vlgmr.msra.gmra.mrb[88].mxu0 %vm1446_vm8, %v7975_v52  ;;  %v15100_v27 = vpack.i.bf16 %v16792_v18, %v16787_v26  ;;  %v15105_v52 = vpack.i.bf16 %v16804_v23, %v16799_v32 }
0x14d3   :  { %v15314_v61 = vpop.eup %15313  ;;  %13772 = vmatpush3.msra.mxu0 %v7275_v21  ;;  %13778 = vmatprep.mubr.msk.f32.mxu1 %vm15383_vm7, %v15371_v24  ;;  %v14526_v21 = vpack.c.bf16 %v16792_v18, %v16787_v26 }
0x14d4   :  { %v15316_v59 = vpop.eup %15315  ;;  %v7978_v47 = vmul.f32 %v15314_v61, %v16690_v13  ;;  %13773 = vmatprep.mubr.msk.f32.mxu0 %vm15383_vm7, %v15371_v24  ;;  %13781 = vmatprep.subr.mxu0 %v8564_v12  ;;  %v8826_v13 = vpop.permute.xlu0 %8825  ;;  %v14530_v61 = vpack.c.bf16 %v16804_v23, %v16799_v32 }
0x14d5   :  { %v7977_v10 = vmul.f32 %v15316_v59, %v16692_v20  ;;  %v8740_v8 = vpop.permute.xlu1 %8739  ;;  %14527 = vmatprep.subr.bf16.mxu1 %v14526_v21  ;;  %v16835_v59 = vld [vmem:[%s17290_s4 + $0x18] sm:$0xff] }
0x14d6   :  { %13779 = vmatmul.mubr.msk.f32.vlgmr.msra.gmra.mrb[100].mxu1 %vm1446_vm8, %v7978_v47  ;;  %v16840_v47 = vrot.slane %v16835_v59, %v15631_v29 }
0x14d7   :  { %13774 = vmatmul.mubr.msk.f32.vlgmr.msra.gmra.mrb[90].mxu0 %vm1446_vm8, %v7977_v10  ;;  %14529 = vmatpush3.bf16.msra.mxu1 %v14526_v21  ;;  %v16847_v10 = vrot.slane %v16835_v59, %v15628_v28 }
0x14d8   :  { %13782 = vmatpush3.msra.mxu0 %v8564_v12  ;;  %14531 = vmatprep.subr.bf16.mxu1 %v14530_v61 }
0x14d9   :  { %13786 = vmatprep.subr.mxu0 %v8654_v1 }
0x14db   :  { %14533 = vmatpush3.bf16.msra.mxu1 %v14530_v61 }
0x158d   :  { %v8048_v38 = vpop.f32.mrb[84].mxu0 }
0x158e   :  { %v13745_v11 = vpop.f32.mrb[85].mxu0  ;;  %13783 = vmatprep.mubr.msk.f32.mxu0 %vm1446_vm8, %v8048_v38 }
0x1591   :  { %v8121_v43 = vpop.f32.mrb[94].mxu1 }
0x1592   :  { %v13750_v42 = vpop.f32.mrb[95].mxu1  ;;  %v8194_v5 = vpop.f32.mrb[86].mxu0  ;;  %13784 = vmatmul.mubr.msk.f32.vlgmr.msra.gmra.mrb[92].mxu0 %vm1446_vm8, %v8121_v43 }
0x1593   :  { %v13755_v48 = vpop.f32.mrb[87].mxu0  ;;  %13788 = vmatprep.mubr.msk.f32.mxu0 %vm1446_vm8, %v8194_v5  ;;  %13787 = vmatpush3.msra.mxu0 %v8654_v1 }
0x1594   :  { %13791 = vmatprep.subr.mxu0 %v8740_v8 }
0x1596   :  { %v8267_v49 = vpop.f32.mrb[96].mxu1 }
0x1597   :  { %v13760_v9 = vpop.f32.mrb[97].mxu1 }
0x159a   :  { %13789 = vmatmul.mubr.msk.f32.vlgmr.msra.gmra.mrb[92].mxu0 %vm1446_vm8, %v8267_v49 }
0x159b   :  { %13792 = vmatpush3.msra.mxu0 %v8740_v8 }
0x159c   :  { %13796 = vmatprep.subr.mxu0 %v8826_v13 }
0x15a4   :  { %v8413_v20 = vpop.f32.mrb[98].mxu1 }
0x15a5   :  { %v8340_v2 = vpop.f32.mrb[88].mxu0  ;;  %v13770_v16 = vpop.f32.mrb[99].mxu1 }
0x15a6   :  { %v13765_v36 = vpop.f32.mrb[89].mxu0  ;;  %13793 = vmatprep.mubr.msk.f32.mxu0 %vm1446_vm8, %v8340_v2 }
0x15a7   :  { %13794 = vmatmul.mubr.msk.f32.vlgmr.msra.gmra.mrb[92].mxu0 %vm1446_vm8, %v8413_v20 }
0x15a8   :  { %13797 = vmatpush3.msra.mxu0 %v8826_v13 }
0x15a9   :  { %v8559_v58 = vpop.f32.mrb[100].mxu1 }
0x15aa   :  { %v8486_v57 = vpop.f32.mrb[90].mxu0  ;;  %v13780_v50 = vpop.f32.mrb[101].mxu1 }
0x15ab   :  { %v13775_v4 = vpop.f32.mrb[91].mxu0  ;;  %13798 = vmatprep.mubr.msk.f32.mxu0 %vm1446_vm8, %v8486_v57 }
0x15af   :  { %13799 = vmatmul.mubr.msk.f32.vlgmr.msra.gmra.mrb[92].mxu0 %vm1446_vm8, %v8559_v58 }
0x15b0   :  { %13834 = vmatprep.mubr.msk.f32.mxu0 %vm322_vm6, %v16756_v45 }
0x1682   :  { %v13800_v7 = vpop.f32.mrb[92].mxu0 }
0x1683   :  { %v14714_v22 = vadd.f32 %v13800_v7, %v8650_v37  ;;  %v8900_v60 = vpop.f32.mrb[93].mxu0 }
0x1684   :  { %v14715_v44 = vadd.f32 %v8900_v60, %v8650_v37  ;;  %v15364_v60 = vld [vmem:[%s17290_s4 + $0x10] sm:$0xff] }
0x1685   :  { %v16763_v3 = vadd.f32 %v14714_v22, %v16420_v34 }
0x1686   :  { %v16766_v25 = vadd.f32 %v14715_v44, %v16422_v17  ;;  %v8942_v44 = vrot.slane %v15364_v60, %v16001_v55 }
0x1687   :  { %v8916_v40 = vsel %vm322_vm6, %v16763_v3, 0.0 }
0x1688   :  { %8917 = vadd.xlane.f32.xlu0 %v8916_v40  ;;  %v8913_v30 = vsel %vm322_vm6, %v16766_v25, 0.0 }
0x1689   :  { %8914 = vadd.xlane.f32.xlu1 %v8913_v30 }
0x1715   :  { %v8918_v6 = vpop.xlane.xlu0 %8917 }
0x1716   :  { %v8920_v56 = vmul.f32 0.03125, %v8918_v6  ;;  %v8915_v51 = vpop.xlane.xlu1 %8914 }
0x1717   :  { %v8919_v39 = vmul.f32 0.03125, %v8915_v51 }
0x1718   :  { %v16773_v31 = vsub.f32 %v16763_v3, %v8920_v56 }
0x1719   :  { %v16776_v34 = vsub.f32 %v16766_v25, %v8919_v39 }
0x171a   :  { %v8924_v17 = vmul.f32 %v16773_v31, %v16773_v31 }
0x171b   :  { %v8923_v19 = vmul.f32 %v16776_v34, %v16776_v34 }
0x171c   :  { %v8928_v46 = vsel %vm322_vm6, %v8924_v17, 0.0 }
0x171d   :  { %8929 = vadd.xlane.f32.xlu1 %v8928_v46  ;;  %v8925_v41 = vsel %vm322_vm6, %v8923_v19, 0.0  ;;  %v8948_v19 = vrot.slane %v15364_v60, %v16004_v0 }
0x171e   :  { %8926 = vadd.xlane.f32.xlu0 %v8925_v41 }
0x172e   :  { %15101 = vrot.lane.b32.xlu1 %v15100_v27, %s15373_s0 }
0x1732   :  { %15106 = vrot.lane.b32.xlu1 %v15105_v52, %s15372_s10 }
0x1734   :  { %15096 = vrot.lane.b32.xlu0 %v15100_v27, %s15372_s10 }
0x1736   :  { %15116 = vrot.lane.b32.xlu1 %v15100_v27, %s15379_s20 }
0x1738   :  { %15111 = vrot.lane.b32.xlu0 %v15105_v52, %s15373_s0 }
0x173a   :  { %15126 = vrot.lane.b32.xlu1 %v15105_v52, %s15379_s20 }
0x173c   :  { %15121 = vrot.lane.b32.xlu0 %v15100_v27, %s15374_s15 }
0x173e   :  { %15136 = vrot.lane.b32.xlu1 %v15100_v27, %s15380_s21 }
0x1740   :  { %15131 = vrot.lane.b32.xlu0 %v15105_v52, %s15374_s15 }
0x1742   :  { %15146 = vrot.lane.b32.xlu1 %v15105_v52, %s15380_s21 }
0x1744   :  { %15141 = vrot.lane.b32.xlu0 %v15100_v27, %s15375_s16 }
0x1746   :  { %15156 = vrot.lane.b32.xlu1 %v15100_v27, %s15381_s22 }
0x1748   :  { %15151 = vrot.lane.b32.xlu0 %v15105_v52, %s15375_s16 }
0x174a   :  { %15166 = vrot.lane.b32.xlu1 %v15105_v52, %s15381_s22 }
0x174c   :  { %15161 = vrot.lane.b32.xlu0 %v15100_v27, %s15376_s17 }
0x174e   :  { %15176 = vrot.lane.b32.xlu1 %v15100_v27, %s15382_s23 }
0x1750   :  { %15171 = vrot.lane.b32.xlu0 %v15105_v52, %s15376_s17 }
0x1752   :  { %15186 = vrot.lane.b32.xlu1 %v15100_v27, %s15377_s18 }
0x1754   :  { %15181 = vrot.lane.b32.xlu0 %v15105_v52, %s15382_s23 }
0x1756   :  { %15196 = vrot.lane.b32.xlu1 %v15100_v27, %s15378_s19  ;;  %v16869_v27 = vld [vmem:[%s17291_s1 + $0x8] sm:$0xff] }
0x1758   :  { %15191 = vrot.lane.b32.xlu0 %v15105_v52, %s15377_s18 }
0x175a   :  { %9346 = vrot.lane.b32.xlu1 %v16840_v47, %s15379_s20 }
0x175c   :  { %15201 = vrot.lane.b32.xlu0 %v15105_v52, %s15378_s19 }
0x175e   :  { %9255 = vrot.lane.b32.xlu1 %v16847_v10, %s15379_s20 }
0x1760   :  { %9637 = vrot.lane.b32.xlu0 %v16840_v47, %s15375_s16 }
0x1762   :  { %9547 = vrot.lane.b32.xlu1 %v16847_v10, %s15375_s16 }
0x1764   :  { %9927 = vrot.lane.b32.xlu0 %v16840_v47, %s15377_s18 }
0x1768   :  { %9837 = vrot.lane.b32.xlu0 %v16847_v10, %s15377_s18 }
0x17aa   :  { %v8930_v12 = vpop.xlane.xlu1 %8929 }
0x17ab   :  { %v8932_v1 = vmul.f32 0.03125, %v8930_v12  ;;  %v8927_v38 = vpop.xlane.xlu0 %8926 }
0x17ac   :  { %v8931_v11 = vmul.f32 0.03125, %v8927_v38 }
0x17ad   :  { %v8934_v43 = vadd.f32 1e-05, %v8932_v1 }
0x17ae   :  { %v8933_v8 = vadd.f32 1e-05, %v8931_v11  ;;  %v15102_v42 = vpop.permute.xlu1 %15101 }
0x17af   :  { %15317 = vrsqrt.f32 %v8934_v43  ;;  %v15097_v5 = vpop.permute.xlu0 %15096  ;;  %v15104_v48 = vunpack.i.h.bf16 %v15102_v42  ;;  %v15103_v49 = vunpack.i.l.bf16 %v15102_v42  ;;  %v16885_v42 = vld [vmem:[%s17291_s1 + $0x18] sm:$0xff] }
0x17b0   :  { %15319 = vrsqrt.f32 %v8933_v8  ;;  %v15099_v9 = vunpack.i.h.bf16 %v15097_v5  ;;  %v15098_v13 = vunpack.i.l.bf16 %v15097_v5 }
0x17b1   :  { %v14542_v20 = vpack.c.bf16 %v15104_v48, %v15103_v49 }
0x17b2   :  { %v14534_v2 = vpack.c.bf16 %v15099_v9, %v15098_v13  ;;  %v15107_v16 = vpop.permute.xlu1 %15106 }
0x17b3   :  { %v15112_v36 = vpop.permute.xlu0 %15111  ;;  %14543 = vmatprep.subr.bf16.mxu0 %v14542_v20  ;;  %v15108_v21 = vunpack.i.l.bf16 %v15107_v16 }
0x17b4   :  { %v15114_v58 = vunpack.i.h.bf16 %v15112_v36  ;;  %v15113_v57 = vunpack.i.l.bf16 %v15112_v36  ;;  %14545 = vmatpush3.bf16.msra.mxu0 %v14542_v20  ;;  %14535 = vmatprep.subr.bf16.mxu1 %v14534_v2 }
0x17b6   :  { %v14546_v50 = vpack.c.bf16 %v15114_v58, %v15113_v57  ;;  %v15117_v4 = vpop.permute.xlu1 %15116 }
0x17b7   :  { %v15122_v37 = vpop.permute.xlu0 %15121  ;;  %v15119_v49 = vunpack.i.h.bf16 %v15117_v4  ;;  %v15118_v9 = vunpack.i.l.bf16 %v15117_v4 }
0x17b8   :  { %v15124_v7 = vunpack.i.h.bf16 %v15122_v37  ;;  %v15123_v22 = vunpack.i.l.bf16 %v15122_v37  ;;  %14547 = vmatprep.subr.bf16.mxu0 %v14546_v50 }
0x17b9   :  { %v15318_v40 = vpop.eup %15317  ;;  %14549 = vmatpush3.bf16.msra.mxu0 %v14546_v50  ;;  %v14550_v4 = vpack.c.bf16 %v15119_v49, %v15118_v9 }
0x17ba   :  { %v15320_v30 = vpop.eup %15319  ;;  %v8938_v6 = vmul.f32 %v15318_v40, %v16773_v31  ;;  %v14558_v56 = vpack.c.bf16 %v15124_v7, %v15123_v22  ;;  %v15127_v51 = vpop.permute.xlu1 %15126  ;;  %v15109_v31 = vunpack.i.h.bf16 %v15107_v16 }
0x17bb   :  { %v15132_v39 = vpop.permute.xlu0 %15131  ;;  %v8937_v17 = vmul.f32 %v15320_v30, %v16776_v34  ;;  %v16876_v34 = vld [vmem:[%s17291_s1 + $0x10] sm:$0xff]  ;;  %v15129_v36 = vunpack.i.h.bf16 %v15127_v51  ;;  %v15128_v58 = vunpack.i.l.bf16 %v15127_v51 }
0x17bc   :  { %v15134_v46 = vunpack.i.h.bf16 %v15132_v39  ;;  %v15133_v41 = vunpack.i.l.bf16 %v15132_v39  ;;  %13835 = vmatmul.mubr.msk.f32.vlgmr.msra.gmra.mrb[94].mxu0 %vm322_vm6, %v16869_v27  ;;  %14559 = vmatprep.subr.bf16.mxu0 %v14558_v56  ;;  %v8944_v52 = vmul.f32 %v8942_v44, %v8938_v6  ;;  %v14538_v48 = vpack.c.bf16 %v15109_v31, %v15108_v21 }
0x17bd   :  { %14561 = vmatpush3.bf16.msra.mxu0 %v14558_v56  ;;  %13837 = vmatprep.mubr.msk.f32.mxu0 %vm322_vm6, %v16876_v34  ;;  %v8943_v61 = vmul.f32 %v8942_v44, %v8937_v17  ;;  %v14554_v7 = vpack.c.bf16 %v15129_v36, %v15128_v58 }
0x17be   :  { %v14562_v12 = vpack.c.bf16 %v15134_v46, %v15133_v41  ;;  %v15137_v1 = vpop.permute.xlu1 %15136  ;;  %v16889_v5 = vadd.f32 %v8948_v19, %v8944_v52 }
0x17bf   :  { %v15142_v38 = vpop.permute.xlu0 %15141  ;;  %v16880_v11 = vadd.f32 %v8948_v19, %v8943_v61  ;;  %v15139_v60 = vunpack.i.h.bf16 %v15137_v1  ;;  %v15138_v44 = vunpack.i.l.bf16 %v15137_v1 }
0x17c0   :  { %v15144_v43 = vunpack.i.h.bf16 %v15142_v38  ;;  %v15143_v8 = vunpack.i.l.bf16 %v15142_v38  ;;  %13838 = vmatmul.mubr.msk.f32.gmra.mrb[96].mxu0 %vm322_vm6, %v16885_v42  ;;  %14563 = vmatprep.subr.bf16.mxu0 %v14562_v12 }
0x17c1   :  { %13809 = vmatprep.mubr.msk.f32.mxu1 %vm322_vm6, %v16880_v11  ;;  %14565 = vmatpush3.bf16.msra.mxu0 %v14562_v12  ;;  %v14566_v19 = vpack.c.bf16 %v15139_v60, %v15138_v44 }
0x17c2   :  { %v14574_v13 = vpack.c.bf16 %v15144_v43, %v15143_v8  ;;  %13810 = vmatmul.mubr.msk.f32.vlgmr.msra.gmra.mrb[102].mxu1 %vm322_vm6, %v16889_v5  ;;  %13859 = vmatprep.mubr.msk.f32.mxu0 %vm322_vm6, %v16756_v45  ;;  %v15147_v20 = vpop.permute.xlu1 %15146 }
0x17c3   :  { %14537 = vmatpush3.bf16.msra.mxu1 %v14534_v2  ;;  %v15152_v16 = vpop.permute.xlu0 %15151  ;;  %13820 = vmatprep.mubr.msk.f32.mxu1 %vm322_vm6, %v16756_v45  ;;  %v15149_v51 = vunpack.i.h.bf16 %v15147_v20  ;;  %v15148_v39 = vunpack.i.l.bf16 %v15147_v20 }
0x17c4   :  { %v15154_v57 = vunpack.i.h.bf16 %v15152_v16  ;;  %v15153_v50 = vunpack.i.l.bf16 %v15152_v16  ;;  %13860 = vmatmul.mubr.msk.f32.vlgmr.msra.gmra.mrb[98].mxu0 %vm322_vm6, %v16869_v27  ;;  %14575 = vmatprep.subr.bf16.mxu0 %v14574_v13 }
0x17c5   :  { %14539 = vmatprep.subr.bf16.mxu1 %v14538_v48  ;;  %14577 = vmatpush3.bf16.msra.mxu0 %v14574_v13  ;;  %v14570_v21 = vpack.c.bf16 %v15149_v51, %v15148_v39 }
0x17c6   :  { %v14578_v37 = vpack.c.bf16 %v15154_v57, %v15153_v50  ;;  %13862 = vmatprep.mubr.msk.f32.mxu0 %vm322_vm6, %v16876_v34  ;;  %v15157_v2 = vpop.permute.xlu1 %15156 }
0x17c7   :  { %14541 = vmatpush3.bf16.msra.mxu1 %v14538_v48  ;;  %v15162_v22 = vpop.permute.xlu0 %15161  ;;  %v15159_v38 = vunpack.i.h.bf16 %v15157_v2  ;;  %v15158_v43 = vunpack.i.l.bf16 %v15157_v2 }
0x17c8   :  { %13863 = vmatmul.mubr.msk.f32.gmra.mrb[100].mxu0 %vm322_vm6, %v16885_v42  ;;  %14579 = vmatprep.subr.bf16.mxu0 %v14578_v37  ;;  %v15164_v40 = vunpack.i.h.bf16 %v15162_v22  ;;  %v15163_v30 = vunpack.i.l.bf16 %v15162_v22 }
0x17c9   :  { %14551 = vmatprep.subr.bf16.mxu1 %v14550_v4  ;;  %14581 = vmatpush3.bf16.msra.mxu0 %v14578_v37  ;;  %v14582_v13 = vpack.c.bf16 %v15159_v38, %v15158_v43 }
0x17ca   :  { %13821 = vmatmul.mubr.msk.f32.vlgmr.msra.gmra.mrb[104].mxu1 %vm322_vm6, %v16869_v27  ;;  %13887 = vmatprep.mubr.msk.f32.mxu0 %vm322_vm6, %v16880_v11  ;;  %v14590_v6 = vpack.c.bf16 %v15164_v40, %v15163_v30  ;;  %v15167_v56 = vpop.permute.xlu1 %15166 }
0x17cb   :  { %14553 = vmatpush3.bf16.msra.mxu1 %v14550_v4  ;;  %13823 = vmatprep.mubr.msk.f32.mxu1 %vm322_vm6, %v16876_v34  ;;  %v15172_v17 = vpop.permute.xlu0 %15171  ;;  %v15169_v20 = vunpack.i.h.bf16 %v15167_v56  ;;  %v15168_v16 = vunpack.i.l.bf16 %v15167_v56 }
0x17cc   :  { %13888 = vmatmul.mubr.msk.f32.vlgmr.msra.gmra.mrb[102].mxu0 %vm322_vm6, %v16889_v5  ;;  %14555 = vmatprep.subr.bf16.mxu1 %v14554_v7  ;;  %v15174_v46 = vunpack.i.h.bf16 %v15172_v17  ;;  %v15173_v41 = vunpack.i.l.bf16 %v15172_v17 }
0x17cd   :  { %14591 = vmatprep.subr.bf16.mxu0 %v14590_v6  ;;  %13912 = vmatprep.mubr.msk.f32.mxu0 %vm322_vm6, %v16756_v45  ;;  %v14586_v58 = vpack.c.bf16 %v15169_v20, %v15168_v16 }
0x17ce   :  { %13824 = vmatmul.mubr.msk.f32.gmra.mrb[106].mxu1 %vm322_vm6, %v16885_v42  ;;  %v14594_v52 = vpack.c.bf16 %v15174_v46, %v15173_v41  ;;  %v15177_v31 = vpop.permute.xlu1 %15176  ;;  %14593 = vmatpush3.bf16.msra.mxu0 %v14590_v6 }
0x17cf   :  { %14557 = vmatpush3.bf16.msra.mxu1 %v14554_v7  ;;  %13848 = vmatprep.mubr.msk.f32.mxu1 %vm322_vm6, %v16880_v11  ;;  %v15179_v61 = vunpack.i.h.bf16 %v15177_v31  ;;  %v15178_v12 = vunpack.i.l.bf16 %v15177_v31  ;;  %v15182_v1 = vpop.permute.xlu0 %15181 }
0x17d0   :  { %14567 = vmatprep.subr.bf16.mxu1 %v14566_v19  ;;  %v15184_v8 = vunpack.i.h.bf16 %v15182_v1  ;;  %v15183_v48 = vunpack.i.l.bf16 %v15182_v1  ;;  %14595 = vmatprep.subr.bf16.mxu0 %v14594_v52 }
0x17d1   :  { %v14606_v49 = vpack.c.bf16 %v15179_v61, %v15178_v12 }
0x17d2   :  { %13849 = vmatmul.mubr.msk.f32.vlgmr.msra.gmra.mrb[108].mxu1 %vm322_vm6, %v16889_v5  ;;  %14597 = vmatpush3.bf16.msra.mxu0 %v14594_v52  ;;  %v14610_v9 = vpack.c.bf16 %v15184_v8, %v15183_v48  ;;  %v15187_v36 = vpop.permute.xlu1 %15186 }
0x17d3   :  { %14569 = vmatpush3.bf16.msra.mxu1 %v14566_v19  ;;  %13873 = vmatprep.mubr.msk.f32.mxu1 %vm322_vm6, %v16756_v45  ;;  %v15189_v57 = vunpack.i.h.bf16 %v15187_v36  ;;  %v15188_v50 = vunpack.i.l.bf16 %v15187_v36  ;;  %v15192_v4 = vpop.permute.xlu0 %15191 }
0x17d4   :  { %14571 = vmatprep.subr.bf16.mxu1 %v14570_v21  ;;  %14607 = vmatprep.subr.bf16.mxu0 %v14606_v49  ;;  %v15194_v2 = vunpack.i.h.bf16 %v15192_v4  ;;  %v15193_v7 = vunpack.i.l.bf16 %v15192_v4 }
0x17d5   :  { %13913 = vmatmul.mubr.msk.f32.vlgmr.msra.gmra.mrb[104].mxu0 %vm322_vm6, %v16869_v27  ;;  %v14598_v37 = vpack.c.bf16 %v15189_v57, %v15188_v50 }
0x17d6   :  { %14609 = vmatpush3.bf16.msra.mxu0 %v14606_v49  ;;  %13915 = vmatprep.mubr.msk.f32.mxu0 %vm322_vm6, %v16876_v34  ;;  %v15197_v22 = vpop.permute.xlu1 %15196  ;;  %v14602_v60 = vpack.c.bf16 %v15194_v2, %v15193_v7 }
0x17d7   :  { %14573 = vmatpush3.bf16.msra.mxu1 %v14570_v21  ;;  %14611 = vmatprep.subr.bf16.mxu0 %v14610_v9  ;;  %v15199_v44 = vunpack.i.h.bf16 %v15197_v22  ;;  %v15198_v40 = vunpack.i.l.bf16 %v15197_v22  ;;  %v15202_v6 = vpop.permute.xlu0 %15201 }
0x17d8   :  { %14583 = vmatprep.subr.bf16.mxu1 %v14582_v13  ;;  %v15204_v56 = vunpack.i.h.bf16 %v15202_v6  ;;  %v15203_v51 = vunpack.i.l.bf16 %v15202_v6 }
0x17d9   :  { %13916 = vmatmul.mubr.msk.f32.gmra.mrb[106].mxu0 %vm322_vm6, %v16885_v42  ;;  %v14614_v30 = vpack.c.bf16 %v15199_v44, %v15198_v40 }
0x17da   :  { %13874 = vmatmul.mubr.msk.f32.vlgmr.msra.gmra.mrb[110].mxu1 %vm322_vm6, %v16869_v27  ;;  %14613 = vmatpush3.bf16.msra.mxu0 %v14610_v9  ;;  %v14618_v39 = vpack.c.bf16 %v15204_v56, %v15203_v51  ;;  %v9347_v52 = vpop.permute.xlu1 %9346 }
0x17db   :  { %14585 = vmatpush3.bf16.msra.mxu1 %v14582_v13  ;;  %13876 = vmatprep.mubr.msk.f32.mxu1 %vm322_vm6, %v16876_v34 }
0x17dc   :  { %14587 = vmatprep.subr.bf16.mxu1 %v14586_v58  ;;  %13937 = vmatprep.mubr.msk.f32.mxu0 %vm322_vm6, %v16756_v45 }
0x17dd   :  { %13938 = vmatmul.mubr.msk.f32.vlgmr.msra.gmra.mrb[108].mxu0 %vm322_vm6, %v16869_v27  ;;  %14622 = vmatprep.subr.bf16.mxu0 %v15386_v33 }
0x17de   :  { %13877 = vmatmul.mubr.msk.f32.gmra.mrb[112].mxu1 %vm322_vm6, %v16885_v42  ;;  %13940 = vmatprep.mubr.msk.f32.mxu0 %vm322_vm6, %v16876_v34 }
0x17df   :  { %14589 = vmatpush3.bf16.msra.mxu1 %v14586_v58  ;;  %13898 = vmatprep.mubr.msk.f32.mxu1 %vm322_vm6, %v16756_v45 }
0x17e0   :  { %14599 = vmatprep.subr.bf16.mxu1 %v14598_v37 }
0x17e1   :  { %13941 = vmatmul.mubr.msk.f32.gmra.mrb[110].mxu0 %vm322_vm6, %v16885_v42 }
0x17e2   :  { %13899 = vmatmul.mubr.msk.f32.vlgmr.msra.gmra.mrb[114].mxu1 %vm322_vm6, %v16869_v27  ;;  %13961 = vmatprep.mubr.msk.f32.mxu0 %vm15383_vm7, %v15371_v24 }
0x17e3   :  { %14601 = vmatpush3.bf16.msra.mxu1 %v14598_v37  ;;  %13901 = vmatprep.mubr.msk.f32.mxu1 %vm322_vm6, %v16876_v34 }
0x17e4   :  { %14603 = vmatprep.subr.bf16.mxu1 %v14602_v60 }
0x17e6   :  { %13902 = vmatmul.mubr.msk.f32.gmra.mrb[116].mxu1 %vm322_vm6, %v16885_v42 }
0x17e7   :  { %14605 = vmatpush3.bf16.msra.mxu1 %v14602_v60  ;;  %13926 = vmatprep.mubr.msk.f32.mxu1 %vm322_vm6, %v16880_v11 }
0x17e8   :  { %14615 = vmatprep.subr.bf16.mxu1 %v14614_v30 }
0x17ea   :  { %13927 = vmatmul.mubr.msk.f32.vlgmr.msra.gmra.mrb[118].mxu1 %vm322_vm6, %v16889_v5 }
0x17eb   :  { %14617 = vmatpush3.bf16.msra.mxu1 %v14614_v30  ;;  %13951 = vmatprep.mubr.msk.f32.mxu1 %vm322_vm6, %v16756_v45  ;;  %v16971_v45 = vrot.slane %v16835_v59, %v15600_v15 }
0x17ec   :  { %14619 = vmatprep.subr.bf16.mxu1 %v14618_v39 }
0x17ef   :  { %14621 = vmatpush3.bf16.msra.mxu1 %v14618_v39 }
0x17f0   :  { %14626 = vmatprep.subr.bf16.mxu1 %v15386_v33 }
0x17f2   :  { %13952 = vmatmul.mubr.msk.f32.vlgmr.msra.gmra.mrb[120].mxu1 %vm322_vm6, %v16869_v27 }
0x17f3   :  { %13954 = vmatprep.mubr.msk.f32.mxu1 %vm322_vm6, %v16876_v34 }
0x17f6   :  { %13955 = vmatmul.mubr.msk.f32.gmra.mrb[122].mxu1 %vm322_vm6, %v16885_v42 }
0x17f7   :  { %13968 = vmatprep.mubr.msk.f32.mxu1 %vm15383_vm7, %v15371_v24 }
0x188f   :  { %v13836_v11 = vpop.f32.mrb[94].mxu0 }
0x1890   :  { %v16974_v5 = vadd.f32 %v13836_v11, %v16971_v45  ;;  %v9223_v17 = vpop.f32.mrb[95].mxu0 }
0x1891   :  { %v16977_v27 = vadd.f32 %v9223_v17, %v16971_v45 }
0x1893   :  { %v14655_v34 = vpack.c.bf16 %v16974_v5, %v16977_v27  ;;  %v13839_v19 = vpop.f32.mrb[96].mxu0 }
0x1894   :  { %v16982_v42 = vadd.f32 %v13839_v19, %v16971_v45  ;;  %v9233_v46 = vpop.f32.mrb[97].mxu0  ;;  %v9256_v19 = vpop.permute.xlu1 %9255 }
0x1895   :  { %v13811_v41 = vpop.f32.mrb[102].mxu1  ;;  %v16985_v15 = vadd.f32 %v9233_v46, %v16971_v45 }
0x1896   :  { %v9027_v59 = vpop.f32.mrb[103].mxu1  ;;  %v9033_v56 = vadd.f32 %v13811_v41, %v16847_v10 }
0x1897   :  { %v14658_v31 = vpack.c.bf16 %v16982_v42, %v16985_v15  ;;  %v13861_v21 = vpop.f32.mrb[98].mxu0  ;;  %v9028_v40 = vadd.f32 %v9027_v59, %v16847_v10 }
0x1898   :  { %v9421_v61 = vadd.f32 %v13861_v21, %v9347_v52  ;;  %v9415_v12 = vpop.f32.mrb[99].mxu0 }
0x1899   :  { %v9416_v1 = vadd.f32 %v9415_v12, %v9347_v52 }
0x189b   :  { %v14631_v38 = vpack.c.bf16 %v9421_v61, %v9416_v1  ;;  %v13864_v43 = vpop.f32.mrb[100].mxu0 }
0x189c   :  { %v9431_v8 = vadd.f32 %v13864_v43, %v9347_v52  ;;  %v9425_v48 = vpop.f32.mrb[101].mxu0 }
0x189d   :  { %v13822_v49 = vpop.f32.mrb[104].mxu1  ;;  %v9426_v9 = vadd.f32 %v9425_v48, %v9347_v52 }
0x189e   :  { %v9128_v13 = vadd.f32 %v13822_v49, %v16840_v47  ;;  %v9122_v20 = vpop.f32.mrb[105].mxu1 }
0x189f   :  { %v9123_v16 = vadd.f32 %v9122_v20, %v16840_v47  ;;  %v14635_v36 = vpack.c.bf16 %v9431_v8, %v9426_v9  ;;  %v16991_v58 = vpop.f32.mrb[102].mxu0 }
0x18a0   :  { %v16993_v57 = vpop.f32.mrb[103].mxu0 }
0x18a1   :  { %v14623_v50 = vpack.c.bf16 %v9128_v13, %v9123_v16  ;;  %v13825_v4 = vpop.f32.mrb[106].mxu1 }
0x18a2   :  { %v9138_v37 = vadd.f32 %v13825_v4, %v16840_v47  ;;  %v9132_v2 = vpop.f32.mrb[107].mxu1 }
0x18a3   :  { %v9133_v7 = vadd.f32 %v9132_v2, %v16840_v47  ;;  %14625 = vmatpush3.bf16.xpose.msk.msra.mxu0 %vm16144_vm10, %v14623_v50  ;;  %v9638_v47 = vpop.permute.xlu0 %9637 }
0x18a4   :  { %14630 = vmatprep.subr.bf16.mxu0 %v15386_v33 }
0x18a5   :  { %v14627_v22 = vpack.c.bf16 %v9138_v37, %v9133_v7  ;;  %v13850_v60 = vpop.f32.mrb[108].mxu1 }
0x18a6   :  { %v9324_v44 = vpop.f32.mrb[109].mxu1  ;;  %v9330_v1 = vadd.f32 %v13850_v60, %v9256_v19 }
0x18a7   :  { %14629 = vmatpush3.bf16.xpose.msk.msra.mxu1 %vm16144_vm10, %v14627_v22  ;;  %v9325_v10 = vadd.f32 %v9324_v44, %v9256_v19  ;;  %v9928_v46 = vpop.permute.xlu0 %9927  ;;  %v9548_v22 = vpop.permute.xlu1 %9547 }
0x18a8   :  { %14634 = vmatprep.subr.bf16.mxu1 %v15386_v33  ;;  %v17004_v30 = vpop.f32.mrb[104].mxu0 }
0x18a9   :  { %v17006_v6 = vpop.f32.mrb[105].mxu0 }
0x18aa   :  { %13962 = vmatmul.mubr.msk.f32.vlgmr.msra.gmra.mrb[112].mxu0 %vm1446_vm8, %v9028_v40 }
0x18ab   :  { %14633 = vmatpush3.bf16.xpose.msk.msra.mxu0 %vm16144_vm10, %v14631_v38  ;;  %13975 = vmatprep.mubr.msk.f32.mxu0 %vm15383_vm7, %v15371_v24  ;;  %v9838_v19 = vpop.permute.xlu0 %9837 }
0x18ac   :  { %14638 = vmatprep.subr.bf16.mxu0 %v15386_v33  ;;  %v17015_v51 = vpop.f32.mrb[106].mxu0 }
0x18ad   :  { %v17017_v39 = vpop.f32.mrb[110].mxu1  ;;  %v17019_v11 = vpop.f32.mrb[107].mxu0 }
0x18ae   :  { %v17021_v17 = vpop.f32.mrb[111].mxu1  ;;  %13969 = vmatmul.mubr.msk.f32.vlgmr.msra.gmra.mrb[124].mxu1 %vm1446_vm8, %v9033_v56  ;;  %v9617_v56 = vadd.f32 %v16993_v57, %v9548_v22 }
0x18af   :  { %14637 = vmatpush3.bf16.xpose.msk.msra.mxu1 %vm16144_vm10, %v14635_v36  ;;  %13982 = vmatprep.mubr.msk.f32.mxu1 %vm15383_vm7, %v15371_v24 }
0x18b0   :  { %v13939_v41 = vpop.f32.mrb[108].mxu0  ;;  %14642 = vmatprep.subr.bf16.mxu1 %v15386_v33 }
0x18b1   :  { %v17029_v59 = vpop.f32.mrb[112].mxu1  ;;  %v10002_v52 = vadd.f32 %v13939_v41, %v9928_v46  ;;  %v9996_v21 = vpop.f32.mrb[109].mxu0 }
0x18b2   :  { %v17031_v61 = vpop.f32.mrb[113].mxu1  ;;  %13976 = vmatmul.mubr.msk.f32.vlgmr.msra.gmra.mrb[114].mxu0 %vm1446_vm8, %v9325_v10  ;;  %v9997_v12 = vadd.f32 %v9996_v21, %v9928_v46 }
0x18b3   :  { %13989 = vmatprep.mubr.msk.f32.mxu0 %vm15383_vm7, %v15371_v24 }
0x18b4   :  { %v14647_v38 = vpack.c.bf16 %v10002_v52, %v9997_v12  ;;  %v13942_v43 = vpop.f32.mrb[110].mxu0 }
0x18b5   :  { %v13900_v8 = vpop.f32.mrb[114].mxu1  ;;  %v10012_v48 = vadd.f32 %v13942_v43, %v9928_v46  ;;  %v10006_v49 = vpop.f32.mrb[111].mxu0 }
0x18b6   :  { %v9712_v9 = vadd.f32 %v13900_v8, %v9638_v47  ;;  %v9706_v13 = vpop.f32.mrb[115].mxu1  ;;  %13983 = vmatmul.mubr.msk.f32.vlgmr.msra.gmra.mrb[126].mxu1 %vm1446_vm8, %v9330_v1  ;;  %v10007_v20 = vadd.f32 %v10006_v49, %v9928_v46 }
0x18b7   :  { %v9707_v16 = vadd.f32 %v9706_v13, %v9638_v47  ;;  %13996 = vmatprep.mubr.msk.f32.mxu1 %vm15383_vm7, %v15371_v24 }
0x18b8   :  { %v14651_v36 = vpack.c.bf16 %v10012_v48, %v10007_v20 }
0x18b9   :  { %v14639_v50 = vpack.c.bf16 %v9712_v9, %v9707_v16  ;;  %v13903_v4 = vpop.f32.mrb[116].mxu1 }
0x18ba   :  { %v9722_v37 = vadd.f32 %v13903_v4, %v9638_v47  ;;  %v9716_v2 = vpop.f32.mrb[117].mxu1 }
0x18bb   :  { %v9717_v7 = vadd.f32 %v9716_v2, %v9638_v47  ;;  %14641 = vmatpush3.bf16.xpose.msk.msra.mxu0 %vm16144_vm10, %v14639_v50  ;;  %v9622_v47 = vadd.f32 %v16991_v58, %v9548_v22 }
0x18bc   :  { %14646 = vmatprep.subr.bf16.mxu0 %v15386_v33 }
0x18bd   :  { %v14643_v60 = vpack.c.bf16 %v9722_v37, %v9717_v7  ;;  %v13928_v44 = vpop.f32.mrb[118].mxu1 }
0x18be   :  { %v9906_v40 = vpop.f32.mrb[119].mxu1  ;;  %v9912_v58 = vadd.f32 %v13928_v44, %v9838_v19 }
0x18bf   :  { %14645 = vmatpush3.bf16.xpose.msk.msra.mxu1 %vm16144_vm10, %v14643_v60  ;;  %v9907_v57 = vadd.f32 %v9906_v40, %v9838_v19 }
0x18c0   :  { %14650 = vmatprep.subr.bf16.mxu1 %v15386_v33 }
0x18c2   :  { %13990 = vmatmul.mubr.msk.f32.vlgmr.msra.gmra.mrb[116].mxu0 %vm1446_vm8, %v9617_v56 }
0x18c3   :  { %14649 = vmatpush3.bf16.xpose.msk.msra.mxu0 %vm16144_vm10, %v14647_v38  ;;  %14003 = vmatprep.mubr.msk.f32.mxu0 %vm15383_vm7, %v15371_v24 }
0x18c4   :  { %14654 = vmatprep.subr.bf16.mxu0 %v15386_v33 }
0x18c5   :  { %v17073_v62 = vpop.f32.mrb[120].mxu1 }
0x18c6   :  { %13997 = vmatmul.mubr.msk.f32.vlgmr.msra.gmra.mrb[128].mxu1 %vm1446_vm8, %v9622_v47  ;;  %v17075_v5 = vpop.f32.mrb[121].mxu1 }
0x18c7   :  { %14653 = vmatpush3.bf16.xpose.msk.msra.mxu1 %vm16144_vm10, %v14651_v36  ;;  %14010 = vmatprep.mubr.msk.f32.mxu1 %vm15383_vm7, %v15371_v24 }
0x18c8   :  { %14657 = vmatprep.subr.bf16.mxu1 %v15386_v33 }
0x18c9   :  { %v17077_v27 = vpop.f32.mrb[122].mxu1 }
0x18ca   :  { %14004 = vmatmul.mubr.msk.f32.vlgmr.msra.gmra.mrb[118].mxu0 %vm1446_vm8, %v9907_v57 }
0x18cb   :  { %14656 = vmatpush3.bf16.msra.mxu0 %v14655_v34  ;;  %14017 = vmatprep.mubr.msk.f32.mxu0 %vm15383_vm7, %v15371_v24  ;;  %v17079_v34 = vpop.f32.mrb[123].mxu1 }
0x18cc   :  { %14660 = vmatprep.subr.bf16.mxu0 %v15386_v33 }
0x18ce   :  { %14011 = vmatmul.mubr.msk.f32.vlgmr.msra.gmra.mrb[130].mxu1 %vm1446_vm8, %v9912_v58 }
0x18cf   :  { %14659 = vmatpush3.bf16.msra.mxu1 %v14658_v31  ;;  %14024 = vmatprep.mubr.msk.f32.mxu1 %vm15383_vm7, %v15371_v24 }
0x18d0   :  { %14663 = vmatprep.subr.bf16.mxu1 %v15386_v33 }
0x197d   :  { %v10190_v10 = vpop.f32.mrb[112].mxu0 }
0x197e   :  { %v10191_v46 = vadd.f32 %v10190_v10, %v16238_v54  ;;  %v13963_v41 = vpop.f32.mrb[113].mxu0 }
0x1980   :  { %v10747_v42 = vsel %vm4923_vm12, %v10191_v46, -inf }
0x1981   :  { %v10269_v15 = vpop.f32.mrb[124].mxu1  ;;  %10748 = vmax.xlane.f32.xlu1 %v10747_v42 }
0x1982   :  { %v10270_v31 = vadd.f32 %v10269_v15, %v16242_v35  ;;  %v13970_v52 = vpop.f32.mrb[125].mxu1 }
0x1984   :  { %v10750_v21 = vsel %vm4923_vm12, %v10270_v31, -inf }
0x1985   :  { %10751 = vmax.xlane.f32.xlu0 %v10750_v21  ;;  %v10348_v12 = vpop.f32.mrb[114].mxu0 }
0x1986   :  { %v10349_v1 = vadd.f32 %v10348_v12, %v16238_v54  ;;  %v13977_v38 = vpop.f32.mrb[115].mxu0 }
0x1988   :  { %v10753_v43 = vsel %vm4923_vm12, %v10349_v1, -inf }
0x1989   :  { %v10427_v8 = vpop.f32.mrb[126].mxu1  ;;  %10754 = vmax.xlane.f32.xlu0 %v10753_v43 }
0x198a   :  { %v10428_v48 = vadd.f32 %v10427_v8, %v16242_v35  ;;  %v13984_v49 = vpop.f32.mrb[127].mxu1 }
0x198c   :  { %v10756_v9 = vsel %vm4923_vm12, %v10428_v48, -inf }
0x198d   :  { %10757 = vmax.xlane.f32.xlu1 %v10756_v9 }
0x1995   :  { %v10506_v13 = vpop.f32.mrb[116].mxu0 }
0x1996   :  { %v10507_v20 = vadd.f32 %v10506_v13, %v16238_v54  ;;  %v13991_v16 = vpop.f32.mrb[117].mxu0 }
0x1998   :  { %v10759_v36 = vsel %vm4923_vm12, %v10507_v20, -inf }
0x1999   :  { %v10585_v50 = vpop.f32.mrb[128].mxu1  ;;  %10760 = vmax.xlane.f32.xlu0 %v10759_v36 }
0x199a   :  { %v10586_v4 = vadd.f32 %v10585_v50, %v16242_v35  ;;  %v13998_v37 = vpop.f32.mrb[129].mxu1 }
0x199c   :  { %v10762_v2 = vsel %vm4923_vm12, %v10586_v4, -inf }
0x199d   :  { %10763 = vmax.xlane.f32.xlu1 %v10762_v2  ;;  %v10664_v7 = vpop.f32.mrb[118].mxu0 }
0x199e   :  { %v10665_v22 = vadd.f32 %v10664_v7, %v16238_v54  ;;  %v14005_v60 = vpop.f32.mrb[119].mxu0 }
0x19a0   :  { %v10765_v44 = vsel %vm4923_vm12, %v10665_v22, -inf }
0x19a1   :  { %v10743_v40 = vpop.f32.mrb[130].mxu1  ;;  %10766 = vmax.xlane.f32.xlu0 %v10765_v44 }
0x19a2   :  { %v10744_v56 = vadd.f32 %v10743_v40, %v16242_v35  ;;  %v14012_v47 = vpop.f32.mrb[131].mxu1 }
0x19a4   :  { %v10768_v19 = vsel %vm4923_vm12, %v10744_v56, -inf }
0x19a5   :  { %10769 = vmax.xlane.f32.xlu1 %v10768_v19 }
0x1a0e   :  { %v10749_v57 = vpop.xlane.xlu1 %10748 }
0x1a0f   :  { %v10771_v58 = vsub.f32 %v10191_v46, %v10749_v57 }
0x1a11   :  { %v10779_v10 = vmul.f32 1.442695, %v10771_v58 }
0x1a12   :  { %v10752_v41 = vpop.xlane.xlu0 %10751 }
0x1a13   :  { %15321 = vpow2.f32 %v10779_v10  ;;  %v10772_v42 = vsub.f32 %v10270_v31, %v10752_v41 }
0x1a15   :  { %v10781_v15 = vmul.f32 1.442695, %v10772_v42 }
0x1a16   :  { %v10755_v52 = vpop.xlane.xlu0 %10754 }
0x1a17   :  { %15323 = vpow2.f32 %v10781_v15  ;;  %v10773_v54 = vsub.f32 %v10349_v1, %v10755_v52 }
0x1a19   :  { %v10783_v21 = vmul.f32 1.442695, %v10773_v54 }
0x1a1a   :  { %v10758_v12 = vpop.xlane.xlu1 %10757 }
0x1a1b   :  { %15325 = vpow2.f32 %v10783_v21  ;;  %v10774_v38 = vsub.f32 %v10428_v48, %v10758_v12 }
0x1a1d   :  { %v15322_v43 = vpop.eup %15321  ;;  %v10785_v35 = vmul.f32 1.442695, %v10774_v38 }
0x1a1e   :  { %v10795_v8 = vsel %vm4923_vm12, %v15322_v43, 0.0 }
0x1a1f   :  { %15327 = vpow2.f32 %v10785_v35  ;;  %10796 = vadd.xlane.f32.xlu0 %v10795_v8 }
0x1a21   :  { %v15324_v49 = vpop.eup %15323 }
0x1a22   :  { %v10798_v46 = vsel %vm4923_vm12, %v15324_v49, 0.0 }
0x1a23   :  { %10799 = vadd.xlane.f32.xlu1 %v10798_v46 }
0x1a25   :  { %v17099_v9 = vpop.eup %15325 }
0x1a26   :  { %v10761_v31 = vpop.xlane.xlu0 %10760  ;;  %v10801_v1 = vsel %vm4923_vm12, %v17099_v9, 0.0 }
0x1a27   :  { %v10775_v13 = vsub.f32 %v10507_v20, %v10761_v31  ;;  %10802 = vadd.xlane.f32.xlu0 %v10801_v1 }
0x1a29   :  { %v17103_v16 = vpop.eup %15327  ;;  %v10787_v48 = vmul.f32 1.442695, %v10775_v13 }
0x1a2a   :  { %v10764_v36 = vpop.xlane.xlu1 %10763  ;;  %v10804_v50 = vsel %vm4923_vm12, %v17103_v16, 0.0 }
0x1a2b   :  { %15329 = vpow2.f32 %v10787_v48  ;;  %v10776_v37 = vsub.f32 %v10586_v4, %v10764_v36  ;;  %10805 = vadd.xlane.f32.xlu1 %v10804_v50 }
0x1a2d   :  { %v10789_v2 = vmul.f32 1.442695, %v10776_v37 }
0x1a2e   :  { %v10767_v7 = vpop.xlane.xlu0 %10766 }
0x1a2f   :  { %15331 = vpow2.f32 %v10789_v2  ;;  %v10777_v60 = vsub.f32 %v10665_v22, %v10767_v7 }
0x1a31   :  { %v10791_v44 = vmul.f32 1.442695, %v10777_v60 }
0x1a32   :  { %v10770_v22 = vpop.xlane.xlu1 %10769 }
0x1a33   :  { %15333 = vpow2.f32 %v10791_v44  ;;  %v10778_v58 = vsub.f32 %v10744_v56, %v10770_v22 }
0x1a35   :  { %v17107_v40 = vpop.eup %15329  ;;  %v10793_v10 = vmul.f32 1.442695, %v10778_v58 }
0x1a36   :  { %v10807_v20 = vsel %vm4923_vm12, %v17107_v40, 0.0 }
0x1a37   :  { %10808 = vadd.xlane.f32.xlu0 %v10807_v20  ;;  %15335 = vpow2.f32 %v10793_v10 }
0x1a39   :  { %v17111_v47 = vpop.eup %15331 }
0x1a3a   :  { %v10810_v19 = vsel %vm4923_vm12, %v17111_v47, 0.0 }
0x1a3b   :  { %10811 = vadd.xlane.f32.xlu1 %v10810_v19 }
0x1a3d   :  { %v17115_v4 = vpop.eup %15333 }
0x1a3e   :  { %v10813_v57 = vsel %vm4923_vm12, %v17115_v4, 0.0 }
0x1a3f   :  { %10814 = vadd.xlane.f32.xlu0 %v10813_v57 }
0x1a41   :  { %v17127_v41 = vpop.eup %15335 }
0x1a42   :  { %v10816_v42 = vsel %vm4923_vm12, %v17127_v41, 0.0 }
0x1a4c   :  { %9737 = vrot.lane.b32.xlu1 %v16971_v45, %s15375_s16 }
0x1a55   :  { %9447 = vrot.lane.b32.xlu0 %v16971_v45, %s15379_s20 }
0x1a59   :  { %11419 = vrot.lane.b32.xlu0 %v16787_v26, %s15385_s26 }
0x1a5d   :  { %11595 = vrot.lane.b32.xlu0 %v16799_v32, %s15385_s26 }
0x1a70   :  { %10817 = vadd.xlane.f32.xlu1 %v10816_v42 }
0x1a81   :  { %10027 = vrot.lane.b32.xlu1 %v16971_v45, %s15377_s18 }
0x1a85   :  { %11509 = vrot.lane.b32.xlu1 %v16792_v18, %s15385_s26 }
0x1a89   :  { %11681 = vrot.lane.b32.xlu1 %v16804_v23, %s15385_s26 }
0x1aac   :  { %v10797_v26 = vpop.xlane.xlu0 %10796 }
0x1aad   :  { %15337 = vrcp.f32 %v10797_v26 }
0x1ab0   :  { %v10800_v32 = vpop.xlane.xlu1 %10799 }
0x1ab1   :  { %15339 = vrcp.f32 %v10800_v32 }
0x1ab4   :  { %v10803_v18 = vpop.xlane.xlu0 %10802 }
0x1ab5   :  { %15341 = vrcp.f32 %v10803_v18 }
0x1ab7   :  { %v15338_v56 = vpop.eup %15337 }
0x1ab8   :  { %v10827_v15 = vmul.f32 %v15338_v56, %v15322_v43  ;;  %v10806_v23 = vpop.xlane.xlu1 %10805 }
0x1ab9   :  { %15343 = vrcp.f32 %v10806_v23 }
0x1aba   :  { %14018 = vmatmul.mubr.msk.f32.vlgmr.msra.gmra.mrb[120].mxu0 %vm4923_vm12, %v10827_v15 }
0x1abb   :  { %v15340_v52 = vpop.eup %15339  ;;  %14031 = vmatprep.mubr.msk.f32.mxu0 %vm15383_vm7, %v15371_v24 }
0x1abc   :  { %v10828_v54 = vmul.f32 %v15340_v52, %v15324_v49 }
0x1abe   :  { %14025 = vmatmul.mubr.msk.f32.vlgmr.msra.gmra.mrb[132].mxu1 %vm4923_vm12, %v10828_v54 }
0x1abf   :  { %14038 = vmatprep.mubr.msk.f32.mxu1 %vm15383_vm7, %v15371_v24  ;;  %v15342_v37 = vpop.eup %15341 }
0x1ac3   :  { %v15344_v2 = vpop.eup %15343 }
0x1ac4   :  { %v10809_v45 = vpop.xlane.xlu0 %10808  ;;  %v10830_v60 = vmul.f32 %v15344_v2, %v17103_v16 }
0x1ac5   :  { %15345 = vrcp.f32 %v10809_v45 }
0x1ac8   :  { %v10812_v21 = vpop.xlane.xlu1 %10811 }
0x1ac9   :  { %15347 = vrcp.f32 %v10812_v21 }
0x1acc   :  { %v9738_v12 = vpop.permute.xlu1 %9737  ;;  %v10815_v38 = vpop.xlane.xlu0 %10814 }
0x1acd   :  { %v9807_v43 = vadd.f32 %v17006_v6, %v9738_v12  ;;  %v9812_v35 = vadd.f32 %v17004_v30, %v9738_v12  ;;  %v9817_v8 = vadd.f32 %v17019_v11, %v9738_v12  ;;  %v9822_v49 = vadd.f32 %v17015_v51, %v9738_v12  ;;  %v17190_v12 = vld [vmem:[%s17290_s4 + $0x18] sm:$0xff] }
0x1ace   :  { %v10829_v51 = vmul.f32 %v15342_v37, %v17099_v9  ;;  %15349 = vrcp.f32 %v10815_v38  ;;  %v11506_v38 = vrot.slane %v17190_v12, %v15597_v14 }
0x1acf   :  { %v14667_v46 = vpack.c.bf16 %v9812_v35, %v9807_v43  ;;  %v14670_v31 = vpack.c.bf16 %v9822_v49, %v9817_v8  ;;  %v15346_v30 = vpop.eup %15345 }
0x1ad0   :  { %v9448_v1 = vpop.permute.xlu0 %9447 }
0x1ad1   :  { %v9517_v13 = vadd.f32 %v17021_v17, %v9448_v1  ;;  %v9522_v48 = vadd.f32 %v17017_v39, %v9448_v1  ;;  %v9527_v36 = vadd.f32 %v17031_v61, %v9448_v1  ;;  %v9532_v50 = vadd.f32 %v17029_v59, %v9448_v1 }
0x1ad2   :  { %v10831_v39 = vmul.f32 %v15346_v30, %v17107_v40  ;;  %v43_v30 = vld [vmem:[%s17289_s2 + $0x70] sm:$0xff] }
0x1ad3   :  { %v14661_v6 = vpack.c.bf16 %v9522_v48, %v9517_v13  ;;  %v14664_v7 = vpack.c.bf16 %v9532_v50, %v9527_v36  ;;  %v15348_v11 = vpop.eup %15347 }
0x1ad4   :  { %v10832_v17 = vmul.f32 %v15348_v11, %v17111_v47  ;;  %v46_v11 = vld [vmem:[%s17289_s2 + $0x88] sm:$0xff] }
0x1ad5   :  { %14662 = vmatpush3.bf16.msra.mxu0 %v14661_v6  ;;  %14665 = vmatpush3.bf16.msra.mxu1 %v14664_v7 }
0x1ad6   :  { %14666 = vmatprep.subr.bf16.mxu0 %v15386_v33  ;;  %14669 = vmatprep.subr.bf16.mxu1 %v15386_v33 }
0x1ad8   :  { %14032 = vmatmul.mubr.msk.f32.vlgmr.msra.gmra.mrb[122].mxu0 %vm4923_vm12, %v10829_v51  ;;  %14039 = vmatmul.mubr.msk.f32.vlgmr.msra.gmra.mrb[134].mxu1 %vm4923_vm12, %v10830_v60  ;;  %v15350_v40 = vpop.eup %15349  ;;  %v14678_v51 = vpack.c.bf16 %v46_v11, %v43_v30  ;;  %v49_v60 = vld [vmem:[%s17289_s2 + $0xa0] sm:$0xff]  ;;  %v75_v11 = vld [vmem:[%s17288_s5 + $0x10] sm:$0xff] }
0x1ad9   :  { %14668 = vmatpush3.bf16.msra.mxu0 %v14667_v46  ;;  %14671 = vmatpush3.bf16.msra.mxu1 %v14670_v31  ;;  %v10833_v19 = vmul.f32 %v15350_v40, %v17115_v4 }
0x1ada   :  { %14045 = vmatprep.mubr.msk.f32.mxu0 %vm15383_vm7, %v15371_v24  ;;  %14052 = vmatprep.mubr.msk.f32.mxu1 %vm15383_vm7, %v15371_v24 }
0x1adb   :  { %14672 = vmatprep.subr.bf16.mxu0 %v15386_v33  ;;  %14675 = vmatprep.subr.bf16.mxu1 %v15386_v33 }
0x1adc   :  { %14046 = vmatmul.mubr.msk.f32.vlgmr.msra.gmra.mrb[124].mxu0 %vm4923_vm12, %v10831_v39  ;;  %14053 = vmatmul.mubr.msk.f32.vlgmr.msra.gmra.mrb[136].mxu1 %vm4923_vm12, %v10832_v17  ;;  %v52_v39 = vld [vmem:[%s17289_s2 + $0xb8] sm:$0xff] }
0x1add   :  { %14059 = vmatprep.mubr.msk.f32.mxu0 %vm15383_vm7, %v15371_v24  ;;  %14066 = vmatprep.mubr.msk.f32.mxu1 %vm15383_vm7, %v15371_v24  ;;  %v14682_v17 = vpack.c.bf16 %v52_v39, %v49_v60 }
0x1afd   :  { %v10818_v59 = vpop.xlane.xlu1 %10817 }
0x1afe   :  { %15351 = vrcp.f32 %v10818_v59  ;;  %v61_v59 = vld [vmem:[%s17292_s3 + $0x40] sm:$0xff] }
0x1b01   :  { %v10028_v61 = vpop.permute.xlu1 %10027 }
0x1b02   :  { %v10097_v9 = vadd.f32 %v17075_v5, %v10028_v61  ;;  %v10102_v16 = vadd.f32 %v17073_v62, %v10028_v61  ;;  %v10107_v33 = vadd.f32 %v17079_v34, %v10028_v61  ;;  %v10112_v44 = vadd.f32 %v17077_v27, %v10028_v61  ;;  %v11420_v5 = vpop.permute.xlu0 %11419  ;;  %v62_v61 = vld [vmem:[%s17292_s3 + $0x48] sm:$0xff] }
0x1b04   :  { %v14673_v20 = vpack.c.bf16 %v10102_v16, %v10097_v9  ;;  %v14676_v47 = vpack.c.bf16 %v10112_v44, %v10107_v33  ;;  %v14686_v9 = vpack.c.bf16 %v62_v61, %v61_v59 }
0x1b05   :  { %v11510_v62 = vpop.permute.xlu1 %11509 }
0x1b06   :  { %14674 = vmatpush3.bf16.msra.mxu0 %v14673_v20  ;;  %14677 = vmatpush3.bf16.msra.mxu1 %v14676_v47  ;;  %v11596_v58 = vpop.permute.xlu0 %11595 }
0x1b07   :  { %14069 = vmatprep.subr.mxu0 %v11420_v5  ;;  %14679 = vmatprep.subr.bf16.mxu1 %v14678_v51 }
0x1b08   :  { %v15352_v24 = vpop.eup %15351 }
0x1b09   :  { %v10834_v57 = vmul.f32 %v15352_v24, %v17127_v41  ;;  %14060 = vmatmul.mubr.msk.f32.vlgmr.msra.gmra.mrb[126].mxu0 %vm4923_vm12, %v10833_v19  ;;  %v11682_v4 = vpop.permute.xlu1 %11681  ;;  %v11798_v19 = vrot.slane %v17190_v12, %v15752_v53 }
0x1b0a   :  { %14070 = vmatpush3.msra.mxu0 %v11420_v5  ;;  %v11804_v5 = vrot.slane %v17190_v12, %v15892_v63  ;;  %v65_v63 = vld [vmem:[%s17292_s3 + $0x60] sm:$0xff] }
0x1b0b   :  { %14067 = vmatmul.mubr.msk.f32.vlgmr.msra.gmra.mrb[138].mxu1 %vm4923_vm12, %v10834_v57  ;;  %14074 = vmatprep.subr.mxu0 %v11510_v62 }
0x1b0c   :  { %14681 = vmatpush3.bf16.msra.mxu1 %v14678_v51  ;;  %v76_v51 = vld [vmem:[%s17288_s5 + $0x18] sm:$0xff] }
0x1b0d   :  { %14683 = vmatprep.subr.bf16.mxu1 %v14682_v17  ;;  %v14706_v60 = vpack.c.bf16 %v76_v51, %v75_v11 }
0x1b10   :  { %14685 = vmatpush3.bf16.msra.mxu1 %v14682_v17 }
0x1b11   :  { %14687 = vmatprep.subr.bf16.mxu1 %v14686_v9 }
0x1b8d   :  { %v10904_v27 = vpop.f32.mrb[120].mxu0 }
0x1b8e   :  { %v14019_v34 = vpop.f32.mrb[121].mxu0  ;;  %14071 = vmatprep.mubr.msk.f32.mxu0 %vm1446_vm8, %v10904_v27 }
0x1b91   :  { %v10977_v22 = vpop.f32.mrb[132].mxu1 }
0x1b92   :  { %v14026_v10 = vpop.f32.mrb[133].mxu1  ;;  %14072 = vmatmul.mubr.msk.f32.vlgmr.msra.gmra.mrb[128].mxu0 %vm1446_vm8, %v10977_v22 }
0x1b93   :  { %14075 = vmatpush3.msra.mxu0 %v11510_v62  ;;  %v64_v10 = vld [vmem:[%s17292_s3 + $0x58] sm:$0xff] }
0x1b94   :  { %14079 = vmatprep.subr.mxu0 %v11596_v58 }
0x1bab   :  { %v11050_v41 = vpop.f32.mrb[122].mxu0  ;;  %v11123_v42 = vpop.f32.mrb[134].mxu1 }
0x1bac   :  { %v14033_v26 = vpop.f32.mrb[123].mxu0  ;;  %v14040_v32 = vpop.f32.mrb[135].mxu1  ;;  %14076 = vmatprep.mubr.msk.f32.mxu0 %vm1446_vm8, %v11050_v41 }
0x1bad   :  { %14077 = vmatmul.mubr.msk.f32.vlgmr.msra.gmra.mrb[128].mxu0 %vm1446_vm8, %v11123_v42  ;;  %v66_v42 = vld [vmem:[%s17292_s3 + $0x68] sm:$0xff]  ;;  %v67_v32 = vld [vmem:[%s17292_s3 + $0x70] sm:$0xff] }
0x1bae   :  { %14080 = vmatpush3.msra.mxu0 %v11596_v58  ;;  %v63_v58 = vld [vmem:[%s17292_s3 + $0x50] sm:$0xff]  ;;  %v14694_v26 = vpack.c.bf16 %v66_v42, %v65_v63 }
0x1baf   :  { %v11196_v56 = vpop.f32.mrb[124].mxu0  ;;  %v11269_v15 = vpop.f32.mrb[136].mxu1  ;;  %14084 = vmatprep.subr.mxu0 %v11682_v4  ;;  %v14690_v41 = vpack.c.bf16 %v64_v10, %v63_v58 }
0x1bb0   :  { %v14047_v52 = vpop.f32.mrb[125].mxu0  ;;  %v14054_v54 = vpop.f32.mrb[137].mxu1  ;;  %14081 = vmatprep.mubr.msk.f32.mxu0 %vm1446_vm8, %v11196_v56  ;;  %v68_v56 = vld [vmem:[%s17292_s3 + $0x78] sm:$0xff] }
0x1bb1   :  { %v11810_v52 = vrot.slane %v17190_v12, %v16001_v55 }
0x1bb5   :  { %14082 = vmatmul.mubr.msk.f32.vlgmr.msra.gmra.mrb[128].mxu0 %vm1446_vm8, %v11269_v15  ;;  %v14698_v15 = vpack.c.bf16 %v68_v56, %v67_v32 }
0x1bb6   :  { %14085 = vmatpush3.msra.mxu0 %v11682_v4 }
0x1bdc   :  { %v11342_v18 = vpop.f32.mrb[126].mxu0 }
0x1bdd   :  { %v14061_v23 = vpop.f32.mrb[127].mxu0  ;;  %14086 = vmatprep.mubr.msk.f32.mxu0 %vm1446_vm8, %v11342_v18 }
0x1bde   :  { %v11415_v45 = vpop.f32.mrb[138].mxu1 }
0x1bdf   :  { %v14068_v21 = vpop.f32.mrb[139].mxu1  ;;  %14087 = vmatmul.mubr.msk.f32.vlgmr.msra.gmra.mrb[128].mxu0 %vm1446_vm8, %v11415_v45 }
0x1cb2   :  { %v14088_v43 = vpop.f32.mrb[128].mxu0 }
0x1cb3   :  { %v14716_v35 = vadd.f32 %v14088_v43, %v11506_v38  ;;  %v11756_v8 = vpop.f32.mrb[129].mxu0  ;;  %v11980_v43 = vrot.slane %v17190_v12, %v16004_v0 }
0x1cb4   :  { %v14717_v49 = vadd.f32 %v11756_v8, %v11506_v38 }
0x1cb5   :  { %v17195_v46 = vadd.f32 %v14716_v35, %v16763_v3 }
0x1cb6   :  { %v17198_v31 = vadd.f32 %v14717_v49, %v16766_v25 }
0x1cb7   :  { %v11772_v1 = vsel %vm322_vm6, %v17195_v46, 0.0 }
0x1cb8   :  { %11773 = vadd.xlane.f32.xlu1 %v11772_v1  ;;  %v11769_v13 = vsel %vm322_vm6, %v17198_v31, 0.0 }
0x1cb9   :  { %11770 = vadd.xlane.f32.xlu0 %v11769_v13 }
0x1d45   :  { %v11774_v48 = vpop.xlane.xlu1 %11773 }
0x1d46   :  { %v11776_v14 = vmul.f32 0.03125, %v11774_v48  ;;  %v11771_v36 = vpop.xlane.xlu0 %11770 }
0x1d47   :  { %v11775_v50 = vmul.f32 0.03125, %v11771_v36 }
0x1d48   :  { %v11778_v37 = vsub.f32 %v17195_v46, %v11776_v14 }
0x1d49   :  { %v11777_v3 = vsub.f32 %v17198_v31, %v11775_v50 }
0x1d4a   :  { %v11780_v6 = vmul.f32 %v11778_v37, %v11778_v37 }
0x1d4b   :  { %v11779_v2 = vmul.f32 %v11777_v3, %v11777_v3 }
0x1d4c   :  { %v11784_v7 = vsel %vm322_vm6, %v11780_v6, 0.0  ;;  %v73_v6 = vld [vmem:[%s17288_s5] sm:$0xff] }
0x1d4d   :  { %v11781_v25 = vsel %vm322_vm6, %v11779_v2, 0.0 }
0x1d4e   :  { %11782 = vadd.xlane.f32.xlu0 %v11781_v25 }
0x1d52   :  { %11785 = vadd.xlane.f32.xlu0 %v11784_v7  ;;  %v74_v7 = vld [vmem:[%s17288_s5 + $0x8] sm:$0xff] }
0x1d53   :  { %v14702_v30 = vpack.c.bf16 %v74_v7, %v73_v6 }
0x1d55   :  { %14703 = vmatprep.subr.bf16.mxu0 %v14702_v30 }
0x1d56   :  { %14705 = vmatpush3.bf16.msra.mxu0 %v14702_v30 }
0x1d57   :  { %14707 = vmatprep.subr.bf16.mxu0 %v14706_v60 }
0x1d5a   :  { %14709 = vmatpush3.bf16.msra.mxu0 %v14706_v60 }
0x1ddb   :  { %v11783_v16 = vpop.xlane.xlu0 %11782 }
0x1ddc   :  { %v11787_v33 = vmul.f32 0.03125, %v11783_v16 }
0x1dde   :  { %v11789_v44 = vadd.f32 1e-05, %v11787_v33  ;;  %v92_v33 = vld [vmem:[%s17288_s5 + $0x98] sm:$0xff] }
0x1ddf   :  { %v11786_v40 = vpop.xlane.xlu0 %11785 }
0x1de0   :  { %15353 = vrsqrt.f32 %v11789_v44  ;;  %v11788_v20 = vmul.f32 0.03125, %v11786_v40  ;;  %v12012_v44 = vrot.slane %v92_v33, %v15628_v28 }
0x1de2   :  { %v11790_v47 = vadd.f32 1e-05, %v11788_v20 }
0x1de4   :  { %15355 = vrsqrt.f32 %v11790_v47 }
0x1dea   :  { %v15354_v24 = vpop.eup %15353 }
0x1deb   :  { %v11793_v57 = vmul.f32 %v15354_v24, %v11777_v3  ;;  %v12018_v24 = vrot.slane %v92_v33, %v15631_v29 }
0x1ded   :  { %v11799_v62 = vmul.f32 %v11798_v19, %v11793_v57 }
0x1dee   :  { %v15356_v27 = vpop.eup %15355 }
0x1def   :  { %v11794_v34 = vmul.f32 %v15356_v27, %v11778_v37  ;;  %v11805_v22 = vadd.f32 %v11804_v5, %v11799_v62 }
0x1df1   :  { %v11800_v4 = vmul.f32 %v11798_v19, %v11794_v34  ;;  %14097 = vmatprep.mubr.msk.f32.mxu1 %vm322_vm6, %v11805_v22 }
0x1df3   :  { %v11806_v53 = vadd.f32 %v11804_v5, %v11800_v4 }
0x1df5   :  { %14098 = vmatmul.mubr.msk.f32.vlgmr.msra.gmra.mrb[140].mxu1 %vm322_vm6, %v11806_v53 }
0x1df6   :  { %14689 = vmatpush3.bf16.msra.mxu1 %v14686_v9 }
0x1df7   :  { %14691 = vmatprep.subr.bf16.mxu1 %v14690_v41 }
0x1dfa   :  { %14693 = vmatpush3.bf16.msra.mxu1 %v14690_v41 }
0x1dfb   :  { %14695 = vmatprep.subr.bf16.mxu1 %v14694_v26 }
0x1dfe   :  { %14697 = vmatpush3.bf16.msra.mxu1 %v14694_v26 }
0x1dff   :  { %14699 = vmatprep.subr.bf16.mxu1 %v14698_v15 }
0x1e02   :  { %14701 = vmatpush3.bf16.msra.mxu1 %v14698_v15 }
0x1ec8   :  { %v14099_v54 = vpop.f32.mrb[140].mxu1 }
0x1ec9   :  { %v11889_v18 = vadd.f32 %v14099_v54, %v11810_v52  ;;  %v11883_v23 = vpop.f32.mrb[141].mxu1 }
0x1eca   :  { %v11884_v45 = vadd.f32 %v11883_v23, %v11810_v52 }
0x1ecb   :  { %v11893_v38 = vmax.f32 %v11889_v18, 0.0 }
0x1ecc   :  { %v11892_v21 = vmax.f32 %v11884_v45, 0.0 }
0x1ece   :  { %14116 = vmatprep.mubr.msk.f32.mxu1 %vm6071_vm13, %v11892_v21 }
0x1ecf   :  { %14117 = vmatmul.mubr.msk.f32.vlgmr.msra.gmra.mrb[142].mxu1 %vm6071_vm13, %v11893_v38 }
0x1fa2   :  { %v14118_v35 = vpop.f32.mrb[142].mxu1 }
0x1fa3   :  { %v11976_v8 = vadd.f32 %v14118_v35, %v17195_v46  ;;  %v11966_v49 = vpop.f32.mrb[143].mxu1 }
0x1fa4   :  { %v11975_v1 = vadd.f32 %v11966_v49, %v17198_v31 }
0x1fa5   :  { %v11982_v55 = vadd.f32 %v11980_v43, %v11976_v8 }
0x1fa6   :  { %v11981_v13 = vadd.f32 %v11980_v43, %v11975_v1 }
0x1fa7   :  { %v11986_v48 = vsel %vm322_vm6, %v11982_v55, 0.0 }
0x1fa8   :  { %11987 = vadd.xlane.f32.xlu0 %v11986_v48  ;;  %v11983_v14 = vsel %vm322_vm6, %v11981_v13, 0.0 }
0x1fa9   :  { %11984 = vadd.xlane.f32.xlu1 %v11983_v14 }
0x2035   :  { %v11988_v36 = vpop.xlane.xlu0 %11987 }
0x2036   :  { %v11990_v50 = vmul.f32 0.03125, %v11988_v36  ;;  %v11985_v37 = vpop.xlane.xlu1 %11984 }
0x2037   :  { %v11989_v3 = vmul.f32 0.03125, %v11985_v37 }
0x2038   :  { %v11992_v2 = vsub.f32 %v11982_v55, %v11990_v50 }
0x2039   :  { %v11991_v0 = vsub.f32 %v11981_v13, %v11989_v3 }
0x203a   :  { %v11994_v12 = vmul.f32 %v11992_v2, %v11992_v2 }
0x203b   :  { %v11993_v25 = vmul.f32 %v11991_v0, %v11991_v0 }
0x203c   :  { %v11998_v46 = vsel %vm322_vm6, %v11994_v12, 0.0 }
0x203d   :  { %11999 = vadd.xlane.f32.xlu0 %v11998_v46  ;;  %v11995_v31 = vsel %vm322_vm6, %v11993_v25, 0.0 }
0x203e   :  { %11996 = vadd.xlane.f32.xlu1 %v11995_v31 }
0x20ca   :  { %v12000_v39 = vpop.xlane.xlu0 %11999 }
0x20cb   :  { %v12002_v17 = vmul.f32 0.03125, %v12000_v39  ;;  %v11997_v59 = vpop.xlane.xlu1 %11996 }
0x20cc   :  { %v12001_v61 = vmul.f32 0.03125, %v11997_v59 }
0x20cd   :  { %v12004_v9 = vadd.f32 1e-05, %v12002_v17 }
0x20ce   :  { %v12003_v16 = vadd.f32 1e-05, %v12001_v61 }
0x20cf   :  { %15357 = vrsqrt.f32 %v12004_v9 }
0x20d0   :  { %15359 = vrsqrt.f32 %v12003_v16 }
0x20d9   :  { %v15358_v40 = vpop.eup %15357 }
0x20da   :  { %v15360_v20 = vpop.eup %15359  ;;  %v12008_v47 = vmul.f32 %v15358_v40, %v11992_v2 }
0x20db   :  { %v12007_v19 = vmul.f32 %v15360_v20, %v11991_v0 }
0x20dc   :  { %v12014_v57 = vmul.f32 %v12012_v44, %v12008_v47 }
0x20dd   :  { %v12013_v5 = vmul.f32 %v12012_v44, %v12007_v19 }
0x20de   :  { %v12020_v27 = vadd.f32 %v12018_v24, %v12014_v57 }
0x20df   :  { %v12019_v62 = vadd.f32 %v12018_v24, %v12013_v5 }
0x20e1   :  { %14127 = vmatprep.mubr.msk.f32.mxu0 %vm322_vm6, %v12019_v62 }
0x20e2   :  { %14128 = vmatmul.mubr.msk.f32.vlgmr.msra.gmra.mrb[130].mxu0 %vm322_vm6, %v12020_v27 }
0x21b5   :  { %v14129_v34 = vpop.f32.mrb[130].mxu0 }
0x21b6   :  { %12103 = vst [vmem:[%s17293_s6 + $0x8] sm:$0xff] %v14129_v34  ;;  %v12093_v28 = vpop.f32.mrb[131].mxu0 }
0x21b7   :  { %12102 = vst [vmem:[%s17293_s6] sm:$0xff] %v12093_v28 }

</bundles_post_ra>
